<compile_context>
chip_gen: v7x
topology: tpu7x:2x2x1
jax: 0.10.0
libtpu: 0.0.40
codegen_flags: <defaults>
</compile_context>

<pallas_src>
import jax
import jax.numpy as jnp
from jax.experimental import pallas as pl
from jax.experimental.pallas import tpu as pltpu

OUT_LANES = 128  # lane-dense output slab width


# ---------------------------------------------------------------------------
# PrRoIPool (precise RoI pooling) — exact separable bilinear-integral form.
# Pure data-prep glue (weight construction + two-step contraction); the
# attention / projection / MLP hot path lives in the Pallas kernel below.
# ---------------------------------------------------------------------------
def prroi_pool(feat, boxes, pool_size):
    """feat: (B, C, H, W); boxes: (B, 4) [x1, y1, x2, y2] in feature-map coords."""
    B, C, H, W = feat.shape
    x1, y1, x2, y2 = boxes[:, 0], boxes[:, 1], boxes[:, 2], boxes[:, 3]
    roi_w = jnp.maximum(x2 - x1, 0.0)
    roi_h = jnp.maximum(y2 - y1, 0.0)
    bin_w = roi_w / pool_size
    bin_h = roi_h / pool_size

    def cdf(u):
        # integral of the bilinear (triangular) kernel max(0, 1-|t|) from -inf to u
        u = jnp.clip(u, -1.0, 1.0)
        return jnp.where(u <= 0.0, 0.5 * (u + 1.0) ** 2, 1.0 - 0.5 * (1.0 - u) ** 2)

    bins = jnp.arange(pool_size, dtype=feat.dtype)
    py = jnp.arange(H, dtype=feat.dtype)
    px = jnp.arange(W, dtype=feat.dtype)

    ys = y1[:, None] + bins[None, :] * bin_h[:, None]                     # (B, P)
    ye = ys + bin_h[:, None]
    Ay = cdf(ye[:, :, None] - py[None, None, :]) - cdf(ys[:, :, None] - py[None, None, :])  # (B,P,H)

    xs = x1[:, None] + bins[None, :] * bin_w[:, None]
    xe = xs + bin_w[:, None]
    Ax = cdf(xe[:, :, None] - px[None, None, :]) - cdf(xs[:, :, None] - px[None, None, :])  # (B,P,W)

    tmp = jnp.einsum('bip,bcpq->bciq', Ay, feat)                          # (B,C,P,W)
    pooled = jnp.einsum('bjq,bciq->bcij', Ax, tmp)                        # (B,C,P,P)
    win = jnp.maximum(bin_w * bin_h, 0.0)[:, None, None, None]
    return jnp.where(win == 0.0, 0.0, pooled / jnp.where(win == 0.0, 1.0, win))


def preprocess(search_feat, template_feat, search_box, pool_size, stride):
    """NCHW -> (b, seq, c) token sequences (glue, mirrors the PyTorch rearranges)."""
    b, c, h, w = search_feat.shape
    img_sz = h * stride                                 # feat_size * stride
    boxes = search_box / img_sz * w                     # image coords -> feature coords
    pooled = prroi_pool(search_feat, boxes, pool_size)  # (b, c, P, P)
    roi_feat = pooled.transpose(0, 2, 3, 1).reshape(b, pool_size * pool_size, c)
    th, tw = template_feat.shape[2], template_feat.shape[3]
    tmpl = template_feat.transpose(0, 2, 3, 1).reshape(b, th * tw, c)
    return roi_feat, tmpl


# ---------------------------------------------------------------------------
# Pallas kernel: 2x (multi-head cross-attn + proj + LN) -> 3-layer MLP head.
# One grid step == Bt batch items.  The stage-0 query (norm1(score_token) @
# scaled wq0 + scaled bq0) is precomputed in the wrapper (batch-invariant).
# ---------------------------------------------------------------------------
def _score_decoder_kernel(roi_ref, tmpl_ref, q0_ref, mt_ref,
                          wq1_ref, bq1_ref, wkv_ref, bkv_ref, wo_ref, bo_ref,
                          n2g_ref, n2b_ref,
                          mw1_ref, mb1_ref, mw2_ref, mb2_ref, mw3_ref, mb3_ref,
                          out_ref):
    f32 = jnp.float32
    bf16 = jnp.bfloat16
    Bt = roi_ref.shape[0]
    D = q0_ref.shape[-1]
    eps = 1e-5

    def layernorm(x, g, b):
        mu = jnp.mean(x, axis=-1, keepdims=True)
        xc = x - mu
        var = jnp.mean(xc * xc, axis=-1, keepdims=True)
        return xc * jax.lax.rsqrt(var + eps) * g + b

    # Head-membership mask M^T[h, d] = 1 if feature d belongs to head h. f32 so
    # the masking / head-select elementwise math stays on the f32 VPU (v5e has
    # no bf16 VALU); only MXU operands are bf16.
    mt = mt_ref[...]                                                       # (H, D)

    x = None
    for i in range(2):                    # i=0: pooled search-box tokens, i=1: template
        kv_ref = roi_ref if i == 0 else tmpl_ref
        T = kv_ref.shape[1]
        kv = kv_ref[...].reshape(Bt * T, D)                                # bf16

        if i == 0:
            # batch-invariant, pre-scaled query hoisted to the wrapper
            q = jnp.broadcast_to(q0_ref[...].astype(f32), (Bt, D))         # (Bt, D) f32
        else:
            # wq1/bq1 are pre-scaled by hidden_dim**-0.5 in the wrapper
            q = jnp.dot(x.astype(bf16), wq1_ref[...],
                        preferred_element_type=f32) + bq1_ref[...]         # (Bt, D) f32

        # fused K/V projection: bf16 operands, f32 accumulate, bf16 intermediates
        kvp = (jnp.dot(kv, wkv_ref[i], preferred_element_type=f32)
               + bkv_ref[i]).astype(bf16)                                  # (Bt*T, 2D) bf16
        k = kvp[:, :D].reshape(Bt, T, D)                                   # bf16
        v = kvp[:, D:].reshape(Bt, T, D)                                   # bf16

        # per-head masked query -> batched MXU score matmul in (Bt, H, T) layout
        qh = q[:, None, :] * mt[None]                                      # (Bt, H, D) f32
        scores = jnp.einsum('bhd,btd->bht', qh.astype(bf16), k,
                            preferred_element_type=f32)                    # (Bt, H, T) f32

        # lane-dense softmax over T (T on the lane axis)
        m = jnp.max(scores, axis=-1, keepdims=True)
        e = jnp.exp(scores - m)
        s = jnp.sum(e, axis=-1, keepdims=True)
        attn = e * pl.reciprocal(s, approx=True)                           # (Bt, H, T) f32

        # attention-value product on the MXU (f32 acc), then head-select
        o = jnp.einsum('bht,btd->bhd', attn.astype(bf16), v,
                       preferred_element_type=f32)                         # (Bt, H, D) f32
        x = jnp.sum(o * mt[None], axis=1)                                  # (Bt, D) == concat(heads)

        x = jnp.dot(x.astype(bf16), wo_ref[i], preferred_element_type=f32) + bo_ref[i]
        x = layernorm(x, n2g_ref[i], n2b_ref[i])

    # MLP score head: Linear -> ReLU -> Linear -> ReLU -> Linear(->1)
    h = jnp.maximum(jnp.dot(x.astype(bf16), mw1_ref[...],
                            preferred_element_type=f32) + mb1_ref[...], 0.0)
    h = jnp.maximum(jnp.dot(h.astype(bf16), mw2_ref[...],
                            preferred_element_type=f32) + mb2_ref[...], 0.0)
    # final D->1 layer as a lane reduction (avoids an N=1 masked matmul/store)
    score = jnp.sum(h * mw3_ref[...], axis=-1, keepdims=True) + mb3_ref[...]   # (Bt, 1)
    out_ref[...] = jnp.broadcast_to(score, out_ref.shape)                      # lane-dense store


def _cost_estimate(b_pad, P2, T2, D, H):
    """Advisory per-call totals so XLA can schedule around the custom call."""
    T = P2 + T2
    flops = b_pad * (
        2 * T * D * (2 * D)          # fused K/V projections (both stages)
        + 2 * D * D                  # stage-1 q projection
        + 4 * H * D * T              # score + attention-value einsums
        + 2 * 2 * D * D              # output projections (2 stages)
        + 2 * 2 * D * D + 2 * D      # MLP head
    )
    transcendentals = b_pad * H * T  # softmax exp
    bytes_accessed = (
        b_pad * T * D * 2            # bf16 token tiles
        + b_pad * OUT_LANES * 4      # f32 output slab
        + (7 * D * D + D) * 2        # bf16 weights (approx)
        + 16 * D * 4                 # f32 biases / norms / masks (approx)
    )
    return pl.CostEstimate(flops=flops, transcendentals=transcendentals,
                           bytes_accessed=bytes_accessed)


def mixformer_score_decoder_pallas(roi_feat, tmpl, params, *, num_heads, batch_tile=8):
    b, P2, D = roi_feat.shape
    T2 = tmpl.shape[1]
    H = num_heads
    bf16 = jnp.bfloat16
    f32 = jnp.float32
    p = params
    scale = float(D) ** -0.5          # module uses hidden_dim ** -0.5 (not head_dim)
    eps = 1e-5

    bt = batch_tile
    b_pad = ((b + bt - 1) // bt) * bt

    # bf16 token tiles (halves token DMA bytes); zero-pad batch to a tile multiple.
    roi_p = jnp.pad(roi_feat.astype(bf16), ((0, b_pad - b), (0, 0), (0, 0)))
    tmpl_p = jnp.pad(tmpl.astype(bf16), ((0, b_pad - b), (0, 0), (0, 0)))

    # ---- batch-invariant prologue hoisted out of the kernel -----------------
    tok = p['score_token']                               # (1, D)
    mu = jnp.mean(tok, axis=-1, keepdims=True)
    var = jnp.mean((tok - mu) ** 2, axis=-1, keepdims=True)
    x0 = (tok - mu) * jax.lax.rsqrt(var + eps) * p['n1g'] + p['n1b']
    q0 = (x0 @ p['wq'][0] + p['bq'][0]) * scale          # (1, D) f32, scale folded in

    # Head-membership mask (H, D), exact 0/1, f32 (VPU elementwise path).
    dh = D // H
    mt_mask = (jnp.arange(D)[None, :] // dh == jnp.arange(H)[:, None]).astype(f32)

    # bf16 matmul operands, f32 biases; stage-1 q weights pre-scaled by `scale`.
    wq1_b = (p['wq'][1] * scale).astype(bf16)                            # (D, D)
    bq1 = p['bq'][1] * scale                                             # (1, D)
    wkv_b = jnp.concatenate([p['wk'], p['wv']], axis=-1).astype(bf16)    # (2, D, 2D)
    bkv = jnp.concatenate([p['bk'], p['bv']], axis=-1)                   # (2, 1, 2D)
    wo_b = p['wo'].astype(bf16)
    mw1_b = p['mw1'].astype(bf16)
    mw2_b = p['mw2'].astype(bf16)
    mw3t = p['mw3'].T                                                    # (1, D) f32

    rep2 = lambda i: (0, 0)
    rep3 = lambda i: (0, 0, 0)

    grid_spec = pltpu.PrefetchScalarGridSpec(
        num_scalar_prefetch=0,
        grid=(b_pad // bt,),
        in_specs=[
            pl.BlockSpec((bt, P2, D), lambda i: (i, 0, 0)),     # pooled search-box tokens (bf16)
            pl.BlockSpec((bt, T2, D), lambda i: (i, 0, 0)),     # template tokens (bf16)
            pl.BlockSpec((1, D), rep2),                         # precomputed stage-0 query
            pl.BlockSpec((H, D), rep2),                         # head mask M^T
            pl.BlockSpec((D, D), rep2), pl.BlockSpec((1, D), rep2),                  # proj_q (stage 1, pre-scaled)
            pl.BlockSpec((2, D, 2 * D), rep3), pl.BlockSpec((2, 1, 2 * D), rep3),    # fused proj_kv
            pl.BlockSpec((2, D, D), rep3), pl.BlockSpec((2, 1, D), rep3),            # proj
            pl.BlockSpec((2, 1, D), rep3), pl.BlockSpec((2, 1, D), rep3),            # norm2
            pl.BlockSpec((D, D), rep2), pl.BlockSpec((1, D), rep2),                  # mlp L1
            pl.BlockSpec((D, D), rep2), pl.BlockSpec((1, D), rep2),                  # mlp L2
            pl.BlockSpec((1, D), rep2), pl.BlockSpec((1, 1), rep2),                  # mlp L3 (row vec + bias)
        ],
        out_specs=pl.BlockSpec((bt, OUT_LANES), lambda i: (i, 0)),
    )

    out = pl.pallas_call(
        _score_decoder_kernel,
        out_shape=jax.ShapeDtypeStruct((b_pad, OUT_LANES), jnp.float32),
        grid_spec=grid_spec,
        compiler_params=pltpu.CompilerParams(
            dimension_semantics=("parallel",),   # batch tiles are independent (v7x: 2 TCs)
            vmem_limit_bytes=32 * 1024 * 1024,   # raise with Bt/D (v5e default is 16 MiB)
        ),
        cost_estimate=_cost_estimate(b_pad, P2, T2, D, H),
    )(roi_p, tmpl_p, q0, mt_mask,
      wq1_b, bq1, wkv_b, bkv, wo_b, p['bo'],
      p['n2g'], p['n2b'],
      mw1_b, p['mb1'], mw2_b, p['mb2'], mw3t, p['mb3'])

    return out[:b, :1].reshape(b, 1, 1)


# ---------------------------------------------------------------------------
# Deterministic parameter init (synthetic; shapes follow the module __init__)
# ---------------------------------------------------------------------------
def init_params(key, D):
    keys = jax.random.split(key, 8)

    def linear(k, din, dout):
        kw, kb = jax.random.split(k)
        bound = 1.0 / (din ** 0.5)
        W = jax.random.uniform(kw, (din, dout), jnp.float32, -bound, bound)
        b = jax.random.uniform(kb, (dout,), jnp.float32, -bound, bound)
        return W, b

    def pair(k):
        k0, k1 = jax.random.split(k)
        W0, b0 = linear(k0, D, D)
        W1, b1 = linear(k1, D, D)
        return jnp.stack([W0, W1]), jnp.stack([b0, b1])[:, None, :]

    wq, bq = pair(keys[0])
    wk, bk = pair(keys[1])
    wv, bv = pair(keys[2])
    wo, bo = pair(keys[3])
    mw1, mb1 = linear(keys[4], D, D)
    mw2, mb2 = linear(keys[5], D, D)
    mw3, mb3 = linear(keys[6], D, 1)
    return dict(
        score_token=jax.random.normal(keys[7], (1, D), jnp.float32) * 0.02,
        wq=wq, bq=bq, wk=wk, bk=bk, wv=wv, bv=bv, wo=wo, bo=bo,
        n1g=jnp.ones((1, D), jnp.float32), n1b=jnp.zeros((1, D), jnp.float32),
        n2g=jnp.ones((2, 1, D), jnp.float32), n2b=jnp.zeros((2, 1, D), jnp.float32),
        mw1=mw1, mb1=mb1[None, :], mw2=mw2, mb2=mb2[None, :],
        mw3=mw3, mb3=mb3[None, :],
    )


# ---------------------------------------------------------------------------
# Pure-JAX f32 reference (standard multi-head form) for validation
# ---------------------------------------------------------------------------
def reference_forward(roi_feat, tmpl, p, num_heads):
    B, _, D = roi_feat.shape
    scale = float(D) ** -0.5
    eps = 1e-5

    def ln(x, g, b):
        mu = jnp.mean(x, axis=-1, keepdims=True)
        var = jnp.mean((x - mu) ** 2, axis=-1, keepdims=True)
        return (x - mu) / jnp.sqrt(var + eps) * g + b

    x = jnp.broadcast_to(p['score_token'][None], (B, 1, D))
    x = ln(x, p['n1g'], p['n1b'])
    kv_mem = [roi_feat, tmpl]
    dh = D // num_heads
    for i in range(2):
        kv = kv_mem[i]
        t = kv.shape[1]
        q = x @ p['wq'][i] + p['bq'][i]
        k = kv @ p['wk'][i] + p['bk'][i]
        v = kv @ p['wv'][i] + p['bv'][i]
        qh = q.reshape(B, 1, num_heads, dh).transpose(0, 2, 1, 3)
        kh = k.reshape(B, t, num_heads, dh).transpose(0, 2, 1, 3)
        vh = v.reshape(B, t, num_heads, dh).transpose(0, 2, 1, 3)
        sc = jnp.einsum('bhld,bhtd->bhlt', qh, kh) * scale
        a = jax.nn.softmax(sc, axis=-1)
        o = jnp.einsum('bhlt,bhtd->bhld', a, vh)
        o = o.transpose(0, 2, 1, 3).reshape(B, 1, D)
        x = o @ p['wo'][i] + p['bo'][i]
        x = ln(x, p['n2g'][i], p['n2b'][i])
    h = jax.nn.relu(x @ p['mw1'] + p['mb1'])
    h = jax.nn.relu(h @ p['mw2'] + p['mb2'])
    return h @ p['mw3'] + p['mb3']


if __name__ == "__main__":
    B = 10                   # pads to 16 -> 2 grid steps at batch_tile=8 (exercises padding + both v7x TCs)
    hidden_dim = 128         # stands in for 384 (multiple of 128 keeps lane splits aligned)
    num_heads = 4            # stands in for 6 (must divide hidden_dim)
    pool_size = 4
    stride = 16
    Hs = Ws = 16             # search feature map (feat_size)
    Ht = Wt = 8              # template feature map

    key = jax.random.PRNGKey(0)
    k1, k2, k3, k4, kp = jax.random.split(key, 5)
    search_feat = jax.random.normal(k1, (B, hidden_dim, Hs, Ws), jnp.float32)
    template_feat = jax.random.normal(k2, (B, hidden_dim, Ht, Wt), jnp.float32)

    img_sz = Hs * stride
    centers = jax.random.uniform(k3, (B, 2), jnp.float32, 0.3, 0.7) * img_sz
    half = jax.random.uniform(k4, (B, 2), jnp.float32, 24.0, 72.0)
    search_box = jnp.concatenate([centers - half, centers + half], axis=-1)  # (B,4) xyxy

    params = init_params(kp, hidden_dim)

    roi_feat, tmpl = preprocess(search_feat, template_feat, search_box, pool_size, stride)
    out = mixformer_score_decoder_pallas(roi_feat, tmpl, params,
                                         num_heads=num_heads, batch_tile=8)
    out = jax.block_until_ready(out)

    ref = reference_forward(roi_feat, tmpl, params, num_heads)
    assert out.shape == (B, 1, 1), out.shape
    # kernel runs matmuls with bf16 operands / f32 accumulation -> bf16-level tolerance
    assert jnp.allclose(out, ref, atol=5e-2, rtol=5e-2), (out, ref)
    print("KERNEL_OK")
</pallas_src>

<mosaic_0001>
module attributes {stable_mosaic.version = 11 : i64} {
  func.func @_score_decoder_kernel(%arg0: i32, %arg1: memref<8x16x128xbf16, #tpu.memory_space<vmem>>, %arg2: memref<8x64x128xbf16, #tpu.memory_space<vmem>>, %arg3: memref<1x128xf32, #tpu.memory_space<vmem>>, %arg4: memref<4x128xf32, #tpu.memory_space<vmem>>, %arg5: memref<128x128xbf16, #tpu.memory_space<vmem>>, %arg6: memref<1x128xf32, #tpu.memory_space<vmem>>, %arg7: memref<2x128x256xbf16, #tpu.memory_space<vmem>>, %arg8: memref<2x1x256xf32, #tpu.memory_space<vmem>>, %arg9: memref<2x128x128xbf16, #tpu.memory_space<vmem>>, %arg10: memref<2x1x128xf32, #tpu.memory_space<vmem>>, %arg11: memref<2x1x128xf32, #tpu.memory_space<vmem>>, %arg12: memref<2x1x128xf32, #tpu.memory_space<vmem>>, %arg13: memref<128x128xbf16, #tpu.memory_space<vmem>>, %arg14: memref<1x128xf32, #tpu.memory_space<vmem>>, %arg15: memref<128x128xbf16, #tpu.memory_space<vmem>>, %arg16: memref<1x128xf32, #tpu.memory_space<vmem>>, %arg17: memref<1x128xf32, #tpu.memory_space<vmem>>, %arg18: memref<1x1xf32, #tpu.memory_space<vmem>>, %arg19: memref<8x128xf32, #tpu.memory_space<vmem>>) attributes {dimension_semantics = [#tpu.dimension_semantics<parallel>], iteration_bounds = array<i64: 2>, scalar_prefetch = 0 : i64, scratch_operands = 0 : i64, tpu.core_type = #tpu.core_type<tc>, window_params = [{transform_indices = @transform_0, window_bounds = array<i64: 8, 16, 128>}, {transform_indices = @transform_1, window_bounds = array<i64: 8, 64, 128>}, {pipeline_mode = #tpu.pipeline_mode<synchronous>, transform_indices = @transform_2, window_bounds = array<i64: 1, 128>}, {pipeline_mode = #tpu.pipeline_mode<synchronous>, transform_indices = @transform_3, window_bounds = array<i64: 4, 128>}, {pipeline_mode = #tpu.pipeline_mode<synchronous>, transform_indices = @transform_4, window_bounds = array<i64: 128, 128>}, {pipeline_mode = #tpu.pipeline_mode<synchronous>, transform_indices = @transform_5, window_bounds = array<i64: 1, 128>}, {pipeline_mode = #tpu.pipeline_mode<synchronous>, transform_indices = @transform_6, window_bounds = array<i64: 2, 128, 256>}, {pipeline_mode = #tpu.pipeline_mode<synchronous>, transform_indices = @transform_7, window_bounds = array<i64: 2, 1, 256>}, {pipeline_mode = #tpu.pipeline_mode<synchronous>, transform_indices = @transform_8, window_bounds = array<i64: 2, 128, 128>}, {pipeline_mode = #tpu.pipeline_mode<synchronous>, transform_indices = @transform_9, window_bounds = array<i64: 2, 1, 128>}, {pipeline_mode = #tpu.pipeline_mode<synchronous>, transform_indices = @transform_10, window_bounds = array<i64: 2, 1, 128>}, {pipeline_mode = #tpu.pipeline_mode<synchronous>, transform_indices = @transform_11, window_bounds = array<i64: 2, 1, 128>}, {pipeline_mode = #tpu.pipeline_mode<synchronous>, transform_indices = @transform_12, window_bounds = array<i64: 128, 128>}, {pipeline_mode = #tpu.pipeline_mode<synchronous>, transform_indices = @transform_13, window_bounds = array<i64: 1, 128>}, {pipeline_mode = #tpu.pipeline_mode<synchronous>, transform_indices = @transform_14, window_bounds = array<i64: 128, 128>}, {pipeline_mode = #tpu.pipeline_mode<synchronous>, transform_indices = @transform_15, window_bounds = array<i64: 1, 128>}, {pipeline_mode = #tpu.pipeline_mode<synchronous>, transform_indices = @transform_16, window_bounds = array<i64: 1, 128>}, {pipeline_mode = #tpu.pipeline_mode<synchronous>, transform_indices = @transform_17, window_bounds = array<i64: 1, 1>}, {transform_indices = @transform_18, window_bounds = array<i64: 8, 128>}]} {
    %c0 = arith.constant 0 : index
    %c0_0 = arith.constant 0 : index
    %0 = vector.load %arg4[%c0, %c0_0] : memref<4x128xf32, #tpu.memory_space<vmem>>, vector<4x128xf32>
    %c0_1 = arith.constant 0 : index
    %c0_2 = arith.constant 0 : index
    %c0_3 = arith.constant 0 : index
    %1 = vector.load %arg1[%c0_1, %c0_2, %c0_3] : memref<8x16x128xbf16, #tpu.memory_space<vmem>>, vector<8x16x128xbf16>
    %2 = vector.shape_cast %1 : vector<8x16x128xbf16> to vector<128x128xbf16>
    %c0_4 = arith.constant 0 : index
    %c0_5 = arith.constant 0 : index
    %3 = vector.load %arg3[%c0_4, %c0_5] : memref<1x128xf32, #tpu.memory_space<vmem>>, vector<1x128xf32>
    %4 = vector.shape_cast %3 : vector<1x128xf32> to vector<1x128xf32>
    %5 = vector.broadcast %4 : vector<1x128xf32> to vector<8x128xf32>
    %c0_6 = arith.constant 0 : index
    %c0_7 = arith.constant 0 : index
    %c0_8 = arith.constant 0 : index
    %6 = vector.load %arg7[%c0_6, %c0_7, %c0_8] : memref<2x128x256xbf16, #tpu.memory_space<vmem>>, vector<1x128x256xbf16>
    %7 = vector.shape_cast %6 : vector<1x128x256xbf16> to vector<128x256xbf16>
    %cst = arith.constant dense<0.000000e+00> : vector<128x256xf32>
    %8 = tpu.matmul %2, %7, %cst {dimension_numbers = #tpu.dot_dimension_numbers<[1], [0], [0], [1], [0, 0, 1, 1], [], []>} : vector<128x128xbf16>, vector<128x256xbf16>, vector<128x256xf32> -> vector<128x256xf32>
    %c0_9 = arith.constant 0 : index
    %c0_10 = arith.constant 0 : index
    %c0_11 = arith.constant 0 : index
    %9 = vector.load %arg8[%c0_9, %c0_10, %c0_11] : memref<2x1x256xf32, #tpu.memory_space<vmem>>, vector<1x1x256xf32>
    %10 = vector.shape_cast %9 : vector<1x1x256xf32> to vector<1x256xf32>
    %11 = vector.broadcast %10 : vector<1x256xf32> to vector<128x256xf32>
    %12 = arith.addf %8, %11 : vector<128x256xf32>
    %13 = arith.truncf %12 : vector<128x256xf32> to vector<128x256xbf16>
    %14 = vector.extract_strided_slice %13 {offsets = [0, 0], sizes = [128, 128], strides = [1, 1]} : vector<128x256xbf16> to vector<128x128xbf16>
    %15 = vector.shape_cast %14 : vector<128x128xbf16> to vector<8x16x128xbf16>
    %16 = vector.extract_strided_slice %13 {offsets = [0, 128], sizes = [128, 128], strides = [1, 1]} : vector<128x256xbf16> to vector<128x128xbf16>
    %17 = vector.shape_cast %16 : vector<128x128xbf16> to vector<8x16x128xbf16>
    %18 = vector.shape_cast %5 : vector<8x128xf32> to vector<8x1x128xf32>
    %19 = vector.shape_cast %0 : vector<4x128xf32> to vector<1x4x128xf32>
    %20 = vector.broadcast %18 : vector<8x1x128xf32> to vector<8x4x128xf32>
    %21 = vector.broadcast %19 : vector<1x4x128xf32> to vector<8x4x128xf32>
    %22 = arith.mulf %20, %21 : vector<8x4x128xf32>
    %23 = arith.truncf %22 : vector<8x4x128xf32> to vector<8x4x128xbf16>
    "tpu.trace_start"() <{level = 10 : i32, message = "bhd,btd->bht"}> : () -> ()
    %cst_12 = arith.constant dense<0.000000e+00> : vector<8x4x16xf32>
    %24 = tpu.matmul %23, %15, %cst_12 {dimension_numbers = #tpu.dot_dimension_numbers<[2], [2], [1], [1], [0, 0, 0, 1, 1, 1], [0], [0]>} : vector<8x4x128xbf16>, vector<8x16x128xbf16>, vector<8x4x16xf32> -> vector<8x4x16xf32>
    "tpu.trace_stop"() : () -> ()
    %cst_13 = arith.constant dense<0xFF800000> : vector<8x4xf32>
    %25 = vector.multi_reduction <maximumf>, %24, %cst_13 [2] : vector<8x4x16xf32> to vector<8x4xf32>
    %26 = vector.shape_cast %25 : vector<8x4xf32> to vector<8x4x1xf32>
    %27 = vector.broadcast %26 : vector<8x4x1xf32> to vector<8x4x16xf32>
    %28 = arith.subf %24, %27 : vector<8x4x16xf32>
    %29 = math.exp %28 : vector<8x4x16xf32>
    %cst_14 = arith.constant dense<0.000000e+00> : vector<8x4xf32>
    %30 = vector.multi_reduction <add>, %29, %cst_14 [2] : vector<8x4x16xf32> to vector<8x4xf32>
    %31 = vector.shape_cast %30 : vector<8x4xf32> to vector<8x4x1xf32>
    %32 = tpu.reciprocal %31 {approx = true} : vector<8x4x1xf32> -> vector<8x4x1xf32>
    %33 = vector.broadcast %32 : vector<8x4x1xf32> to vector<8x4x16xf32>
    %34 = arith.mulf %29, %33 : vector<8x4x16xf32>
    %35 = arith.truncf %34 : vector<8x4x16xf32> to vector<8x4x16xbf16>
    "tpu.trace_start"() <{level = 10 : i32, message = "bht,btd->bhd"}> : () -> ()
    %cst_15 = arith.constant dense<0.000000e+00> : vector<8x4x128xf32>
    %36 = tpu.matmul %35, %17, %cst_15 {dimension_numbers = #tpu.dot_dimension_numbers<[2], [1], [1], [2], [0, 0, 0, 1, 1, 2], [0], [0]>} : vector<8x4x16xbf16>, vector<8x16x128xbf16>, vector<8x4x128xf32> -> vector<8x4x128xf32>
    "tpu.trace_stop"() : () -> ()
    %37 = vector.shape_cast %0 : vector<4x128xf32> to vector<1x4x128xf32>
    %38 = vector.broadcast %37 : vector<1x4x128xf32> to vector<8x4x128xf32>
    %39 = arith.mulf %36, %38 : vector<8x4x128xf32>
    %cst_16 = arith.constant dense<0.000000e+00> : vector<8x128xf32>
    %40 = vector.multi_reduction <add>, %39, %cst_16 [1] : vector<8x4x128xf32> to vector<8x128xf32>
    %41 = arith.truncf %40 : vector<8x128xf32> to vector<8x128xbf16>
    %c0_17 = arith.constant 0 : index
    %c0_18 = arith.constant 0 : index
    %c0_19 = arith.constant 0 : index
    %42 = vector.load %arg9[%c0_17, %c0_18, %c0_19] : memref<2x128x128xbf16, #tpu.memory_space<vmem>>, vector<1x128x128xbf16>
    %43 = vector.shape_cast %42 : vector<1x128x128xbf16> to vector<128x128xbf16>
    %cst_20 = arith.constant dense<0.000000e+00> : vector<8x128xf32>
    %44 = tpu.matmul %41, %43, %cst_20 {dimension_numbers = #tpu.dot_dimension_numbers<[1], [0], [0], [1], [0, 0, 1, 1], [], []>} : vector<8x128xbf16>, vector<128x128xbf16>, vector<8x128xf32> -> vector<8x128xf32>
    %c0_21 = arith.constant 0 : index
    %c0_22 = arith.constant 0 : index
    %c0_23 = arith.constant 0 : index
    %45 = vector.load %arg10[%c0_21, %c0_22, %c0_23] : memref<2x1x128xf32, #tpu.memory_space<vmem>>, vector<1x1x128xf32>
    %46 = vector.shape_cast %45 : vector<1x1x128xf32> to vector<1x128xf32>
    %47 = vector.broadcast %46 : vector<1x128xf32> to vector<8x128xf32>
    %48 = arith.addf %44, %47 : vector<8x128xf32>
    %c0_24 = arith.constant 0 : index
    %c0_25 = arith.constant 0 : index
    %c0_26 = arith.constant 0 : index
    %49 = vector.load %arg11[%c0_24, %c0_25, %c0_26] : memref<2x1x128xf32, #tpu.memory_space<vmem>>, vector<1x1x128xf32>
    %50 = vector.shape_cast %49 : vector<1x1x128xf32> to vector<1x128xf32>
    %c0_27 = arith.constant 0 : index
    %c0_28 = arith.constant 0 : index
    %c0_29 = arith.constant 0 : index
    %51 = vector.load %arg12[%c0_27, %c0_28, %c0_29] : memref<2x1x128xf32, #tpu.memory_space<vmem>>, vector<1x1x128xf32>
    %52 = vector.shape_cast %51 : vector<1x1x128xf32> to vector<1x128xf32>
    %cst_30 = arith.constant dense<0.000000e+00> : vector<8xf32>
    %53 = vector.multi_reduction <add>, %48, %cst_30 [1] : vector<8x128xf32> to vector<8xf32>
    %54 = vector.shape_cast %53 : vector<8xf32> to vector<8x1xf32>
    %cst_31 = arith.constant 1.280000e+02 : f32
    %55 = vector.broadcast %cst_31 : f32 to vector<8x1xf32>
    %56 = arith.divf %54, %55 : vector<8x1xf32>
    %57 = vector.broadcast %56 : vector<8x1xf32> to vector<8x128xf32>
    %58 = arith.subf %48, %57 : vector<8x128xf32>
    %59 = arith.mulf %58, %58 : vector<8x128xf32>
    %cst_32 = arith.constant dense<0.000000e+00> : vector<8xf32>
    %60 = vector.multi_reduction <add>, %59, %cst_32 [1] : vector<8x128xf32> to vector<8xf32>
    %61 = vector.shape_cast %60 : vector<8xf32> to vector<8x1xf32>
    %cst_33 = arith.constant 1.280000e+02 : f32
    %62 = vector.broadcast %cst_33 : f32 to vector<8x1xf32>
    %63 = arith.divf %61, %62 : vector<8x1xf32>
    %cst_34 = arith.constant 9.99999974E-6 : f32
    %64 = vector.broadcast %cst_34 : f32 to vector<8x1xf32>
    %65 = arith.addf %63, %64 : vector<8x1xf32>
    %66 = math.rsqrt %65 : vector<8x1xf32>
    %67 = vector.broadcast %66 : vector<8x1xf32> to vector<8x128xf32>
    %68 = arith.mulf %58, %67 : vector<8x128xf32>
    %69 = vector.broadcast %50 : vector<1x128xf32> to vector<8x128xf32>
    %70 = arith.mulf %68, %69 : vector<8x128xf32>
    %71 = vector.broadcast %52 : vector<1x128xf32> to vector<8x128xf32>
    %72 = arith.addf %70, %71 : vector<8x128xf32>
    %c0_35 = arith.constant 0 : index
    %c0_36 = arith.constant 0 : index
    %c0_37 = arith.constant 0 : index
    %73 = vector.load %arg2[%c0_35, %c0_36, %c0_37] : memref<8x64x128xbf16, #tpu.memory_space<vmem>>, vector<8x64x128xbf16>
    %74 = vector.shape_cast %73 : vector<8x64x128xbf16> to vector<512x128xbf16>
    %75 = arith.truncf %72 : vector<8x128xf32> to vector<8x128xbf16>
    %c0_38 = arith.constant 0 : index
    %c0_39 = arith.constant 0 : index
    %76 = vector.load %arg5[%c0_38, %c0_39] : memref<128x128xbf16, #tpu.memory_space<vmem>>, vector<128x128xbf16>
    %cst_40 = arith.constant dense<0.000000e+00> : vector<8x128xf32>
    %77 = tpu.matmul %75, %76, %cst_40 {dimension_numbers = #tpu.dot_dimension_numbers<[1], [0], [0], [1], [0, 0, 1, 1], [], []>} : vector<8x128xbf16>, vector<128x128xbf16>, vector<8x128xf32> -> vector<8x128xf32>
    %c0_41 = arith.constant 0 : index
    %c0_42 = arith.constant 0 : index
    %78 = vector.load %arg6[%c0_41, %c0_42] : memref<1x128xf32, #tpu.memory_space<vmem>>, vector<1x128xf32>
    %79 = vector.broadcast %78 : vector<1x128xf32> to vector<8x128xf32>
    %80 = arith.addf %77, %79 : vector<8x128xf32>
    %c1 = arith.constant 1 : index
    %c0_43 = arith.constant 0 : index
    %c0_44 = arith.constant 0 : index
    %81 = vector.load %arg7[%c1, %c0_43, %c0_44] : memref<2x128x256xbf16, #tpu.memory_space<vmem>>, vector<1x128x256xbf16>
    %82 = vector.shape_cast %81 : vector<1x128x256xbf16> to vector<128x256xbf16>
    %cst_45 = arith.constant dense<0.000000e+00> : vector<512x256xf32>
    %83 = tpu.matmul %74, %82, %cst_45 {dimension_numbers = #tpu.dot_dimension_numbers<[1], [0], [0], [1], [0, 0, 1, 1], [], []>} : vector<512x128xbf16>, vector<128x256xbf16>, vector<512x256xf32> -> vector<512x256xf32>
    %c1_46 = arith.constant 1 : index
    %c0_47 = arith.constant 0 : index
    %c0_48 = arith.constant 0 : index
    %84 = vector.load %arg8[%c1_46, %c0_47, %c0_48] : memref<2x1x256xf32, #tpu.memory_space<vmem>>, vector<1x1x256xf32>
    %85 = vector.shape_cast %84 : vector<1x1x256xf32> to vector<1x256xf32>
    %86 = vector.broadcast %85 : vector<1x256xf32> to vector<512x256xf32>
    %87 = arith.addf %83, %86 : vector<512x256xf32>
    %88 = arith.truncf %87 : vector<512x256xf32> to vector<512x256xbf16>
    %89 = vector.extract_strided_slice %88 {offsets = [0, 0], sizes = [512, 128], strides = [1, 1]} : vector<512x256xbf16> to vector<512x128xbf16>
    %90 = vector.shape_cast %89 : vector<512x128xbf16> to vector<8x64x128xbf16>
    %91 = vector.extract_strided_slice %88 {offsets = [0, 128], sizes = [512, 128], strides = [1, 1]} : vector<512x256xbf16> to vector<512x128xbf16>
    %92 = vector.shape_cast %91 : vector<512x128xbf16> to vector<8x64x128xbf16>
    %93 = vector.shape_cast %80 : vector<8x128xf32> to vector<8x1x128xf32>
    %94 = vector.shape_cast %0 : vector<4x128xf32> to vector<1x4x128xf32>
    %95 = vector.broadcast %93 : vector<8x1x128xf32> to vector<8x4x128xf32>
    %96 = vector.broadcast %94 : vector<1x4x128xf32> to vector<8x4x128xf32>
    %97 = arith.mulf %95, %96 : vector<8x4x128xf32>
    %98 = arith.truncf %97 : vector<8x4x128xf32> to vector<8x4x128xbf16>
    "tpu.trace_start"() <{level = 10 : i32, message = "bhd,btd->bht"}> : () -> ()
    %cst_49 = arith.constant dense<0.000000e+00> : vector<8x4x64xf32>
    %99 = tpu.matmul %98, %90, %cst_49 {dimension_numbers = #tpu.dot_dimension_numbers<[2], [2], [1], [1], [0, 0, 0, 1, 1, 1], [0], [0]>} : vector<8x4x128xbf16>, vector<8x64x128xbf16>, vector<8x4x64xf32> -> vector<8x4x64xf32>
    "tpu.trace_stop"() : () -> ()
    %cst_50 = arith.constant dense<0xFF800000> : vector<8x4xf32>
    %100 = vector.multi_reduction <maximumf>, %99, %cst_50 [2] : vector<8x4x64xf32> to vector<8x4xf32>
    %101 = vector.shape_cast %100 : vector<8x4xf32> to vector<8x4x1xf32>
    %102 = vector.broadcast %101 : vector<8x4x1xf32> to vector<8x4x64xf32>
    %103 = arith.subf %99, %102 : vector<8x4x64xf32>
    %104 = math.exp %103 : vector<8x4x64xf32>
    %cst_51 = arith.constant dense<0.000000e+00> : vector<8x4xf32>
    %105 = vector.multi_reduction <add>, %104, %cst_51 [2] : vector<8x4x64xf32> to vector<8x4xf32>
    %106 = vector.shape_cast %105 : vector<8x4xf32> to vector<8x4x1xf32>
    %107 = tpu.reciprocal %106 {approx = true} : vector<8x4x1xf32> -> vector<8x4x1xf32>
    %108 = vector.broadcast %107 : vector<8x4x1xf32> to vector<8x4x64xf32>
    %109 = arith.mulf %104, %108 : vector<8x4x64xf32>
    %110 = arith.truncf %109 : vector<8x4x64xf32> to vector<8x4x64xbf16>
    "tpu.trace_start"() <{level = 10 : i32, message = "bht,btd->bhd"}> : () -> ()
    %cst_52 = arith.constant dense<0.000000e+00> : vector<8x4x128xf32>
    %111 = tpu.matmul %110, %92, %cst_52 {dimension_numbers = #tpu.dot_dimension_numbers<[2], [1], [1], [2], [0, 0, 0, 1, 1, 2], [0], [0]>} : vector<8x4x64xbf16>, vector<8x64x128xbf16>, vector<8x4x128xf32> -> vector<8x4x128xf32>
    "tpu.trace_stop"() : () -> ()
    %112 = vector.shape_cast %0 : vector<4x128xf32> to vector<1x4x128xf32>
    %113 = vector.broadcast %112 : vector<1x4x128xf32> to vector<8x4x128xf32>
    %114 = arith.mulf %111, %113 : vector<8x4x128xf32>
    %cst_53 = arith.constant dense<0.000000e+00> : vector<8x128xf32>
    %115 = vector.multi_reduction <add>, %114, %cst_53 [1] : vector<8x4x128xf32> to vector<8x128xf32>
    %116 = arith.truncf %115 : vector<8x128xf32> to vector<8x128xbf16>
    %c1_54 = arith.constant 1 : index
    %c0_55 = arith.constant 0 : index
    %c0_56 = arith.constant 0 : index
    %117 = vector.load %arg9[%c1_54, %c0_55, %c0_56] : memref<2x128x128xbf16, #tpu.memory_space<vmem>>, vector<1x128x128xbf16>
    %118 = vector.shape_cast %117 : vector<1x128x128xbf16> to vector<128x128xbf16>
    %cst_57 = arith.constant dense<0.000000e+00> : vector<8x128xf32>
    %119 = tpu.matmul %116, %118, %cst_57 {dimension_numbers = #tpu.dot_dimension_numbers<[1], [0], [0], [1], [0, 0, 1, 1], [], []>} : vector<8x128xbf16>, vector<128x128xbf16>, vector<8x128xf32> -> vector<8x128xf32>
    %c1_58 = arith.constant 1 : index
    %c0_59 = arith.constant 0 : index
    %c0_60 = arith.constant 0 : index
    %120 = vector.load %arg10[%c1_58, %c0_59, %c0_60] : memref<2x1x128xf32, #tpu.memory_space<vmem>>, vector<1x1x128xf32>
    %121 = vector.shape_cast %120 : vector<1x1x128xf32> to vector<1x128xf32>
    %122 = vector.broadcast %121 : vector<1x128xf32> to vector<8x128xf32>
    %123 = arith.addf %119, %122 : vector<8x128xf32>
    %c1_61 = arith.constant 1 : index
    %c0_62 = arith.constant 0 : index
    %c0_63 = arith.constant 0 : index
    %124 = vector.load %arg11[%c1_61, %c0_62, %c0_63] : memref<2x1x128xf32, #tpu.memory_space<vmem>>, vector<1x1x128xf32>
    %125 = vector.shape_cast %124 : vector<1x1x128xf32> to vector<1x128xf32>
    %c1_64 = arith.constant 1 : index
    %c0_65 = arith.constant 0 : index
    %c0_66 = arith.constant 0 : index
    %126 = vector.load %arg12[%c1_64, %c0_65, %c0_66] : memref<2x1x128xf32, #tpu.memory_space<vmem>>, vector<1x1x128xf32>
    %127 = vector.shape_cast %126 : vector<1x1x128xf32> to vector<1x128xf32>
    %cst_67 = arith.constant dense<0.000000e+00> : vector<8xf32>
    %128 = vector.multi_reduction <add>, %123, %cst_67 [1] : vector<8x128xf32> to vector<8xf32>
    %129 = vector.shape_cast %128 : vector<8xf32> to vector<8x1xf32>
    %cst_68 = arith.constant 1.280000e+02 : f32
    %130 = vector.broadcast %cst_68 : f32 to vector<8x1xf32>
    %131 = arith.divf %129, %130 : vector<8x1xf32>
    %132 = vector.broadcast %131 : vector<8x1xf32> to vector<8x128xf32>
    %133 = arith.subf %123, %132 : vector<8x128xf32>
    %134 = arith.mulf %133, %133 : vector<8x128xf32>
    %cst_69 = arith.constant dense<0.000000e+00> : vector<8xf32>
    %135 = vector.multi_reduction <add>, %134, %cst_69 [1] : vector<8x128xf32> to vector<8xf32>
    %136 = vector.shape_cast %135 : vector<8xf32> to vector<8x1xf32>
    %cst_70 = arith.constant 1.280000e+02 : f32
    %137 = vector.broadcast %cst_70 : f32 to vector<8x1xf32>
    %138 = arith.divf %136, %137 : vector<8x1xf32>
    %cst_71 = arith.constant 9.99999974E-6 : f32
    %139 = vector.broadcast %cst_71 : f32 to vector<8x1xf32>
    %140 = arith.addf %138, %139 : vector<8x1xf32>
    %141 = math.rsqrt %140 : vector<8x1xf32>
    %142 = vector.broadcast %141 : vector<8x1xf32> to vector<8x128xf32>
    %143 = arith.mulf %133, %142 : vector<8x128xf32>
    %144 = vector.broadcast %125 : vector<1x128xf32> to vector<8x128xf32>
    %145 = arith.mulf %143, %144 : vector<8x128xf32>
    %146 = vector.broadcast %127 : vector<1x128xf32> to vector<8x128xf32>
    %147 = arith.addf %145, %146 : vector<8x128xf32>
    %148 = arith.truncf %147 : vector<8x128xf32> to vector<8x128xbf16>
    %c0_72 = arith.constant 0 : index
    %c0_73 = arith.constant 0 : index
    %149 = vector.load %arg13[%c0_72, %c0_73] : memref<128x128xbf16, #tpu.memory_space<vmem>>, vector<128x128xbf16>
    %cst_74 = arith.constant dense<0.000000e+00> : vector<8x128xf32>
    %150 = tpu.matmul %148, %149, %cst_74 {dimension_numbers = #tpu.dot_dimension_numbers<[1], [0], [0], [1], [0, 0, 1, 1], [], []>} : vector<8x128xbf16>, vector<128x128xbf16>, vector<8x128xf32> -> vector<8x128xf32>
    %c0_75 = arith.constant 0 : index
    %c0_76 = arith.constant 0 : index
    %151 = vector.load %arg14[%c0_75, %c0_76] : memref<1x128xf32, #tpu.memory_space<vmem>>, vector<1x128xf32>
    %152 = vector.broadcast %151 : vector<1x128xf32> to vector<8x128xf32>
    %153 = arith.addf %150, %152 : vector<8x128xf32>
    %cst_77 = arith.constant 0.000000e+00 : f32
    %154 = vector.broadcast %cst_77 : f32 to vector<8x128xf32>
    %155 = arith.maximumf %153, %154 : vector<8x128xf32>
    %156 = arith.truncf %155 : vector<8x128xf32> to vector<8x128xbf16>
    %c0_78 = arith.constant 0 : index
    %c0_79 = arith.constant 0 : index
    %157 = vector.load %arg15[%c0_78, %c0_79] : memref<128x128xbf16, #tpu.memory_space<vmem>>, vector<128x128xbf16>
    %cst_80 = arith.constant dense<0.000000e+00> : vector<8x128xf32>
    %158 = tpu.matmul %156, %157, %cst_80 {dimension_numbers = #tpu.dot_dimension_numbers<[1], [0], [0], [1], [0, 0, 1, 1], [], []>} : vector<8x128xbf16>, vector<128x128xbf16>, vector<8x128xf32> -> vector<8x128xf32>
    %c0_81 = arith.constant 0 : index
    %c0_82 = arith.constant 0 : index
    %159 = vector.load %arg16[%c0_81, %c0_82] : memref<1x128xf32, #tpu.memory_space<vmem>>, vector<1x128xf32>
    %160 = vector.broadcast %159 : vector<1x128xf32> to vector<8x128xf32>
    %161 = arith.addf %158, %160 : vector<8x128xf32>
    %cst_83 = arith.constant 0.000000e+00 : f32
    %162 = vector.broadcast %cst_83 : f32 to vector<8x128xf32>
    %163 = arith.maximumf %161, %162 : vector<8x128xf32>
    %c0_84 = arith.constant 0 : index
    %c0_85 = arith.constant 0 : index
    %164 = vector.load %arg17[%c0_84, %c0_85] : memref<1x128xf32, #tpu.memory_space<vmem>>, vector<1x128xf32>
    %165 = vector.broadcast %164 : vector<1x128xf32> to vector<8x128xf32>
    %166 = arith.mulf %163, %165 : vector<8x128xf32>
    %cst_86 = arith.constant dense<0.000000e+00> : vector<8xf32>
    %167 = vector.multi_reduction <add>, %166, %cst_86 [1] : vector<8x128xf32> to vector<8xf32>
    %168 = vector.shape_cast %167 : vector<8xf32> to vector<8x1xf32>
    %c0_87 = arith.constant 0 : index
    %c0_88 = arith.constant 0 : index
    %169 = vector.load %arg18[%c0_87, %c0_88] : memref<1x1xf32, #tpu.memory_space<vmem>>, vector<1x1xf32>
    %170 = vector.broadcast %169 : vector<1x1xf32> to vector<8x1xf32>
    %171 = arith.addf %168, %170 : vector<8x1xf32>
    %172 = vector.shape_cast %171 : vector<8x1xf32> to vector<8x1xf32>
    %173 = vector.broadcast %172 : vector<8x1xf32> to vector<8x128xf32>
    %c0_89 = arith.constant 0 : index
    %c0_90 = arith.constant 0 : index
    %174 = vector.load %arg19[%c0_89, %c0_90] : memref<8x128xf32, #tpu.memory_space<vmem>>, vector<8x128xf32>
    tpu.vector_store %arg19[%c0_89, %c0_90], %173 {strides = array<i32>} : memref<8x128xf32, #tpu.memory_space<vmem>>, vector<8x128xf32>,
    return
  }
  func.func @transform_0(%arg0: i32) -> (i32, i32, i32) {
    %c0_i32 = arith.constant 0 : i32
    %c0_i32_0 = arith.constant 0 : i32
    %c0_i32_1 = arith.constant 0 : i32
    return %arg0, %c0_i32, %c0_i32_0 : i32, i32, i32
  }
  func.func @transform_1(%arg0: i32) -> (i32, i32, i32) {
    %c0_i32 = arith.constant 0 : i32
    %c0_i32_0 = arith.constant 0 : i32
    %c0_i32_1 = arith.constant 0 : i32
    return %arg0, %c0_i32, %c0_i32_0 : i32, i32, i32
  }
  func.func @transform_2(%arg0: i32) -> (i32, i32) {
    %c0_i32 = arith.constant 0 : i32
    %c0_i32_0 = arith.constant 0 : i32
    %c0_i32_1 = arith.constant 0 : i32
    return %c0_i32, %c0_i32_0 : i32, i32
  }
  func.func @transform_3(%arg0: i32) -> (i32, i32) {
    %c0_i32 = arith.constant 0 : i32
    %c0_i32_0 = arith.constant 0 : i32
    %c0_i32_1 = arith.constant 0 : i32
    return %c0_i32, %c0_i32_0 : i32, i32
  }
  func.func @transform_4(%arg0: i32) -> (i32, i32) {
    %c0_i32 = arith.constant 0 : i32
    %c0_i32_0 = arith.constant 0 : i32
    %c0_i32_1 = arith.constant 0 : i32
    return %c0_i32, %c0_i32_0 : i32, i32
  }
  func.func @transform_5(%arg0: i32) -> (i32, i32) {
    %c0_i32 = arith.constant 0 : i32
    %c0_i32_0 = arith.constant 0 : i32
    %c0_i32_1 = arith.constant 0 : i32
    return %c0_i32, %c0_i32_0 : i32, i32
  }
  func.func @transform_6(%arg0: i32) -> (i32, i32, i32) {
    %c0_i32 = arith.constant 0 : i32
    %c0_i32_0 = arith.constant 0 : i32
    %c0_i32_1 = arith.constant 0 : i32
    %c0_i32_2 = arith.constant 0 : i32
    return %c0_i32, %c0_i32_0, %c0_i32_1 : i32, i32, i32
  }
  func.func @transform_7(%arg0: i32) -> (i32, i32, i32) {
    %c0_i32 = arith.constant 0 : i32
    %c0_i32_0 = arith.constant 0 : i32
    %c0_i32_1 = arith.constant 0 : i32
    %c0_i32_2 = arith.constant 0 : i32
    return %c0_i32, %c0_i32_0, %c0_i32_1 : i32, i32, i32
  }
  func.func @transform_8(%arg0: i32) -> (i32, i32, i32) {
    %c0_i32 = arith.constant 0 : i32
    %c0_i32_0 = arith.constant 0 : i32
    %c0_i32_1 = arith.constant 0 : i32
    %c0_i32_2 = arith.constant 0 : i32
    return %c0_i32, %c0_i32_0, %c0_i32_1 : i32, i32, i32
  }
  func.func @transform_9(%arg0: i32) -> (i32, i32, i32) {
    %c0_i32 = arith.constant 0 : i32
    %c0_i32_0 = arith.constant 0 : i32
    %c0_i32_1 = arith.constant 0 : i32
    %c0_i32_2 = arith.constant 0 : i32
    return %c0_i32, %c0_i32_0, %c0_i32_1 : i32, i32, i32
  }
  func.func @transform_10(%arg0: i32) -> (i32, i32, i32) {
    %c0_i32 = arith.constant 0 : i32
    %c0_i32_0 = arith.constant 0 : i32
    %c0_i32_1 = arith.constant 0 : i32
    %c0_i32_2 = arith.constant 0 : i32
    return %c0_i32, %c0_i32_0, %c0_i32_1 : i32, i32, i32
  }
  func.func @transform_11(%arg0: i32) -> (i32, i32, i32) {
    %c0_i32 = arith.constant 0 : i32
    %c0_i32_0 = arith.constant 0 : i32
    %c0_i32_1 = arith.constant 0 : i32
    %c0_i32_2 = arith.constant 0 : i32
    return %c0_i32, %c0_i32_0, %c0_i32_1 : i32, i32, i32
  }
  func.func @transform_12(%arg0: i32) -> (i32, i32) {
    %c0_i32 = arith.constant 0 : i32
    %c0_i32_0 = arith.constant 0 : i32
    %c0_i32_1 = arith.constant 0 : i32
    return %c0_i32, %c0_i32_0 : i32, i32
  }
  func.func @transform_13(%arg0: i32) -> (i32, i32) {
    %c0_i32 = arith.constant 0 : i32
    %c0_i32_0 = arith.constant 0 : i32
    %c0_i32_1 = arith.constant 0 : i32
    return %c0_i32, %c0_i32_0 : i32, i32
  }
  func.func @transform_14(%arg0: i32) -> (i32, i32) {
    %c0_i32 = arith.constant 0 : i32
    %c0_i32_0 = arith.constant 0 : i32
    %c0_i32_1 = arith.constant 0 : i32
    return %c0_i32, %c0_i32_0 : i32, i32
  }
  func.func @transform_15(%arg0: i32) -> (i32, i32) {
    %c0_i32 = arith.constant 0 : i32
    %c0_i32_0 = arith.constant 0 : i32
    %c0_i32_1 = arith.constant 0 : i32
    return %c0_i32, %c0_i32_0 : i32, i32
  }
  func.func @transform_16(%arg0: i32) -> (i32, i32) {
    %c0_i32 = arith.constant 0 : i32
    %c0_i32_0 = arith.constant 0 : i32
    %c0_i32_1 = arith.constant 0 : i32
    return %c0_i32, %c0_i32_0 : i32, i32
  }
  func.func @transform_17(%arg0: i32) -> (i32, i32) {
    %c0_i32 = arith.constant 0 : i32
    %c0_i32_0 = arith.constant 0 : i32
    %c0_i32_1 = arith.constant 0 : i32
    return %c0_i32, %c0_i32_0 : i32, i32
  }
  func.func @transform_18(%arg0: i32) -> (i32, i32) {
    %c0_i32 = arith.constant 0 : i32
    %c0_i32_0 = arith.constant 0 : i32
    return %arg0, %c0_i32 : i32, i32
  }
}

</mosaic_0001>

<bundles_post_ra>
// kernel: tpu_custom_call.1
= control target key start
LH: loop header
LB: loop body
LE: loop exit
PB: predicated region body
PF: predicated region fallthrough
CT: control target
= control target key end

     0   :  { %s7605_s0 = inlined_call_operand.hbm [shape: bf16[16,16,128], index: 0, kind: input, shape index: {}]   ;;  %s7606_s1 = inlined_call_operand.hbm [shape: bf16[16,64,128], index: 1, kind: input, shape index: {}]   ;;  %s7607_s2 = inlined_call_operand.vmem [shape: f32[1,128], index: 2, kind: input, shape index: {}]   ;;  %s7608_s3 = inlined_call_operand.vmem [shape: f32[4,128], index: 3, kind: input, shape index: {}]   ;;  %s7609_s4 = inlined_call_operand.hbm [shape: bf16[128,128], index: 4, kind: input, shape index: {}]   ;;  %s7610_s5 = inlined_call_operand.vmem [shape: f32[1,128], index: 5, kind: input, shape index: {}]   ;;  %s7611_s6 = inlined_call_operand.hbm [shape: bf16[2,128,256], index: 6, kind: input, shape index: {}]   ;;  %s7612_s7 = inlined_call_operand.vmem [shape: f32[2,1,256], index: 7, kind: input, shape index: {}]   ;;  %s7613_s8 = inlined_call_operand.hbm [shape: bf16[2,128,128], index: 8, kind: input, shape index: {}]   ;;  %s7614_s9 = inlined_call_operand.vmem [shape: f32[2,1,128], index: 9, kind: input, shape index: {}]   ;;  %s7615_s10 = inlined_call_operand.vmem [shape: f32[2,1,128], index: 10, kind: input, shape index: {}]   ;;  %s7616_s11 = inlined_call_operand.vmem [shape: f32[2,1,128], index: 11, kind: input, shape index: {}]   ;;  %s7617_s12 = inlined_call_operand.hbm [shape: bf16[128,128], index: 12, kind: input, shape index: {}]   ;;  %s7618_s13 = inlined_call_operand.vmem [shape: f32[1,128], index: 13, kind: input, shape index: {}]   ;;  %s7619_s14 = inlined_call_operand.hbm [shape: bf16[128,128], index: 14, kind: input, shape index: {}]   ;;  %s7620_s15 = inlined_call_operand.vmem [shape: f32[1,128], index: 15, kind: input, shape index: {}]   ;;  %s7621_s16 = inlined_call_operand.vmem [shape: f32[1,128], index: 16, kind: input, shape index: {}]   ;;  %s7622_s17 = inlined_call_operand.<no memory space> [shape: f32[1,1], index: 17, kind: input, shape index: {}]   ;;  %s7623_s18 = inlined_call_operand.hbm [shape: f32[16,128], index: 18, kind: output, shape index: {}]  }
   0x1   :  { %7680 = sst [smem:[#allocation65_spill]] %s7605_s0  ;;  %v23_v0 = vstv %s7622_s17 }
   0x2   :  { %7681 = sst [smem:[#allocation66_spill]] %s7606_s1  ;;  %24 = vst [vmem:[#allocation2] sm:$0x1] %v23_v0 }
   0x3   :  { %7682 = sst [smem:[#allocation67_spill]] %s7607_s2 }
   0x4   :  { %7683 = sst [smem:[#allocation68_spill]] %s7609_s4 }
   0x5   :  { %7684 = sst [smem:[#allocation69_spill]] %s7610_s5 }
   0x6   :  { %7685 = sst [smem:[#allocation70_spill]] %s7611_s6 }
   0x7   :  { %7686 = sst [smem:[#allocation71_spill]] %s7613_s8 }
   0x8   :  { %7687 = sst [smem:[#allocation72_spill]] %s7616_s11 }
   0x9   :  { %7688 = sst [smem:[#allocation73_spill]] %s7617_s12 }
   0xa   :  { %7689 = sst [smem:[#allocation74_spill]] %s7618_s13 }
   0xb   :  { %7690 = sst [smem:[#allocation75_spill]] %s7619_s14 }
   0xc   :  { %7691 = sst [smem:[#allocation76_spill]] %s7620_s15 }
   0xd   :  { %7692 = sst [smem:[#allocation77_spill]] %s7621_s16 }
   0xe   :  { %7693 = sst [smem:[#allocation78_spill]] %s7623_s18 }
   0xf   :  { %25 = vsyncpa [#allocation4], 0 }
  0x10   :  { %27 = vsyncpa [#allocation4 + $0x1], 0 }
  0x11   :  { %28 = vsyncpa [#allocation7], 0 }
  0x12   :  { %30 = vsyncpa [#allocation7 + $0x1], 0 }
  0x13   :  { %31 = vsyncpa [#allocation10], 0 }
  0x14   :  { %32 = vsyncpa [#allocation13], 0 }
  0x15   :  { %33 = vsyncpa [#allocation5], 0 }
  0x16   :  { %35 = vsyncpa [#allocation5 + $0x1], 0  ;;  %s5969_s29 = smov 0   ;;  %s5971_s30 = smov 0  }
  0x17   :  { %s5973_s0 = smov 0   ;;  %s5975_s19 = smov 0  }
  0x18 LB: > { %7694 = sst [smem:[#allocation22_spill]] %s5849_s0  ;;  %s5855_s17 = smov [#allocation8]   ;;  %s5853_s19 = sphi %s5975_s19, %s7872_s19   ;;  %s5849_s0 = sphi %s5973_s0, %s7869_s0   ;;  %s5845_s30 = sphi %s5971_s30, %s7871_s30   ;;  %s5841_s29 = sphi %s5969_s29, %s7870_s29  }
  0x19   : > { %s478_s1 = sshll.u32 %s5855_s17, 4  ;;  %s5990_s20 = sadd.s32 4294967295, %s5853_s19   ;;  %s5995_s1 = int_to_ptr.vmem [resolvable:$true] %s478_s1 }
  0x1a   : > { %p4539_p0 = scmp.ge.s32.totalorder %s5853_s19, 1  ;;  %p7630_p1 = scmp.eq.s32.totalorder %s5990_s20, 0 }
  0x1b   : > { %p460_p2 = scmp.lt.s32.totalorder %s5853_s19, 3  ;;  %s5856_s22 = smov [#allocation9]  }
  0x1c   : > { %s494_s2 = sshll.u32 %s5856_s22, 4  ;;  %s5857_s24 = smov [#allocation12]   ;;  %s6010_s2 = int_to_ptr.vmem [resolvable:$true] %s494_s2 }
  0x1d   : > { %p5997_p3 = pnand %p4539_p0, %p460_p2  ;;  %s6012_s25 = sshll.u32 %s5857_s24, 4  ;;  %s533_s25 = int_to_ptr.vmem [resolvable:$true] %s6012_s25 }
  0x1e   : > { %s7697_s4 = sld [smem:[#allocation68_spill]] }
  0x1f   : > { %s7695_s21 = scalar_select %p5997_p3, 1, 0 }
  0x20   : > { %p5286_p5 = pneg %p5997_p3 }
  0x22   : > { %p6006_p6 = pnand %p5286_p5, %p7630_p1 }
  0x24   : > { %s5571_s28 = scalar_lea.hbm %s7697_s4, 1024  ;;  %p6022_p8 = pneg %p6006_p6 }
  0x25   : > { %p5572_p7 = scmp.ne.s32.totalorder %s7697_s4, %s5571_s28  ;;  %p5578_p11 = scmp.lt.u32.totalorder %s5571_s28, %s7697_s4 }
  0x27   : > { %p5574_p9 = pnand %p6022_p8, %p5572_p7 }
  0x29   : > { %p5575_p10 = pneg %p5574_p9 }
  0x2b   : > { %p5580_p12 = pnand %p5578_p11, %p5575_p10 }
  0x2d   : > { %5583 = shalt.err (!%p5580_p12)
}
  0x2e   : > { %s5584_s18 = scalar_lea.vmem %s5995_s1, 1024  ;;  %p5592_p5 = scmp.lt.s32.totalorder %s5995_s1, %s5995_s1 }
  0x2f   : > { %p5585_p13 = scmp.ne.s32.totalorder %s5995_s1, %s5584_s18  ;;  %p5593_p4 = scmp.lt.s32.totalorder %s5584_s18, %s5584_s18 }
  0x31   : > { %p5587_p0 = pnand %p5585_p13, %p6022_p8  ;;  %p5594_p7 = por %p5593_p4, %p5592_p5 }
  0x33   : > { %p5588_p2 = pneg %p5587_p0 }
  0x35   : > { %p5595_p9 = pnand %p5594_p7, %p5588_p2 }
  0x37   : > { %5598 = shalt.err (!%p5595_p9)
}
  0x38   : > { %s7628_s26 = smov 64   ;;  %s7632_s16 = smov 4  }
  0x39   : > { %5289 = dma.hbm_to_vmem [thread:$0]  (!%p6006_p6), %s7697_s4, 1024, %s5995_s1, [#allocation7], %s7628_s26, %s7628_s26, %s7632_s16  }
  0x3a   : > { %s7699_s6 = sld [smem:[#allocation70_spill]] }
  0x40   : > { %s5599_s18 = scalar_lea.hbm %s7699_s6, 4096 }
  0x41   : > { %p5600_p4 = scmp.ne.s32.totalorder %s7699_s6, %s5599_s18  ;;  %p5606_p12 = scmp.lt.u32.totalorder %s5599_s18, %s7699_s6 }
  0x43   : > { %p5602_p10 = pnand %p5600_p4, %p6022_p8 }
  0x45   : > { %p5603_p11 = pneg %p5602_p10 }
  0x47   : > { %p5608_p13 = pnand %p5606_p12, %p5603_p11 }
  0x49   : > { %5611 = shalt.err (!%p5608_p13)
}
  0x4a   : > { %s5612_s1 = scalar_lea.vmem %s6010_s2, 4096  ;;  %p5620_p7 = scmp.lt.s32.totalorder %s6010_s2, %s6010_s2 }
  0x4b   : > { %p5613_p0 = scmp.ne.s32.totalorder %s6010_s2, %s5612_s1  ;;  %p5621_p9 = scmp.lt.s32.totalorder %s5612_s1, %s5612_s1 }
  0x4d   : > { %p5615_p2 = pnand %p5613_p0, %p6022_p8  ;;  %p5622_p4 = por %p5621_p9, %p5620_p7 }
  0x4f   : > { %p5616_p5 = pneg %p5615_p2 }
  0x51   : > { %p5623_p10 = pnand %p5622_p4, %p5616_p5 }
  0x53   : > { %5626 = shalt.err (!%p5623_p10)
}
  0x54   : > { %s5860_s13 = smov 128   ;;  %s5861_s5 = smov 8  }
  0x55   : > { %5292 = dma.hbm_to_vmem [thread:$0]  (!%p6006_p6), %s7699_s6, 4096, %s6010_s2, [#allocation10], %s5860_s13, %s5860_s13, %s5861_s5  }
  0x56   : > { %s7700_s12 = sld [smem:[#allocation73_spill]] }
  0x5c   : > { %s5627_s17 = scalar_lea.hbm %s7700_s12, 1024 }
  0x5d   : > { %p5628_p11 = scmp.ne.s32.totalorder %s7700_s12, %s5627_s17  ;;  %p5634_p0 = scmp.lt.u32.totalorder %s5627_s17, %s7700_s12 }
  0x5f   : > { %p5630_p12 = pnand %p5628_p11, %p6022_p8 }
  0x61   : > { %p5631_p13 = pneg %p5630_p12 }
  0x63   : > { %p5636_p2 = pnand %p5634_p0, %p5631_p13 }
  0x65   : > { %5639 = shalt.err (!%p5636_p2)
}
  0x66   : > { %s5640_s11 = scalar_lea.vmem %s533_s25, 1024  ;;  %p5648_p4 = scmp.lt.s32.totalorder %s533_s25, %s533_s25 }
  0x67   : > { %p5641_p5 = scmp.ne.s32.totalorder %s533_s25, %s5640_s11  ;;  %p5649_p10 = scmp.lt.s32.totalorder %s5640_s11, %s5640_s11 }
  0x69   : > { %p5643_p7 = pnand %p5641_p5, %p6022_p8  ;;  %p5650_p1 = por %p5649_p10, %p5648_p4 }
  0x6b   : > { %p5644_p9 = pneg %p5643_p7 }
  0x6d   : > { %p5651_p3 = pnand %p5650_p1, %p5644_p9 }
  0x6f   : > { %5654 = shalt.err (!%p5651_p3)
}
  0x70   : > { %s7701_s2 = smov 64   ;;  %s5862_s5 = smov [#allocation11]  }
  0x71   : > { %5298 = dma.hbm_to_vmem [thread:$0]  (!%p6006_p6), %s7700_s12, 1024, %s533_s25, [#allocation13], %s7701_s2, %s7701_s2, %s7632_s16  }
  0x72   : > { %s510_s15 = sshll.u32 %s5862_s5, 4  ;;  %s5863_s27 = smov [#allocation14]   ;;  %s511_s15 = int_to_ptr.vmem [resolvable:$true] %s510_s15 }
  0x73   : > { %s548_s28 = sshll.u32 %s5863_s27, 4  ;;  %s7702_s8 = sld [smem:[#allocation71_spill]]  ;;  %s549_s28 = int_to_ptr.vmem [resolvable:$true] %s548_s28 }
  0x79   : > { %s5655_s18 = scalar_lea.hbm %s7702_s8, 2048 }
  0x7a   : > { %p5656_p1 = scmp.ne.s32.totalorder %s7702_s8, %s5655_s18  ;;  %p5662_p12 = scmp.lt.u32.totalorder %s5655_s18, %s7702_s8 }
  0x7c   : > { %p5658_p3 = pnand %p5656_p1, %p6022_p8 }
  0x7e   : > { %p5659_p11 = pneg %p5658_p3 }
  0x80   : > { %p5664_p13 = pnand %p5662_p12, %p5659_p11 }
  0x82   : > { %5667 = shalt.err (!%p5664_p13)
}
  0x83   : > { %s5668_s25 = scalar_lea.vmem %s511_s15, 2048  ;;  %p5676_p7 = scmp.lt.s32.totalorder %s511_s15, %s511_s15 }
  0x84   : > { %p5669_p0 = scmp.ne.s32.totalorder %s511_s15, %s5668_s25  ;;  %p5677_p9 = scmp.lt.s32.totalorder %s5668_s25, %s5668_s25 }
  0x86   : > { %p5671_p2 = pnand %p5669_p0, %p6022_p8  ;;  %p5678_p4 = por %p5677_p9, %p5676_p7 }
  0x88   : > { %p5672_p5 = pneg %p5671_p2 }
  0x8a   : > { %p5679_p10 = pnand %p5678_p4, %p5672_p5 }
  0x8c   : > { %5682 = shalt.err (!%p5679_p10)
}
  0x8d   : > { %5295 = dma.hbm_to_vmem [thread:$0]  (!%p6006_p6), %s7702_s8, 2048, %s511_s15, [#allocation10], %s7701_s2, %s7701_s2, %s7632_s16  }
  0x8e   : > { %s7703_s14 = sld [smem:[#allocation75_spill]] }
  0x94   : > { %s5683_s17 = scalar_lea.hbm %s7703_s14, 1024 }
  0x95   : > { %p5684_p1 = scmp.ne.s32.totalorder %s7703_s14, %s5683_s17  ;;  %p5690_p12 = scmp.lt.u32.totalorder %s5683_s17, %s7703_s14 }
  0x97   : > { %p5686_p3 = pnand %p5684_p1, %p6022_p8 }
  0x99   : > { %p5687_p11 = pneg %p5686_p3 }
  0x9b   : > { %p5692_p13 = pnand %p5690_p12, %p5687_p11 }
  0x9d   : > { %5695 = shalt.err (!%p5692_p13)
}
  0x9e   : > { %s5696_s26 = scalar_lea.vmem %s549_s28, 1024  ;;  %p5704_p7 = scmp.lt.s32.totalorder %s549_s28, %s549_s28 }
  0x9f   : > { %p5697_p0 = scmp.ne.s32.totalorder %s549_s28, %s5696_s26  ;;  %p5705_p9 = scmp.lt.s32.totalorder %s5696_s26, %s5696_s26 }
  0xa1   : > { %p5699_p2 = pnand %p5697_p0, %p6022_p8  ;;  %p5706_p4 = por %p5705_p9, %p5704_p7 }
  0xa3   : > { %p5700_p5 = pneg %p5699_p2 }
  0xa5   : > { %p5707_p10 = pnand %p5706_p4, %p5700_p5 }
  0xa7   : > { %5710 = shalt.err (!%p5707_p10)
}
  0xa8   : > { %5301 = dma.hbm_to_vmem [thread:$0]  (!%p6006_p6), %s7703_s14, 1024, %s549_s28, [#allocation13], %s7701_s2, %s7701_s2, %s7632_s16  }
  0xa9   : > { %s4538_s23 = sadd.s32 4294967294, %s5853_s19   ;;  %s6135_s22 = sadd.s32 1, %s5853_s19  }
  0xaa   : > { %s48_s4 = sadd.s32 1, %s5849_s0  ;;  %s45_s13 = ssub.s32 %s5853_s19, %s6135_s22 }
  0xab   : > { %p55_p8 = scmp.ne.s32.totalorder %s5849_s0, %s5845_s30  ;;  %p46_p1 = scmp.eq.s32.totalorder %s45_s13, 0 }
  0xac   : > { %p56_p3 = scmp.eq.s32.totalorder %s5853_s19, 0  ;;  %p61_p11 = scmp.ne.s32.totalorder %s5845_s30, %s5841_s29 }
  0xad   : > { %p447_p12 = scmp.eq.s32.totalorder %s5990_s20, 1  ;;  %p7705_p0 = scmp.eq.s32.totalorder %s5990_s20, 0 }
  0xae   : > { %s6147_s5 = scalar_select %p46_p1, %s5849_s0, %s48_s4  }
  0xaf   : > { %p57_p13 = por %p56_p3, %p55_p8  ;;  %p6151_p2 = por %p7705_p0, %p61_p11 }
  0xb0   : > { %7704 = sst [smem:[#allocation23_spill]] %s6147_s5  ;;  %p6155_p6 = por %p447_p12, %p55_p8 }
  0xb1   : > { %p453_p5 = scmp.eq.s32.totalorder %s4538_s23, 1  ;;  %p5318_p7 = scmp.lt.s32.totalorder %s5853_s19, 2 }
  0xb2   : > { %s7707_s27 = scalar_select %p6155_p6, 1, 0 }
  0xb3   : > { %s6161_s17 = sand.u32 1, %s5849_s0   ;;  %p6163_p9 = por %p453_p5, %p61_p11 }
  0xb4   : > { %s4546_s18 = sshll.u32 %s6161_s17, 6  ;;  %s4712_s1 = sshll.u32 %s5853_s19, 10 }
  0xb5   : > { %s7708_s24 = scalar_select %p6163_p9, 1, 0 }
  0xb6   : > { %s7709_s15 = sld [smem:[#allocation65_spill]]  ;;  %s575_s23 = scalar_lea.vmem [#allocation3], %s4546_s18 }
  0xb7   : > { %s583_s4 = sshll.u32 %s575_s23, 4  ;;  %p6174_p4 = pnand %p5318_p7, %p57_p13  ;;  %s6178_s4 = int_to_ptr.vmem [resolvable:$true] %s583_s4 }
  0xb8   : > { %s572_s6 = scalar_lea.sflag [#allocation4], %s6161_s17 }
  0xb9   : > { %p5713_p8 = pneg %p6174_p4 }
  0xbc   : > { %s6172_s25 = scalar_lea.hbm %s7709_s15, %s4712_s1  ;;  %s5716_s11 = scalar_lea.hbm %s7709_s15, 2048 }
  0xbd   : > { %s5711_s8 = scalar_lea.hbm %s6172_s25, 1024  ;;  %p5717_p11 = scmp.lt.u32.totalorder %s6172_s25, %s7709_s15 }
  0xbe   : > { %p5712_p10 = scmp.ne.s32.totalorder %s6172_s25, %s5711_s8  ;;  %p5718_p12 = scmp.lt.u32.totalorder %s5716_s11, %s5711_s8 }
  0xbf   : > { %p5720_p0 = scmp.lt.u32.totalorder %s5711_s8, %s6172_s25 }
  0xc0   : > { %p5714_p1 = pnand %p5713_p8, %p5712_p10  ;;  %p5719_p13 = por %p5718_p12, %p5717_p11 }
  0xc2   : > { %p5715_p3 = pneg %p5714_p1  ;;  %p5721_p5 = por %p5720_p0, %p5719_p13 }
  0xc4   : > { %p5722_p7 = pnand %p5721_p5, %p5715_p3 }
  0xc6   : > { %5725 = shalt.err (!%p5722_p7)
}
  0xc7   : > { %s5726_s16 = scalar_lea.vmem %s6178_s4, 1024  ;;  %s5864_s18 = smov [#allocation3]  }
  0xc8   : > { %p5727_p10 = scmp.ne.s32.totalorder %s6178_s4, %s5726_s16  ;;  %s5731_s1 = sshll.u32 %s5864_s18, 4  ;;  %s5732_s1 = int_to_ptr.vmem [resolvable:$false] %s5731_s1 }
  0xc9   : > { %s5733_s26 = scalar_lea.vmem %s5732_s1, 2048  ;;  %p5734_p6 = scmp.lt.s32.totalorder %s6178_s4, %s5732_s1 }
  0xca   : > { %p5729_p1 = pnand %p5727_p10, %p5713_p8  ;;  %p5735_p11 = scmp.lt.s32.totalorder %s5733_s26, %s5726_s16 }
  0xcc   : > { %p5730_p9 = pneg %p5729_p1  ;;  %p5736_p12 = por %p5735_p11, %p5734_p6 }
  0xce   : > { %p5737_p13 = pnand %p5736_p12, %p5730_p9 }
  0xd0   : > { %5740 = shalt.err (!%p5737_p13)
}
  0xd1   : > { %s7711_s8 = smov 4   ;;  %s4550_s11 = sshll.u32 %s6161_s17, 8 }
  0xd2   : > { %5305 = dma.hbm_to_vmem [thread:$0]  (!%p6174_p4), %s6172_s25, 1024, %s6178_s4, %s572_s6, %s7701_s2, %s7701_s2, %s7711_s8  }
  0xd3   : > { %s4714_s23 = sshll.u32 %s5853_s19, 12  ;;  %s7712_s1 = sld [smem:[#allocation66_spill]] }
  0xd4   : > { %s597_s12 = scalar_lea.vmem [#allocation6], %s4550_s11  ;;  %s7713_s15 = sand.u32 1, %s5853_s19  }
  0xd5   : > { %s605_s14 = sshll.u32 %s597_s12, 4  ;;  %s6223_s5 = scalar_lea.sflag [#allocation7], %s7713_s15  ;;  %s6219_s14 = int_to_ptr.vmem [resolvable:$true] %s605_s14 }
  0xd9   : > { %s6217_s26 = scalar_lea.hbm %s7712_s1, %s4714_s23  ;;  %s5746_s25 = scalar_lea.hbm %s7712_s1, 8192 }
  0xda   : > { %s5741_s0 = scalar_lea.hbm %s6217_s26, 4096  ;;  %p5747_p0 = scmp.lt.u32.totalorder %s6217_s26, %s7712_s1 }
  0xdb   : > { %p5742_p6 = scmp.ne.s32.totalorder %s6217_s26, %s5741_s0  ;;  %p5748_p5 = scmp.lt.u32.totalorder %s5746_s25, %s5741_s0 }
  0xdc   : > { %p5750_p10 = scmp.lt.u32.totalorder %s5741_s0, %s6217_s26 }
  0xdd   : > { %p5744_p9 = pnand %p5742_p6, %p5713_p8  ;;  %p5749_p7 = por %p5748_p5, %p5747_p0 }
  0xdf   : > { %p5745_p3 = pneg %p5744_p9  ;;  %p5751_p1 = por %p5750_p10, %p5749_p7 }
  0xe1   : > { %p5752_p11 = pnand %p5751_p1, %p5745_p3 }
  0xe3   : > { %5755 = shalt.err (!%p5752_p11)
}
  0xe4   : > { %s5756_s12 = scalar_lea.vmem %s6219_s14, 4096  ;;  %s5865_s15 = smov [#allocation6]  }
  0xe5   : > { %p5757_p12 = scmp.ne.s32.totalorder %s6219_s14, %s5756_s12  ;;  %s5761_s11 = sshll.u32 %s5865_s15, 4  ;;  %s5762_s11 = int_to_ptr.vmem [resolvable:$false] %s5761_s11 }
  0xe6   : > { %s5763_s16 = scalar_lea.vmem %s5762_s11, 8192  ;;  %p5764_p9 = scmp.lt.s32.totalorder %s6219_s14, %s5762_s11 }
  0xe7   : > { %p5759_p13 = pnand %p5757_p12, %p5713_p8  ;;  %p5765_p0 = scmp.lt.s32.totalorder %s5763_s16, %s5756_s12 }
  0xe9   : > { %p5760_p6 = pneg %p5759_p13  ;;  %p5766_p5 = por %p5765_p0, %p5764_p9 }
  0xeb   : > { %p5767_p7 = pnand %p5766_p5, %p5760_p6 }
  0xed   : > { %5770 = shalt.err (!%p5767_p7)
}
  0xee   : > { %5308 = dma.hbm_to_vmem [thread:$0]  (!%p6174_p4), %s6217_s26, 4096, %s6219_s14, %s6223_s5, %s7701_s2, %s7701_s2, %s7711_s8  }
  0xef   : > { %p7714_p8 = scmp.ne.s32.totalorder %s7695_s21, 0 }
  0xf1   : > { %617 = sbr.rel (%p7714_p8) target bundleno = 4328 (0x10e8), region = 92 }
  0xf8   : > { %s6255_s0 = sand.u32 1, %s5845_s30  }
  0xf9   : > { %s4555_s18 = sshll.u32 %s6255_s0, 6  ;;  %s620_s6 = scalar_lea.sflag [#allocation4], %s6255_s0 }
  0xfa   : > { %s6259_s17 = scalar_lea.vmem [#allocation3], %s4555_s18 }
  0xfb   : > { %5816 = dma.done.wait (%p6151_p2), %s620_s6, 1024  }
  0xfc   : > { %5818 = vsyncadd (%p6151_p2), %s620_s6, 4294966272  ;;  %s628_s14 = sand.u32 1, %s5990_s20   ;;  %s4556_s21 = sshll.u32 %s6255_s0, 8 }
  0xfd   : > { %s629_s2 = scalar_lea.sflag [#allocation7], %s628_s14  ;;  %s6267_s5 = scalar_lea.vmem [#allocation6], %s4556_s21 }
  0xfe   : > { %5820 = dma.done.wait (%p6151_p2), %s629_s2, 4096  }
  0xff   : > { %5822 = vsyncadd (%p6151_p2), %s629_s2, 4294963200  ;;  %p7715_p4 = scmp.eq.s32.totalorder %s5990_s20, 0 }
 0x101   : > { %5824 = dma.done.wait (%p7715_p4), [#allocation7], 1024   ;;  %p7716_p3 = pmov %p7715_p4 }
 0x103   : > { %5826 = vsyncadd (%p7716_p3), [#allocation7], 4294966272  ;;  %p7717_p10 = pmov %p7716_p3 }
 0x104   : > { %p7718_p1 = pmov %p7716_p3 }
 0x105   : > { %5828 = dma.done.wait (%p7717_p10), [#allocation10], 6144  }
 0x106   : > { %5830 = vsyncadd (%p7718_p1), [#allocation10], 4294961152  ;;  %p7719_p11 = pmov %p7718_p1 }
 0x107   : > { %p7720_p12 = pmov %p7718_p1 }
 0x108   : > { %5832 = dma.done.wait (%p7719_p11), [#allocation13], 2048  }
 0x109   : > { %5834 = vsyncadd (%p7720_p12), [#allocation13], 4294965248  ;;  %v5866_v1 = vmov 0   ;;  %v5372_v2 = vld [vmem:[#allocation9 + $0x4] ss:$8 sps:$4 sm:$0xff]   ;;  %v5398_v20 = vld [vmem:[%s6259_s17 + $0x10] sm:$0xff]   ;;  %v754_v26 = vlaneseq }
 0x10a   : > { %924 = vmatprep.mubr.bf16.mxu0 %v5866_v1  ;;  %5370 = vset.pattern.permute.xlu1 %v5866_v1  ;;  %v5374_v3 = vld [vmem:[#allocation9] ss:$8 sps:$4 sm:$0xff]   ;;  %v5375_v4 = vld [vmem:[#allocation9 + $0x14] ss:$8 sps:$4 sm:$0xff]   ;;  %v5377_v5 = vld [vmem:[#allocation9 + $0x10] ss:$8 sps:$4 sm:$0xff]  }
 0x10b   : > { %5371 = vset.pattern.permute.xlu0 %v5866_v1  ;;  %892 = vmatprep.subr.bf16.mxu0 %v5372_v2  ;;  %v5378_v6 = vld [vmem:[#allocation9 + $0x24] ss:$8 sps:$4 sm:$0xff]   ;;  %v5380_v7 = vld [vmem:[#allocation9 + $0x20] ss:$8 sps:$4 sm:$0xff]   ;;  %v5381_v8 = vld [vmem:[#allocation9 + $0x34] ss:$8 sps:$4 sm:$0xff]  }
 0x10c   : > { %893 = vmatpush1.bf16.msra.mxu0 %v5374_v3  ;;  %v5383_v9 = vld [vmem:[#allocation9 + $0x30] ss:$8 sps:$4 sm:$0xff]   ;;  %v5384_v10 = vld [vmem:[#allocation9 + $0x44] ss:$8 sps:$4 sm:$0xff]   ;;  %v5386_v11 = vld [vmem:[#allocation9 + $0x40] ss:$8 sps:$4 sm:$0xff]  }
 0x10d   : > { %894 = vmatprep.subr.bf16.mxu0 %v5375_v4  ;;  %v5387_v12 = vld [vmem:[#allocation9 + $0x54] ss:$8 sps:$4 sm:$0xff]   ;;  %v5389_v13 = vld [vmem:[#allocation9 + $0x50] ss:$8 sps:$4 sm:$0xff]   ;;  %v5390_v14 = vld [vmem:[#allocation9 + $0x64] ss:$8 sps:$4 sm:$0xff]  }
 0x10e   : > { %v5392_v15 = vld [vmem:[#allocation9 + $0x60] ss:$8 sps:$4 sm:$0xff]   ;;  %v5393_v16 = vld [vmem:[#allocation9 + $0x74] ss:$8 sps:$4 sm:$0xff]   ;;  %v5395_v17 = vld [vmem:[#allocation9 + $0x70] ss:$8 sps:$4 sm:$0xff]  }
 0x10f   : > { %v5396_v18 = vld [vmem:[%s6259_s17] sm:$0xff]   ;;  %v5397_v19 = vld [vmem:[%s6259_s17 + $0x8] sm:$0xff]   ;;  %v5399_v21 = vld [vmem:[%s6259_s17 + $0x18] sm:$0xff]   ;;  %v755_v27 = vshrl.u32 %v754_v26, 7  ;;  %v7637_v31 = vmov 0.0   ;;  %vm5868_vm0 = vmmov 0  }
 0x110   : > { %895 = vmatpush1.bf16.msra.mxu0 %v5377_v5  ;;  %v5400_v22 = vld [vmem:[%s6259_s17 + $0x20] sm:$0xff]   ;;  %v5401_v23 = vld [vmem:[%s6259_s17 + $0x28] sm:$0xff]   ;;  %v5402_v24 = vld [vmem:[%s6259_s17 + $0x30] sm:$0xff]   ;;  %4872 = vmatprep.subr.bf16.mxu1 %v7637_v31  ;;  %v5869_v32 = vmov 1966171168   ;;  %s7721_s25 = sld [smem:[#allocation67_spill]] }
 0x111   : > { %896 = vmatprep.subr.bf16.mxu0 %v5378_v6  ;;  %v5403_v25 = vld [vmem:[%s6259_s17 + $0x38] sm:$0xff]   ;;  %v4616_v28 = vld [vmem:[%s7612_s7 + $0x2] sm:$0x3]  ;;  %v760_v29 = vsub.s32 1, %v755_v27  ;;  %4874 = vmatprep.mubr.msk.bf16.mxu1 %vm5868_vm0, %v7637_v31  ;;  %v1023_v33 = vunpack.c.l.s4 %v5869_v32  ;;  %v6323_v38 = vsub.s32 0, %v755_v27  ;;  %vm1446_vm1 = vcmask 125952  }
 0x112   : > { %v752_v39 = vld [vmem:[%s7612_s7] sm:$0x3]  ;;  %vm1543_vm2 = vcmask 130048   ;;  %vm1896_vm3 = vcmask 1043456   ;;  %vm2000_vm4 = vcmask 1041409   ;;  %vm2002_vm5 = vcmask 1042434  }
 0x113   : > { %v6306_v30 = vrot.slane %v4616_v28, %v760_v29  ;;  %v1024_v34 = vunpack.c.0.s8 %v1023_v33  ;;  %v6330_v41 = vrot.slane %v752_v39, %v6323_v38  ;;  %v6332_v43 = vrot.slane %v752_v39, %v760_v29  ;;  %v6340_v51 = vld [vmem:[%s7608_s3] sm:$0xf]  ;;  %s7722_s28 = sld [smem:[#allocation72_spill]]  ;;  %s7744_s8 = sld [smem:[#allocation69_spill]] }
 0x114   : > { %897 = vmatpush1.bf16.msra.mxu0 %v5380_v7  ;;  %vm2004_vm6 = vcmask 1043459   ;;  %vm2006_vm7 = vcmask 1044484   ;;  %vm2008_vm8 = vcmask 1045509   ;;  %vm2010_vm9 = vcmask 1046534   ;;  %s7861_s21 = sld [smem:[#allocation74_spill]]  ;;  %s7862_s13 = sld [smem:[#allocation76_spill]] }
 0x115   : > { %898 = vmatprep.subr.bf16.mxu0 %v5381_v8  ;;  %v6314_v35 = vsub.s32 %v1024_v34, %v755_v27  ;;  %vm2012_vm10 = vcmask 1047559   ;;  %vm3453_vm11 = vcmask 519168   ;;  %vm3550_vm12 = vcmask 523264   ;;  %s4562_s4 = sshll.u32 %s6255_s0, 3  ;;  %s4708_s15 = sshll.u32 %s5990_s20, 7 }
 0x116   : > { %v6319_v36 = vld [vmem:[%s7721_s25] ss:$0 sm:$0xff]  ;;  %s7863_s25 = sld [smem:[#allocation77_spill]]  ;;  %s709_s23 = scalar_lea.vmem [#allocation15], %s4562_s4 }
 0x117   : > { %v1028_v37 = vrot.slane %v6319_v36, %v6314_v35  ;;  %s4398_s12 = sshll.u32 %s709_s23, 4  ;;  %s7864_s18 = sld [smem:[#allocation78_spill]]  ;;  %s7558_s12 = int_to_ptr.vmem [resolvable:$true] %s4398_s12 }
 0x118   : > { %899 = vmatpush1.bf16.msra.mxu0 %v5383_v9  ;;  %s4385_s17 = scalar_lea.sflag [#allocation5], %s6255_s0  ;;  %s5771_s14 = scalar_lea.vmem %s7558_s12, 128 }
 0x119   : > { %900 = vmatprep.subr.bf16.mxu0 %v5384_v10  ;;  %v1044_v40 = vrot.slane %v1028_v37, %v6314_v35  ;;  %v1036_v46 = vcombine.high %v1028_v37, %v1028_v37  ;;  %p5772_p2 = scmp.ne.s32.totalorder %s7558_s12, %s5771_s14  ;;  %p7865_p13 = scmp.ne.s32.totalorder %s7707_s27, 0 }
 0x11b   : > { %v1073_v47 = vrot.slane %v1044_v40, %v6323_v38  ;;  %v1058_v57 = vrot.slane %v1036_v46, %v6314_v35  ;;  %v1066_v7 = vcombine.high %v1044_v40, %v1044_v40  ;;  %p5773_p6 = pnand %p5772_p2, %p7865_p13 }
 0x11c   : > { %901 = vmatpush1.bf16.msra.mxu0 %v5386_v11 }
 0x11d   : > { %902 = vmatprep.subr.bf16.mxu0 %v5387_v12  ;;  %v1110_v56 = vmul.f32 %v1073_v47, %v6340_v51  ;;  %v1077_v63 = vrot.slane %v1058_v57, %v6323_v38  ;;  %s7563_s6 = scalar_lea.hbm %s7864_s18, %s4708_s15  ;;  %p5774_p9 = pneg %p5773_p6 }
 0x11f   : > { %v1118_v62 = vpack.c.bf16 %v1110_v56, %v1110_v56  ;;  %v1111_v8 = vmul.f32 %v1077_v63, %v6340_v51 }
 0x120   : > { %903 = vmatpush1.bf16.msra.mxu0 %v5389_v13 }
 0x121   : > { %904 = vmatprep.subr.bf16.mxu0 %v5390_v14  ;;  %v1119_v13 = vpack.c.bf16 %v1111_v8, %v1111_v8  ;;  %v1081_v14 = vrot.slane %v1066_v7, %v6323_v38 }
 0x124   : > { %905 = vmatpush1.bf16.msra.mxu0 %v5392_v15 }
 0x125   : > { %906 = vmatprep.subr.bf16.mxu0 %v5393_v16 }
 0x128   : > { %907 = vmatpush1.bf16.msra.mxu0 %v5395_v17 }
 0x129   : > { %4950 = vmatprep.subr.bf16.mxu0 %v7637_v31 }
 0x12b   : > { %925 = vmatmul.mubr.bf16.vlgmr.msra.gmra.mrb[0].mxu0 %v5396_v18 }
 0x12c   : > { %934 = vmatprep.mubr.bf16.mxu0 %v5866_v1 }
 0x133   : > { %935 = vmatmul.mubr.bf16.gmra.mrb[4].mxu0 %v5397_v19 }
 0x134   : > { %944 = vmatprep.mubr.bf16.mxu0 %v5866_v1 }
 0x13b   : > { %945 = vmatmul.mubr.bf16.gmra.mrb[8].mxu0 %v5398_v20  ;;  %v1021_v20 = vcombine.high %v6319_v36, %v6319_v36 }
 0x13c   : > { %954 = vmatprep.mubr.bf16.mxu0 %v5866_v1 }
 0x13d   : > { %v1035_v32 = vrot.slane %v1021_v20, %v6314_v35 }
 0x143   : > { %955 = vmatmul.mubr.bf16.gmra.mrb[12].mxu0 %v5399_v21 }
 0x144   : > { %964 = vmatprep.mubr.bf16.mxu0 %v5866_v1 }
 0x14b   : > { %965 = vmatmul.mubr.bf16.gmra.mrb[16].mxu0 %v5400_v22  ;;  %v1112_v22 = vmul.f32 %v1081_v14, %v6340_v51 }
 0x14c   : > { %974 = vmatprep.mubr.bf16.mxu0 %v5866_v1 }
 0x14d   : > { %v1120_v28 = vpack.c.bf16 %v1112_v22, %v1112_v22 }
 0x153   : > { %975 = vmatmul.mubr.bf16.gmra.mrb[20].mxu0 %v5401_v23  ;;  %v1068_v23 = vcombine.high %v1058_v57, %v1058_v57 }
 0x154   : > { %984 = vmatprep.mubr.bf16.mxu0 %v5866_v1 }
 0x155   : > { %v1085_v29 = vrot.slane %v1068_v23, %v6323_v38 }
 0x15b   : > { %985 = vmatmul.mubr.bf16.gmra.mrb[24].mxu0 %v5402_v24 }
 0x15c   : > { %994 = vmatprep.mubr.bf16.mxu0 %v5866_v1 }
 0x163   : > { %995 = vmatmul.mubr.bf16.gmra.mrb[28].mxu0 %v5403_v25 }
 0x164   : > { %4952 = vmatprep.mubr.msk.bf16.mxu0 %vm5868_vm0, %v7637_v31 }
 0x1fe   : > { %v926_v42 = vpop.f32.mrb[0].mxu0 }
 0x1ff   : > { %v928_v44 = vpop.f32.mrb[1].mxu0  ;;  %v927_v48 = vadd.f32 %v926_v42, %v6330_v41  ;;  %v1113_v42 = vmul.f32 %v1085_v29, %v6340_v51 }
 0x200   : > { %v930_v45 = vpop.f32.mrb[2].mxu0  ;;  %v6343_v52 = vadd.f32 %v928_v44, %v6332_v43  ;;  %v1051_v44 = vrot.slane %v1035_v32, %v6314_v35 }
 0x201   : > { %v931_v49 = vadd.f32 %v930_v45, %v6330_v41  ;;  %v932_v50 = vpop.f32.mrb[3].mxu0 }
 0x202   : > { %v6346_v53 = vadd.f32 %v932_v50, %v6332_v43  ;;  %v1089_v50 = vrot.slane %v1051_v44, %v6323_v38 }
 0x203   : > { %v1005_v54 = vpack.c.bf16 %v931_v49, %v927_v48  ;;  %v1121_v49 = vpack.c.bf16 %v1113_v42, %v1113_v42 }
 0x204   : > { %v1006_v55 = vpack.c.bf16 %v6346_v53, %v6343_v52  ;;  %v1114_v63 = vmul.f32 %v1089_v50, %v6340_v51 }
 0x205   : > { %4873 = vmatpush3.bf16.xpose.msra.mxu1 %v1005_v54  ;;  %v1037_v54 = vcombine.high %v1035_v32, %v1035_v32 }
 0x206   : > { %v936_v58 = vpop.f32.mrb[4].mxu0  ;;  %4878 = vmatprep.subr.bf16.mxu1 %v7637_v31  ;;  %v1122_v7 = vpack.c.bf16 %v1114_v63, %v1114_v63 }
 0x207   : > { %v938_v59 = vpop.f32.mrb[5].mxu0  ;;  %v937_v0 = vadd.f32 %v936_v58, %v6330_v41 }
 0x208   : > { %v6354_v60 = vadd.f32 %v938_v59, %v6332_v43  ;;  %v940_v61 = vpop.f32.mrb[6].mxu0 }
 0x209   : > { %v941_v2 = vadd.f32 %v940_v61, %v6330_v41  ;;  %v942_v3 = vpop.f32.mrb[7].mxu0 }
 0x20a   : > { %v6360_v4 = vadd.f32 %v942_v3, %v6332_v43 }
 0x20b   : > { %v1007_v5 = vpack.c.bf16 %v941_v2, %v937_v0  ;;  %v1065_v0 = vrot.slane %v1037_v54, %v6314_v35 }
 0x20c   : > { %v1008_v6 = vpack.c.bf16 %v6360_v4, %v6354_v60  ;;  %4875 = vmatmul.mubr.bf16.vlgmr.msra.gmra.mrb[0].mxu1 %v1118_v62 }
 0x20d   : > { %4879 = vmatpush3.bf16.xpose.msra.mxu1 %v1007_v5  ;;  %4880 = vmatprep.mubr.msk.bf16.mxu1 %vm5868_vm0, %v7637_v31  ;;  %v1093_v8 = vrot.slane %v1065_v0, %v6323_v38  ;;  %v1069_v42 = vcombine.high %v1065_v0, %v1065_v0 }
 0x20e   : > { %v946_v9 = vpop.f32.mrb[8].mxu0  ;;  %4884 = vmatprep.subr.bf16.mxu1 %v7637_v31 }
 0x20f   : > { %v948_v10 = vpop.f32.mrb[9].mxu0  ;;  %v947_v15 = vadd.f32 %v946_v9, %v6330_v41  ;;  %v1101_v50 = vrot.slane %v1069_v42, %v6323_v38 }
 0x210   : > { %v6369_v11 = vadd.f32 %v948_v10, %v6332_v43  ;;  %v950_v12 = vpop.f32.mrb[10].mxu0 }
 0x211   : > { %v951_v16 = vadd.f32 %v950_v12, %v6330_v41  ;;  %v952_v17 = vpop.f32.mrb[11].mxu0  ;;  %v1117_v0 = vmul.f32 %v1101_v50, %v6340_v51 }
 0x212   : > { %v6375_v18 = vadd.f32 %v952_v17, %v6332_v43  ;;  %v1115_v17 = vmul.f32 %v1093_v8, %v6340_v51 }
 0x213   : > { %v1009_v19 = vpack.c.bf16 %v951_v16, %v947_v15 }
 0x214   : > { %v1010_v21 = vpack.c.bf16 %v6375_v18, %v6369_v11  ;;  %4881 = vmatmul.mubr.bf16.vlgmr.msra.gmra.mrb[4].mxu1 %v1119_v13 }
 0x215   : > { %4885 = vmatpush3.bf16.xpose.msra.mxu1 %v1009_v19  ;;  %4886 = vmatprep.mubr.msk.bf16.mxu1 %vm5868_vm0, %v7637_v31  ;;  %v1067_v19 = vcombine.high %v1051_v44, %v1051_v44 }
 0x216   : > { %v956_v24 = vpop.f32.mrb[12].mxu0  ;;  %4890 = vmatprep.subr.bf16.mxu1 %v7637_v31 }
 0x217   : > { %v958_v25 = vpop.f32.mrb[13].mxu0  ;;  %v957_v33 = vadd.f32 %v956_v24, %v6330_v41 }
 0x218   : > { %v6386_v26 = vadd.f32 %v958_v25, %v6332_v43  ;;  %v960_v27 = vpop.f32.mrb[14].mxu0  ;;  %v1123_v25 = vpack.c.bf16 %v1115_v17, %v1115_v17 }
 0x219   : > { %v961_v34 = vadd.f32 %v960_v27, %v6330_v41  ;;  %v962_v36 = vpop.f32.mrb[15].mxu0  ;;  %v1097_v27 = vrot.slane %v1067_v19, %v6323_v38 }
 0x21a   : > { %v6393_v37 = vadd.f32 %v962_v36, %v6332_v43 }
 0x21b   : > { %v1011_v39 = vpack.c.bf16 %v961_v34, %v957_v33 }
 0x21c   : > { %v1012_v40 = vpack.c.bf16 %v6393_v37, %v6386_v26  ;;  %4887 = vmatmul.mubr.bf16.vlgmr.msra.gmra.mrb[8].mxu1 %v1120_v28 }
 0x21d   : > { %4891 = vmatpush3.bf16.xpose.msra.mxu1 %v1011_v39  ;;  %4892 = vmatprep.mubr.msk.bf16.mxu1 %vm5868_vm0, %v7637_v31  ;;  %v1116_v39 = vmul.f32 %v1097_v27, %v6340_v51 }
 0x21e   : > { %v966_v45 = vpop.f32.mrb[16].mxu0  ;;  %4896 = vmatprep.subr.bf16.mxu1 %v7637_v31 }
 0x21f   : > { %v968_v46 = vpop.f32.mrb[17].mxu0  ;;  %v967_v56 = vadd.f32 %v966_v45, %v6330_v41 }
 0x220   : > { %v6403_v47 = vadd.f32 %v968_v46, %v6332_v43  ;;  %v970_v48 = vpop.f32.mrb[18].mxu0 }
 0x221   : > { %v971_v57 = vadd.f32 %v970_v48, %v6330_v41  ;;  %v972_v58 = vpop.f32.mrb[19].mxu0 }
 0x222   : > { %v6409_v59 = vadd.f32 %v972_v58, %v6332_v43 }
 0x223   : > { %v1013_v61 = vpack.c.bf16 %v971_v57, %v967_v56 }
 0x224   : > { %v1014_v62 = vpack.c.bf16 %v6409_v59, %v6403_v47  ;;  %4893 = vmatmul.mubr.bf16.vlgmr.msra.gmra.mrb[12].mxu1 %v1121_v49  ;;  %v1124_v49 = vpack.c.bf16 %v1116_v39, %v1116_v39 }
 0x225   : > { %4897 = vmatpush3.bf16.xpose.msra.mxu1 %v1013_v61  ;;  %4898 = vmatprep.mubr.msk.bf16.mxu1 %vm5868_vm0, %v7637_v31 }
 0x226   : > { %v976_v2 = vpop.f32.mrb[20].mxu0  ;;  %4902 = vmatprep.subr.bf16.mxu1 %v7637_v31 }
 0x227   : > { %v978_v3 = vpop.f32.mrb[21].mxu0  ;;  %v977_v9 = vadd.f32 %v976_v2, %v6330_v41  ;;  %v1125_v2 = vpack.c.bf16 %v1117_v0, %v1117_v0 }
 0x228   : > { %v980_v5 = vpop.f32.mrb[22].mxu0  ;;  %v979_v13 = vadd.f32 %v978_v3, %v6332_v43 }
 0x229   : > { %v981_v10 = vadd.f32 %v980_v5, %v6330_v41  ;;  %v982_v12 = vpop.f32.mrb[23].mxu0 }
 0x22a   : > { %v983_v14 = vadd.f32 %v982_v12, %v6332_v43 }
 0x22b   : > { %v1015_v15 = vpack.c.bf16 %v981_v10, %v977_v9 }
 0x22c   : > { %v1016_v16 = vpack.c.bf16 %v983_v14, %v979_v13  ;;  %4899 = vmatmul.mubr.bf16.vlgmr.msra.gmra.mrb[16].mxu1 %v1122_v7 }
 0x22d   : > { %4903 = vmatpush3.bf16.xpose.msra.mxu1 %v1015_v15  ;;  %4904 = vmatprep.mubr.msk.bf16.mxu1 %vm5868_vm0, %v7637_v31 }
 0x22e   : > { %v986_v20 = vpop.f32.mrb[24].mxu0  ;;  %4951 = vmatpush3.bf16.msra.mxu0 %v1016_v16  ;;  %4908 = vmatprep.subr.bf16.mxu1 %v7637_v31 }
 0x22f   : > { %v988_v22 = vpop.f32.mrb[25].mxu0  ;;  %4962 = vmatprep.subr.bf16.mxu0 %v7637_v31  ;;  %v987_v28 = vadd.f32 %v986_v20, %v6330_v41 }
 0x230   : > { %v6429_v23 = vadd.f32 %v988_v22, %v6332_v43  ;;  %v990_v24 = vpop.f32.mrb[26].mxu0 }
 0x231   : > { %v991_v29 = vadd.f32 %v990_v24, %v6330_v41  ;;  %v992_v32 = vpop.f32.mrb[27].mxu0 }
 0x232   : > { %v6435_v33 = vadd.f32 %v992_v32, %v6332_v43 }
 0x233   : > { %v1017_v34 = vpack.c.bf16 %v991_v29, %v987_v28 }
 0x234   : > { %v1018_v36 = vpack.c.bf16 %v6435_v33, %v6429_v23  ;;  %4905 = vmatmul.mubr.bf16.vlgmr.msra.gmra.mrb[20].mxu1 %v1123_v25 }
 0x235   : > { %4909 = vmatpush3.bf16.xpose.msra.mxu1 %v1017_v34  ;;  %4910 = vmatprep.mubr.msk.bf16.mxu1 %vm5868_vm0, %v7637_v31 }
 0x236   : > { %v996_v44 = vpop.f32.mrb[28].mxu0  ;;  %4914 = vmatprep.subr.bf16.mxu1 %v7637_v31 }
 0x237   : > { %v998_v45 = vpop.f32.mrb[29].mxu0  ;;  %v997_v54 = vadd.f32 %v996_v44, %v6330_v41 }
 0x238   : > { %v6444_v46 = vadd.f32 %v998_v45, %v6332_v43  ;;  %v1000_v48 = vpop.f32.mrb[30].mxu0 }
 0x239   : > { %v1001_v56 = vadd.f32 %v1000_v48, %v6330_v41  ;;  %v1002_v57 = vpop.f32.mrb[31].mxu0 }
 0x23a   : > { %v6450_v58 = vadd.f32 %v1002_v57, %v6332_v43 }
 0x23b   : > { %v1019_v61 = vpack.c.bf16 %v1001_v56, %v997_v54 }
 0x23c   : > { %v1020_v63 = vpack.c.bf16 %v6450_v58, %v6444_v46  ;;  %4911 = vmatmul.mubr.bf16.vlgmr.msra.gmra.mrb[24].mxu1 %v1124_v49  ;;  %v5404_v58 = vld [vmem:[#allocation11] sm:$0xff]  }
 0x23d   : > { %4915 = vmatpush3.bf16.xpose.msra.mxu1 %v1019_v61  ;;  %4916 = vmatprep.mubr.msk.bf16.mxu1 %vm5868_vm0, %v7637_v31 }
 0x23e   : > { %4920 = vmatprep.subr.bf16.mxu1 %v7637_v31 }
 0x244   : > { %4917 = vmatmul.mubr.bf16.vlgmr.msra.gmra.mrb[28].mxu1 %v1125_v2 }
 0x245   : > { %4921 = vmatpush3.bf16.msra.mxu1 %v1006_v55  ;;  %4922 = vmatprep.mubr.msk.bf16.mxu1 %vm5868_vm0, %v7637_v31 }
 0x246   : > { %4926 = vmatprep.subr.bf16.mxu1 %v7637_v31 }
 0x2df   : > { %v1160_v41 = vpop.f32.mrb[0].mxu1 }
 0x2e0   : > { %v4876_v43 = vpop.f32.mrb[1].mxu1  ;;  %v1447_v3 = vsel %vm1446_vm1, %v1160_v41, -inf }
 0x2e1   : > { %1448 = vmax.xlane.f32.xlu0 %v1447_v3  ;;  %v1163_v5 = vpop.f32.mrb[2].mxu1 }
 0x2e2   : > { %v4877_v7 = vpop.f32.mrb[3].mxu1 }
 0x2e7   : > { %v1200_v8 = vpop.f32.mrb[4].mxu1 }
 0x2e8   : > { %v4882_v9 = vpop.f32.mrb[5].mxu1  ;;  %v1450_v10 = vsel %vm1446_vm1, %v1200_v8, -inf }
 0x2e9   : > { %1451 = vmax.xlane.f32.xlu0 %v1450_v10  ;;  %v1203_v52 = vpop.f32.mrb[6].mxu1 }
 0x2ea   : > { %v4883_v53 = vpop.f32.mrb[7].mxu1 }
 0x2ef   : > { %v1240_v55 = vpop.f32.mrb[8].mxu1 }
 0x2f0   : > { %v4888_v12 = vpop.f32.mrb[9].mxu1  ;;  %v1453_v13 = vsel %vm1446_vm1, %v1240_v55, -inf }
 0x2f1   : > { %1454 = vmax.xlane.f32.xlu1 %v1453_v13  ;;  %v1243_v14 = vpop.f32.mrb[10].mxu1 }
 0x2f2   : > { %v4889_v15 = vpop.f32.mrb[11].mxu1 }
 0x2f7   : > { %v1280_v16 = vpop.f32.mrb[12].mxu1 }
 0x2f8   : > { %v4894_v17 = vpop.f32.mrb[13].mxu1  ;;  %v1456_v19 = vsel %vm1446_vm1, %v1280_v16, -inf }
 0x2f9   : > { %1457 = vmax.xlane.f32.xlu1 %v1456_v19  ;;  %v1283_v20 = vpop.f32.mrb[14].mxu1 }
 0x2fa   : > { %v4895_v22 = vpop.f32.mrb[15].mxu1 }
 0x2ff   : > { %v1320_v24 = vpop.f32.mrb[16].mxu1 }
 0x300   : > { %v4900_v25 = vpop.f32.mrb[17].mxu1  ;;  %v1459_v27 = vsel %vm1446_vm1, %v1320_v24, -inf }
 0x301   : > { %1460 = vmax.xlane.f32.xlu0 %v1459_v27  ;;  %v1323_v28 = vpop.f32.mrb[18].mxu1 }
 0x302   : > { %v4901_v29 = vpop.f32.mrb[19].mxu1 }
 0x307   : > { %v1360_v32 = vpop.f32.mrb[20].mxu1 }
 0x308   : > { %v4906_v34 = vpop.f32.mrb[21].mxu1  ;;  %v1462_v39 = vsel %vm1446_vm1, %v1360_v32, -inf }
 0x309   : > { %1463 = vmax.xlane.f32.xlu1 %v1462_v39  ;;  %v1363_v42 = vpop.f32.mrb[22].mxu1 }
 0x30a   : > { %v4907_v44 = vpop.f32.mrb[23].mxu1 }
 0x30f   : > { %v1400_v45 = vpop.f32.mrb[24].mxu1 }
 0x310   : > { %v4912_v48 = vpop.f32.mrb[25].mxu1  ;;  %v1465_v49 = vsel %vm1446_vm1, %v1400_v45, -inf }
 0x311   : > { %1466 = vmax.xlane.f32.xlu0 %v1465_v49  ;;  %v1403_v50 = vpop.f32.mrb[26].mxu1 }
 0x312   : > { %v4913_v54 = vpop.f32.mrb[27].mxu1 }
 0x317   : > { %v1440_v56 = vpop.f32.mrb[28].mxu1 }
 0x318   : > { %v4918_v57 = vpop.f32.mrb[29].mxu1  ;;  %v1468_v61 = vsel %vm1446_vm1, %v1440_v56, -inf }
 0x319   : > { %1469 = vmax.xlane.f32.xlu1 %v1468_v61  ;;  %v1443_v0 = vpop.f32.mrb[30].mxu1 }
 0x31a   : > { %v4919_v2 = vpop.f32.mrb[31].mxu1 }
 0x36e   : > { %v1449_v43 = vpop.xlane.xlu0 %1448 }
 0x36f   : > { %v1471_v3 = vsub.f32 %v1160_v41, %v1449_v43 }
 0x371   : > { %v1479_v5 = vmul.f32 1.442695, %v1471_v3 }
 0x373   : > { %5500 = vpow2.f32 %v1479_v5 }
 0x376   : > { %v1452_v7 = vpop.xlane.xlu0 %1451 }
 0x377   : > { %v1472_v9 = vsub.f32 %v1200_v8, %v1452_v7 }
 0x379   : > { %v1481_v10 = vmul.f32 1.442695, %v1472_v9 }
 0x37b   : > { %5502 = vpow2.f32 %v1481_v10 }
 0x37d   : > { %v5501_v52 = vpop.eup %5500 }
 0x37e   : > { %v1455_v53 = vpop.xlane.xlu1 %1454  ;;  %v1495_v12 = vsel %vm1446_vm1, %v5501_v52, 0.0 }
 0x37f   : > { %v1473_v13 = vsub.f32 %v1240_v55, %v1455_v53  ;;  %1496 = vadd.xlane.f32.xlu0 %v1495_v12 }
 0x381   : > { %v1483_v14 = vmul.f32 1.442695, %v1473_v13 }
 0x383   : > { %5504 = vpow2.f32 %v1483_v14 }
 0x385   : > { %v5503_v15 = vpop.eup %5502 }
 0x386   : > { %v1458_v17 = vpop.xlane.xlu1 %1457  ;;  %v1498_v19 = vsel %vm1446_vm1, %v5503_v15, 0.0 }
 0x387   : > { %v1474_v20 = vsub.f32 %v1280_v16, %v1458_v17  ;;  %1499 = vadd.xlane.f32.xlu1 %v1498_v19 }
 0x389   : > { %v1485_v41 = vmul.f32 1.442695, %v1474_v20 }
 0x38b   : > { %5506 = vpow2.f32 %v1485_v41 }
 0x38d   : > { %v5505_v22 = vpop.eup %5504 }
 0x38e   : > { %v1461_v8 = vpop.xlane.xlu0 %1460  ;;  %v1501_v25 = vsel %vm1446_vm1, %v5505_v22, 0.0 }
 0x38f   : > { %v1475_v27 = vsub.f32 %v1320_v24, %v1461_v8  ;;  %1502 = vadd.xlane.f32.xlu0 %v1501_v25  ;;  %v5407_v8 = vld [vmem:[#allocation11 + $0x18] sm:$0xff]   ;;  %v5408_v25 = vld [vmem:[#allocation11 + $0x20] sm:$0xff]  }
 0x391   : > { %v1487_v28 = vmul.f32 1.442695, %v1475_v27  ;;  %v5409_v27 = vld [vmem:[#allocation11 + $0x28] sm:$0xff]  }
 0x393   : > { %5508 = vpow2.f32 %v1487_v28  ;;  %v5410_v28 = vld [vmem:[#allocation11 + $0x30] sm:$0xff]  }
 0x395   : > { %v5507_v55 = vpop.eup %5506 }
 0x396   : > { %v1464_v29 = vpop.xlane.xlu1 %1463  ;;  %v1504_v34 = vsel %vm1446_vm1, %v5507_v55, 0.0 }
 0x397   : > { %v1476_v39 = vsub.f32 %v1360_v32, %v1464_v29  ;;  %1505 = vadd.xlane.f32.xlu1 %v1504_v34 }
 0x399   : > { %v1489_v42 = vmul.f32 1.442695, %v1476_v39 }
 0x39b   : > { %5510 = vpow2.f32 %v1489_v42 }
 0x39d   : > { %v5509_v16 = vpop.eup %5508 }
 0x39e   : > { %v1467_v44 = vpop.xlane.xlu0 %1466  ;;  %v1507_v48 = vsel %vm1446_vm1, %v5509_v16, 0.0 }
 0x39f   : > { %v1477_v49 = vsub.f32 %v1400_v45, %v1467_v44  ;;  %1508 = vadd.xlane.f32.xlu0 %v1507_v48 }
 0x3a1   : > { %v1491_v50 = vmul.f32 1.442695, %v1477_v49 }
 0x3a3   : > { %5512 = vpow2.f32 %v1491_v50 }
 0x3a5   : > { %v6477_v24 = vpop.eup %5510 }
 0x3a6   : > { %v1470_v54 = vpop.xlane.xlu1 %1469  ;;  %v1510_v57 = vsel %vm1446_vm1, %v6477_v24, 0.0 }
 0x3a7   : > { %v1478_v61 = vsub.f32 %v1440_v56, %v1470_v54  ;;  %1511 = vadd.xlane.f32.xlu1 %v1510_v57 }
 0x3a9   : > { %v1493_v32 = vmul.f32 1.442695, %v1478_v61 }
 0x3ab   : > { %5514 = vpow2.f32 %v1493_v32 }
 0x3ad   : > { %v6481_v0 = vpop.eup %5512 }
 0x3ae   : > { %v1513_v2 = vsel %vm1446_vm1, %v6481_v0, 0.0 }
 0x3af   : > { %1514 = vadd.xlane.f32.xlu0 %v1513_v2 }
 0x3b5   : > { %v6485_v45 = vpop.eup %5514 }
 0x3b6   : > { %v1516_v43 = vsel %vm1446_vm1, %v6485_v45, 0.0 }
 0x3b7   : > { %1517 = vadd.xlane.f32.xlu1 %v1516_v43 }
 0x40c   : > { %v1497_v3 = vpop.xlane.xlu0 %1496 }
 0x40d   : > { %5516 = vrcp.f32 %v1497_v3 }
 0x414   : > { %v1500_v5 = vpop.xlane.xlu1 %1499 }
 0x415   : > { %5518 = vrcp.f32 %v1500_v5 }
 0x417   : > { %v5517_v56 = vpop.eup %5516 }
 0x418   : > { %v1527_v7 = vmul.f32 %v5517_v56, %v5501_v52 }
 0x41a   : > { %v1535_v9 = vpack.c.bf16 %v1527_v7, %v1527_v7 }
 0x41c   : > { %4923 = vmatmul.mubr.msk.bf16.vlgmr.msra.gmra.mrb[32].mxu1 %vm1543_vm2, %v1535_v9  ;;  %v1503_v10 = vpop.xlane.xlu0 %1502 }
 0x41d   : > { %4927 = vmatpush3.bf16.msra.mxu1 %v1008_v6  ;;  %5520 = vrcp.f32 %v1503_v10  ;;  %4928 = vmatprep.mubr.msk.bf16.mxu1 %vm5868_vm0, %v7637_v31 }
 0x41e   : > { %4932 = vmatprep.subr.bf16.mxu1 %v7637_v31 }
 0x41f   : > { %v5519_v53 = vpop.eup %5518 }
 0x420   : > { %v1528_v12 = vmul.f32 %v5519_v53, %v5503_v15 }
 0x422   : > { %v1536_v13 = vpack.c.bf16 %v1528_v12, %v1528_v12 }
 0x424   : > { %4929 = vmatmul.mubr.msk.bf16.vlgmr.msra.gmra.mrb[36].mxu1 %vm1543_vm2, %v1536_v13  ;;  %v1506_v52 = vpop.xlane.xlu1 %1505 }
 0x425   : > { %4933 = vmatpush3.bf16.msra.mxu1 %v1010_v21  ;;  %5522 = vrcp.f32 %v1506_v52  ;;  %4934 = vmatprep.mubr.msk.bf16.mxu1 %vm5868_vm0, %v7637_v31 }
 0x426   : > { %4938 = vmatprep.subr.bf16.mxu1 %v7637_v31 }
 0x427   : > { %v5521_v60 = vpop.eup %5520 }
 0x428   : > { %v1529_v4 = vmul.f32 %v5521_v60, %v5505_v22  ;;  %v5406_v22 = vld [vmem:[#allocation11 + $0x10] sm:$0xff]  }
 0x42a   : > { %v1537_v6 = vpack.c.bf16 %v1529_v4, %v1529_v4 }
 0x42c   : > { %v1509_v14 = vpop.xlane.xlu0 %1508  ;;  %4935 = vmatmul.mubr.msk.bf16.vlgmr.msra.gmra.mrb[40].mxu1 %vm1543_vm2, %v1537_v6 }
 0x42d   : > { %5524 = vrcp.f32 %v1509_v14  ;;  %4939 = vmatpush3.bf16.msra.mxu1 %v1012_v40  ;;  %4940 = vmatprep.mubr.msk.bf16.mxu1 %vm5868_vm0, %v7637_v31 }
 0x42e   : > { %4944 = vmatprep.subr.bf16.mxu1 %v7637_v31 }
 0x42f   : > { %v5523_v11 = vpop.eup %5522 }
 0x430   : > { %v1530_v18 = vmul.f32 %v5523_v11, %v5507_v55  ;;  %v5411_v55 = vld [vmem:[#allocation11 + $0x38] sm:$0xff]  }
 0x432   : > { %v1538_v21 = vpack.c.bf16 %v1530_v18, %v1530_v18 }
 0x434   : > { %4941 = vmatmul.mubr.msk.bf16.vlgmr.msra.gmra.mrb[44].mxu1 %vm1543_vm2, %v1538_v21  ;;  %v1512_v15 = vpop.xlane.xlu1 %1511 }
 0x435   : > { %4945 = vmatpush3.bf16.msra.mxu1 %v1014_v62  ;;  %5526 = vrcp.f32 %v1512_v15  ;;  %4946 = vmatprep.mubr.msk.bf16.mxu1 %vm5868_vm0, %v7637_v31 }
 0x436   : > { %4956 = vmatprep.subr.bf16.mxu1 %v7637_v31 }
 0x437   : > { %v5525_v26 = vpop.eup %5524 }
 0x438   : > { %v1531_v37 = vmul.f32 %v5525_v26, %v5509_v16 }
 0x43a   : > { %v1539_v40 = vpack.c.bf16 %v1531_v37, %v1531_v37 }
 0x43c   : > { %v1515_v17 = vpop.xlane.xlu0 %1514  ;;  %4947 = vmatmul.mubr.msk.bf16.vlgmr.msra.gmra.mrb[48].mxu1 %vm1543_vm2, %v1539_v40 }
 0x43d   : > { %5528 = vrcp.f32 %v1515_v17  ;;  %4957 = vmatpush3.bf16.msra.mxu1 %v1018_v36  ;;  %4958 = vmatprep.mubr.msk.bf16.mxu1 %vm5868_vm0, %v7637_v31 }
 0x43e   : > { %4968 = vmatprep.subr.bf16.mxu1 %v7637_v31 }
 0x43f   : > { %v5527_v47 = vpop.eup %5526 }
 0x440   : > { %v1532_v59 = vmul.f32 %v5527_v47, %v6477_v24 }
 0x442   : > { %v1540_v62 = vpack.c.bf16 %v1532_v59, %v1532_v59 }
 0x444   : > { %4953 = vmatmul.mubr.msk.bf16.vlgmr.msra.gmra.mrb[32].mxu0 %vm1543_vm2, %v1540_v62  ;;  %v1518_v19 = vpop.xlane.xlu1 %1517 }
 0x445   : > { %4963 = vmatpush3.bf16.msra.mxu0 %v1020_v63  ;;  %5530 = vrcp.f32 %v1518_v19  ;;  %4964 = vmatprep.mubr.msk.bf16.mxu0 %vm5868_vm0, %v7637_v31  ;;  %v5405_v63 = vld [vmem:[#allocation11 + $0x8] sm:$0xff]  }
 0x446   : > { %4988 = vmatprep.subr.bf16.mxu0 %v7637_v31 }
 0x447   : > { %v5529_v23 = vpop.eup %5528 }
 0x448   : > { %v1533_v33 = vmul.f32 %v5529_v23, %v6481_v0 }
 0x44a   : > { %v1541_v36 = vpack.c.bf16 %v1533_v33, %v1533_v33 }
 0x44c   : > { %4959 = vmatmul.mubr.msk.bf16.vlgmr.msra.gmra.mrb[52].mxu1 %vm1543_vm2, %v1541_v36 }
 0x44d   : > { %4984 = vmatprep.mubr.msk.bf16.mxu1 %vm5868_vm0, %v7637_v31  ;;  %4969 = vmatpush3.bf16.msra.mxu1 %v5404_v58 }
 0x44e   : > { %4970 = vmatprep.subr.bf16.mxu1 %v7637_v31 }
 0x44f   : > { %v5531_v20 = vpop.eup %5530 }
 0x450   : > { %v1534_v41 = vmul.f32 %v5531_v20, %v6485_v45 }
 0x451   : > { %4971 = vmatpush3.bf16.msra.mxu1 %v5405_v63 }
 0x452   : > { %v1542_v46 = vpack.c.bf16 %v1534_v41, %v1534_v41  ;;  %4972 = vmatprep.subr.bf16.mxu1 %v7637_v31 }
 0x454   : > { %4965 = vmatmul.mubr.msk.bf16.vlgmr.msra.gmra.mrb[36].mxu0 %vm1543_vm2, %v1542_v46 }
 0x455   : > { %5004 = vmatprep.mubr.msk.bf16.mxu0 %vm5868_vm0, %v7637_v31  ;;  %4973 = vmatpush3.bf16.msra.mxu1 %v5406_v22 }
 0x456   : > { %4974 = vmatprep.subr.bf16.mxu1 %v7637_v31 }
 0x459   : > { %4975 = vmatpush3.bf16.msra.mxu1 %v5407_v8 }
 0x45a   : > { %4976 = vmatprep.subr.bf16.mxu1 %v7637_v31 }
 0x45d   : > { %4977 = vmatpush3.bf16.msra.mxu1 %v5408_v25 }
 0x45e   : > { %4978 = vmatprep.subr.bf16.mxu1 %v7637_v31 }
 0x461   : > { %4979 = vmatpush3.bf16.msra.mxu1 %v5409_v27 }
 0x462   : > { %4980 = vmatprep.subr.bf16.mxu1 %v7637_v31 }
 0x465   : > { %4981 = vmatpush3.bf16.msra.mxu1 %v5410_v28 }
 0x466   : > { %4982 = vmatprep.subr.bf16.mxu1 %v7637_v31 }
 0x469   : > { %4983 = vmatpush3.bf16.msra.mxu1 %v5411_v55 }
 0x4ef   : > { %v1581_v29 = vpop.f32.mrb[32].mxu1 }
 0x4f0   : > { %v1888_v34 = vmul.f32 %v1581_v29, %v6340_v51  ;;  %v4924_v39 = vpop.f32.mrb[33].mxu1 }
 0x4f1   : > { %v1584_v42 = vpop.f32.mrb[34].mxu1 }
 0x4f2   : > { %v1897_v16 = vsel %vm1896_vm3, %v1888_v34, 0.0  ;;  %v4925_v44 = vpop.f32.mrb[35].mxu1 }
 0x4f3   : > { %v1898_v48 = vrot.slane %v1897_v16, 4 }
 0x4f5   : > { %v1899_v49 = vadd.f32 %v1898_v48, %v1897_v16 }
 0x4f7   : > { %v1900_v50 = vrot.slane %v1899_v49, 2  ;;  %v1624_v24 = vpop.f32.mrb[36].mxu1 }
 0x4f8   : > { %v1889_v54 = vmul.f32 %v1624_v24, %v6340_v51  ;;  %v4930_v57 = vpop.f32.mrb[37].mxu1 }
 0x4f9   : > { %v1901_v61 = vadd.f32 %v1900_v50, %v1899_v49  ;;  %v1627_v32 = vpop.f32.mrb[38].mxu1 }
 0x4fa   : > { %v1904_v0 = vsel %vm1896_vm3, %v1889_v54, 0.0  ;;  %v4931_v2 = vpop.f32.mrb[39].mxu1 }
 0x4fb   : > { %v1905_v45 = vrot.slane %v1904_v0, 4  ;;  %v1902_v43 = vrot.slane %v1901_v61, 1 }
 0x4fd   : > { %v1906_v3 = vadd.f32 %v1905_v45, %v1904_v0  ;;  %v1903_v10 = vadd.f32 %v1902_v43, %v1901_v61 }
 0x4ff   : > { %v1907_v5 = vrot.slane %v1906_v3, 2  ;;  %v1667_v56 = vpop.f32.mrb[40].mxu1  ;;  %v1953_v6 = vpack.c.bf16 %v1903_v10, %v1903_v10 }
 0x500   : > { %v1890_v7 = vmul.f32 %v1667_v56, %v6340_v51  ;;  %v4936_v9 = vpop.f32.mrb[41].mxu1 }
 0x501   : > { %v1908_v53 = vadd.f32 %v1907_v5, %v1906_v3  ;;  %v1670_v12 = vpop.f32.mrb[42].mxu1  ;;  %v1992_v40 = vunpack.c.l.b16 %v1953_v6 }
 0x502   : > { %v1911_v13 = vsel %vm1896_vm3, %v1890_v7, 0.0  ;;  %v4937_v52 = vpop.f32.mrb[43].mxu1 }
 0x503   : > { %v1909_v60 = vrot.slane %v1908_v53, 1  ;;  %v1912_v4 = vrot.slane %v1911_v13, 4 }
 0x505   : > { %v1910_v14 = vadd.f32 %v1909_v60, %v1908_v53  ;;  %v1913_v11 = vadd.f32 %v1912_v4, %v1911_v13 }
 0x507   : > { %v1954_v18 = vpack.c.bf16 %v1910_v14, %v1910_v14  ;;  %v1914_v21 = vrot.slane %v1913_v11, 2  ;;  %v1710_v15 = vpop.f32.mrb[44].mxu1 }
 0x508   : > { %v1891_v26 = vmul.f32 %v1710_v15, %v6340_v51  ;;  %v4942_v37 = vpop.f32.mrb[45].mxu1 }
 0x509   : > { %v1993_v17 = vunpack.c.l.b16 %v1954_v18  ;;  %v1915_v47 = vadd.f32 %v1914_v21, %v1913_v11  ;;  %v1713_v59 = vpop.f32.mrb[46].mxu1 }
 0x50a   : > { %v1918_v62 = vsel %vm1896_vm3, %v1891_v26, 0.0  ;;  %v4943_v19 = vpop.f32.mrb[47].mxu1 }
 0x50b   : > { %v2001_v23 = vsel %vm2000_vm4, %v1993_v17, %v1992_v40  ;;  %v1916_v33 = vrot.slane %v1915_v47, 1  ;;  %v1919_v36 = vrot.slane %v1918_v62, 4 }
 0x50d   : > { %v1917_v20 = vadd.f32 %v1916_v33, %v1915_v47  ;;  %v1920_v41 = vadd.f32 %v1919_v36, %v1918_v62 }
 0x50f   : > { %v1955_v46 = vpack.c.bf16 %v1917_v20, %v1917_v20  ;;  %v1921_v58 = vrot.slane %v1920_v41, 2  ;;  %v1753_v63 = vpop.f32.mrb[48].mxu1 }
 0x510   : > { %v1892_v22 = vmul.f32 %v1753_v63, %v6340_v51  ;;  %v4948_v8 = vpop.f32.mrb[49].mxu1 }
 0x511   : > { %v1994_v25 = vunpack.c.l.b16 %v1955_v46  ;;  %v1922_v27 = vadd.f32 %v1921_v58, %v1920_v41  ;;  %v1756_v28 = vpop.f32.mrb[50].mxu1 }
 0x512   : > { %v1925_v55 = vsel %vm1896_vm3, %v1892_v22, 0.0  ;;  %v4949_v29 = vpop.f32.mrb[51].mxu1 }
 0x513   : > { %v2003_v34 = vsel %vm2002_vm5, %v1994_v25, %v2001_v23  ;;  %v1923_v39 = vrot.slane %v1922_v27, 1  ;;  %v1926_v42 = vrot.slane %v1925_v55, 4 }
 0x515   : > { %v1924_v16 = vadd.f32 %v1923_v39, %v1922_v27  ;;  %v1927_v44 = vadd.f32 %v1926_v42, %v1925_v55  ;;  %v4596_v42 = vld [vmem:[%s7614_s9] ss:$0 sm:$0xff] }
 0x517   : > { %v1956_v48 = vpack.c.bf16 %v1924_v16, %v1924_v16  ;;  %v1928_v49 = vrot.slane %v1927_v44, 2  ;;  %v1796_v50 = vpop.f32.mrb[32].mxu0 }
 0x518   : > { %v1893_v24 = vmul.f32 %v1796_v50, %v6340_v51  ;;  %v4954_v54 = vpop.f32.mrb[33].mxu0 }
 0x519   : > { %v1995_v57 = vunpack.c.l.b16 %v1956_v48  ;;  %v1929_v61 = vadd.f32 %v1928_v49, %v1927_v44  ;;  %v1799_v32 = vpop.f32.mrb[34].mxu0  ;;  %v5414_v54 = vld [vmem:[#allocation9 + $0x84] ss:$8 sps:$4 sm:$0xff]  }
 0x51a   : > { %v1932_v0 = vsel %vm1896_vm3, %v1893_v24, 0.0  ;;  %v4955_v2 = vpop.f32.mrb[35].mxu0  ;;  %v5412_v24 = vld [vmem:[#allocation9 + $0x80] ss:$8 sps:$4 sm:$0xff]   ;;  %2610 = vmatprep.subr.bf16.mxu1 %v5414_v54  ;;  %v5420_v32 = vld [vmem:[#allocation9 + $0xa4] ss:$8 sps:$4 sm:$0xff]  }
 0x51b   : > { %v2005_v45 = vsel %vm2004_vm6, %v1995_v57, %v2003_v34  ;;  %v1930_v43 = vrot.slane %v1929_v61, 1  ;;  %v1933_v3 = vrot.slane %v1932_v0, 4  ;;  %v5417_v57 = vld [vmem:[#allocation9 + $0x94] ss:$8 sps:$4 sm:$0xff]   ;;  %v5418_v2 = vld [vmem:[#allocation9 + $0xa0] ss:$8 sps:$4 sm:$0xff]  }
 0x51d   : > { %v1931_v5 = vadd.f32 %v1930_v43, %v1929_v61  ;;  %v1934_v56 = vadd.f32 %v1933_v3, %v1932_v0  ;;  %v5415_v61 = vld [vmem:[#allocation9 + $0x90] ss:$8 sps:$4 sm:$0xff]   ;;  %v5436_v0 = vld [vmem:[#allocation8] sm:$0xff]   ;;  %v5423_v43 = vld [vmem:[#allocation9 + $0xb4] ss:$8 sps:$4 sm:$0xff]  }
 0x51e   : > { %4989 = vmatpush3.bf16.msra.mxu0 %v5436_v0  ;;  %v5421_v3 = vld [vmem:[#allocation9 + $0xb0] ss:$8 sps:$4 sm:$0xff]  }
 0x51f   : > { %v1957_v7 = vpack.c.bf16 %v1931_v5, %v1931_v5  ;;  %v1935_v9 = vrot.slane %v1934_v56, 2  ;;  %v1839_v10 = vpop.f32.mrb[52].mxu1  ;;  %4990 = vmatprep.subr.bf16.mxu0 %v7637_v31  ;;  %v5426_v5 = vld [vmem:[#allocation9 + $0xc4] ss:$8 sps:$4 sm:$0xff]  }
 0x520   : > { %v1894_v53 = vmul.f32 %v1839_v10, %v6340_v51  ;;  %v4960_v12 = vpop.f32.mrb[53].mxu1  ;;  %v5432_v10 = vld [vmem:[#allocation9 + $0xe4] ss:$8 sps:$4 sm:$0xff]  }
 0x521   : > { %v1996_v13 = vunpack.c.l.b16 %v1957_v7  ;;  %v1936_v52 = vadd.f32 %v1935_v9, %v1934_v56  ;;  %v1842_v60 = vpop.f32.mrb[54].mxu1  ;;  %v5424_v56 = vld [vmem:[#allocation9 + $0xc0] ss:$8 sps:$4 sm:$0xff]   ;;  %v5429_v7 = vld [vmem:[#allocation9 + $0xd4] ss:$8 sps:$4 sm:$0xff]  }
 0x522   : > { %v1939_v4 = vsel %vm1896_vm3, %v1894_v53, 0.0  ;;  %v4961_v6 = vpop.f32.mrb[55].mxu1  ;;  %v5427_v9 = vld [vmem:[#allocation9 + $0xd0] ss:$8 sps:$4 sm:$0xff]   ;;  %v5430_v53 = vld [vmem:[#allocation9 + $0xe0] ss:$8 sps:$4 sm:$0xff]  }
 0x523   : > { %v2007_v14 = vsel %vm2006_vm7, %v1996_v13, %v2005_v45  ;;  %v1937_v11 = vrot.slane %v1936_v52, 1  ;;  %v1940_v18 = vrot.slane %v1939_v4, 4  ;;  %v5438_v45 = vld [vmem:[#allocation8 + $0x8] sm:$0xff]   ;;  %v5435_v12 = vld [vmem:[#allocation9 + $0xf4] ss:$8 sps:$4 sm:$0xff]  }
 0x524   : > { %4991 = vmatpush3.bf16.msra.mxu0 %v5438_v45  ;;  %v5433_v13 = vld [vmem:[#allocation9 + $0xf0] ss:$8 sps:$4 sm:$0xff]   ;;  %v4606_v45 = vld [vmem:[%s7722_s28] ss:$0 sm:$0xff] }
 0x525   : > { %v1938_v21 = vadd.f32 %v1937_v11, %v1936_v52  ;;  %v1941_v15 = vadd.f32 %v1940_v18, %v1939_v4  ;;  %4992 = vmatprep.subr.bf16.mxu0 %v7637_v31  ;;  %v5437_v52 = vld [vmem:[%s6267_s5] sm:$0xff]   ;;  %v5439_v11 = vld [vmem:[#allocation8 + $0x10] sm:$0xff]   ;;  %v5440_v18 = vld [vmem:[%s6267_s5 + $0x8] sm:$0xff]  }
 0x527   : > { %v1958_v26 = vpack.c.bf16 %v1938_v21, %v1938_v21  ;;  %v1942_v37 = vrot.slane %v1941_v15, 2  ;;  %v1882_v40 = vpop.f32.mrb[36].mxu0  ;;  %v5441_v21 = vld [vmem:[#allocation8 + $0x18] sm:$0xff]  }
 0x528   : > { %v1895_v17 = vmul.f32 %v1882_v40, %v6340_v51  ;;  %v4966_v47 = vpop.f32.mrb[37].mxu0  ;;  %4993 = vmatpush3.bf16.msra.mxu0 %v5439_v11  ;;  %v5445_v40 = vld [vmem:[#allocation8 + $0x30] sm:$0xff]  }
 0x529   : > { %v1997_v59 = vunpack.c.l.b16 %v1958_v26  ;;  %v1943_v62 = vadd.f32 %v1942_v37, %v1941_v15  ;;  %v1885_v19 = vpop.f32.mrb[38].mxu0  ;;  %4994 = vmatprep.subr.bf16.mxu0 %v7637_v31  ;;  %v5442_v15 = vld [vmem:[#allocation8 + $0x20] sm:$0xff]   ;;  %v5443_v26 = vld [vmem:[%s6267_s5 + $0x10] sm:$0xff]   ;;  %v5444_v37 = vld [vmem:[#allocation8 + $0x28] sm:$0xff]  }
 0x52a   : > { %v1946_v23 = vsel %vm1896_vm3, %v1895_v17, 0.0  ;;  %v4967_v33 = vpop.f32.mrb[39].mxu0  ;;  %v5446_v17 = vld [vmem:[%s6267_s5 + $0x18] sm:$0xff]   ;;  %v5450_v19 = vld [vmem:[%s6267_s5 + $0x30] sm:$0xff]  }
 0x52b   : > { %v1944_v36 = vrot.slane %v1943_v62, 1  ;;  %v1947_v20 = vrot.slane %v1946_v23, 4  ;;  %v2009_v41 = vsel %vm2008_vm8, %v1997_v59, %v2007_v14  ;;  %v5447_v47 = vld [vmem:[#allocation8 + $0x38] sm:$0xff]   ;;  %v5448_v59 = vld [vmem:[%s6267_s5 + $0x20] sm:$0xff]  }
 0x52c   : > { %4995 = vmatpush3.bf16.msra.mxu0 %v5441_v21  ;;  %v5452_v33 = vld [vmem:[%s6267_s5 + $0x40] sm:$0xff]  }
 0x52d   : > { %v1945_v46 = vadd.f32 %v1944_v36, %v1943_v62  ;;  %v1948_v58 = vadd.f32 %v1947_v20, %v1946_v23  ;;  %4996 = vmatprep.subr.bf16.mxu0 %v7637_v31  ;;  %v5449_v62 = vld [vmem:[%s6267_s5 + $0x28] sm:$0xff]   ;;  %v5451_v23 = vld [vmem:[%s6267_s5 + $0x38] sm:$0xff]   ;;  %v5454_v20 = vld [vmem:[%s6267_s5 + $0x50] sm:$0xff]  }
 0x52e   : > { %v5453_v36 = vld [vmem:[%s6267_s5 + $0x48] sm:$0xff]  }
 0x52f   : > { %v1959_v63 = vpack.c.bf16 %v1945_v46, %v1945_v46  ;;  %v1949_v22 = vrot.slane %v1948_v58, 2  ;;  %v5456_v46 = vld [vmem:[%s6267_s5 + $0x60] sm:$0xff]  }
 0x530   : > { %4997 = vmatpush3.bf16.msra.mxu0 %v5442_v15 }
 0x531   : > { %v1998_v8 = vunpack.c.l.b16 %v1959_v63  ;;  %v1950_v25 = vadd.f32 %v1949_v22, %v1948_v58  ;;  %4998 = vmatprep.subr.bf16.mxu0 %v7637_v31  ;;  %v5457_v58 = vld [vmem:[%s6267_s5 + $0x68] sm:$0xff]   ;;  %v5568_v63 = vld [vmem:[%s7612_s7 + $0x2] sm:$0x3] }
 0x532   : > { %v6618_v22 = vrot.slane %v5568_v63, %v6323_v38 }
 0x533   : > { %v1951_v51 = vrot.slane %v1950_v25, 1  ;;  %v2011_v27 = vsel %vm2010_vm9, %v1998_v8, %v2009_v41  ;;  %v5455_v41 = vld [vmem:[%s6267_s5 + $0x58] sm:$0xff]   ;;  %v5458_v8 = vld [vmem:[%s6267_s5 + $0x70] sm:$0xff]  }
 0x534   : > { %4999 = vmatpush3.bf16.msra.mxu0 %v5444_v37 }
 0x535   : > { %v1952_v28 = vadd.f32 %v1951_v51, %v1950_v25  ;;  %5000 = vmatprep.subr.bf16.mxu0 %v7637_v31 }
 0x537   : > { %v1960_v55 = vpack.c.bf16 %v1952_v28, %v1952_v28 }
 0x538   : > { %5001 = vmatpush3.bf16.msra.mxu0 %v5445_v40 }
 0x539   : > { %v1999_v29 = vunpack.c.l.b16 %v1960_v55  ;;  %5002 = vmatprep.subr.bf16.mxu0 %v7637_v31 }
 0x53b   : > { %v2013_v34 = vsel %vm2012_vm10, %v1999_v29, %v2011_v27 }
 0x53c   : > { %v2014_v39 = vpack.c.b16 %v2013_v34, %v2013_v34  ;;  %5003 = vmatpush3.bf16.msra.mxu0 %v5447_v47 }
 0x53d   : > { %5008 = vmatprep.subr.bf16.mxu0 %v7637_v31 }
 0x53e   : > { %4985 = vmatmul.mubr.bf16.vlgmr.msra.gmra.mrb[56].mxu1 %v2014_v39 }
 0x53f   : > { %2642 = vmatprep.mubr.bf16.mxu1 %v5866_v1  ;;  %2611 = vmatpush1.bf16.msra.mxu1 %v5412_v24 }
 0x540   : > { %2612 = vmatprep.subr.bf16.mxu1 %v5417_v57  ;;  %v5462_v57 = vld [vmem:[%s6267_s5 + $0x90] sm:$0xff]  }
 0x543   : > { %2613 = vmatpush1.bf16.msra.mxu1 %v5415_v61 }
 0x544   : > { %2614 = vmatprep.subr.bf16.mxu1 %v5420_v32  ;;  %v4605_v32 = vld [vmem:[%s7615_s10] ss:$0 sm:$0xff] }
 0x547   : > { %2615 = vmatpush1.bf16.msra.mxu1 %v5418_v2  ;;  %v5463_v2 = vld [vmem:[%s6267_s5 + $0x98] sm:$0xff]  }
 0x548   : > { %2616 = vmatprep.subr.bf16.mxu1 %v5423_v43 }
 0x54b   : > { %2617 = vmatpush1.bf16.msra.mxu1 %v5421_v3 }
 0x54c   : > { %2618 = vmatprep.subr.bf16.mxu1 %v5426_v5 }
 0x54f   : > { %2619 = vmatpush1.bf16.msra.mxu1 %v5424_v56  ;;  %v5464_v56 = vld [vmem:[%s6267_s5 + $0xa0] sm:$0xff]  }
 0x550   : > { %2620 = vmatprep.subr.bf16.mxu1 %v5429_v7  ;;  %v5465_v7 = vld [vmem:[%s6267_s5 + $0xa8] sm:$0xff]  }
 0x553   : > { %2621 = vmatpush1.bf16.msra.mxu1 %v5427_v9  ;;  %v5466_v9 = vld [vmem:[%s6267_s5 + $0xb0] sm:$0xff]  }
 0x554   : > { %2622 = vmatprep.subr.bf16.mxu1 %v5432_v10  ;;  %v5467_v10 = vld [vmem:[%s6267_s5 + $0xb8] sm:$0xff]  }
 0x557   : > { %2623 = vmatpush1.bf16.msra.mxu1 %v5430_v53  ;;  %v5468_v53 = vld [vmem:[%s6267_s5 + $0xc0] sm:$0xff]  }
 0x558   : > { %2624 = vmatprep.subr.bf16.mxu1 %v5435_v12  ;;  %v5469_v12 = vld [vmem:[%s6267_s5 + $0xc8] sm:$0xff]  }
 0x55b   : > { %2625 = vmatpush1.bf16.msra.mxu1 %v5433_v13  ;;  %v5470_v13 = vld [vmem:[%s6267_s5 + $0xd0] sm:$0xff]  }
 0x55c   : > { %5116 = vmatprep.subr.bf16.mxu1 %v7637_v31 }
 0x55e   : > { %2643 = vmatmul.mubr.bf16.vlgmr.msra.gmra.mrb[60].mxu1 %v5437_v52  ;;  %v5471_v52 = vld [vmem:[%s6267_s5 + $0xd8] sm:$0xff]  }
 0x55f   : > { %2652 = vmatprep.mubr.bf16.mxu1 %v5866_v1 }
 0x566   : > { %2653 = vmatmul.mubr.bf16.gmra.mrb[64].mxu1 %v5440_v18 }
 0x567   : > { %2662 = vmatprep.mubr.bf16.mxu1 %v5866_v1 }
 0x56e   : > { %2663 = vmatmul.mubr.bf16.gmra.mrb[68].mxu1 %v5443_v26 }
 0x56f   : > { %2672 = vmatprep.mubr.bf16.mxu1 %v5866_v1 }
 0x576   : > { %2673 = vmatmul.mubr.bf16.gmra.mrb[72].mxu1 %v5446_v17 }
 0x577   : > { %2682 = vmatprep.mubr.bf16.mxu1 %v5866_v1 }
 0x57e   : > { %2683 = vmatmul.mubr.bf16.gmra.mrb[76].mxu1 %v5448_v59 }
 0x57f   : > { %2692 = vmatprep.mubr.bf16.mxu1 %v5866_v1 }
 0x586   : > { %2693 = vmatmul.mubr.bf16.gmra.mrb[80].mxu1 %v5449_v62  ;;  %v5473_v62 = vld [vmem:[%s6267_s5 + $0xe8] sm:$0xff]  }
 0x587   : > { %2702 = vmatprep.mubr.bf16.mxu1 %v5866_v1 }
 0x58e   : > { %2703 = vmatmul.mubr.bf16.gmra.mrb[84].mxu1 %v5450_v19 }
 0x58f   : > { %2712 = vmatprep.mubr.bf16.mxu1 %v5866_v1 }
 0x596   : > { %2713 = vmatmul.mubr.bf16.gmra.mrb[88].mxu1 %v5451_v23 }
 0x597   : > { %2722 = vmatprep.mubr.bf16.mxu1 %v5866_v1 }
 0x59e   : > { %2723 = vmatmul.mubr.bf16.gmra.mrb[92].mxu1 %v5452_v33 }
 0x59f   : > { %2732 = vmatprep.mubr.bf16.mxu1 %v5866_v1 }
 0x5a6   : > { %2733 = vmatmul.mubr.bf16.gmra.mrb[96].mxu1 %v5453_v36 }
 0x5a7   : > { %2742 = vmatprep.mubr.bf16.mxu1 %v5866_v1 }
 0x5ae   : > { %2743 = vmatmul.mubr.bf16.gmra.mrb[100].mxu1 %v5454_v20 }
 0x5af   : > { %2752 = vmatprep.mubr.bf16.mxu1 %v5866_v1 }
 0x5b6   : > { %2753 = vmatmul.mubr.bf16.gmra.mrb[104].mxu1 %v5455_v41 }
 0x5b7   : > { %2762 = vmatprep.mubr.bf16.mxu1 %v5866_v1 }
 0x5be   : > { %2763 = vmatmul.mubr.bf16.gmra.mrb[108].mxu1 %v5456_v46 }
 0x5bf   : > { %2772 = vmatprep.mubr.bf16.mxu1 %v5866_v1 }
 0x5c6   : > { %2773 = vmatmul.mubr.bf16.gmra.mrb[112].mxu1 %v5457_v58 }
 0x5c7   : > { %2782 = vmatprep.mubr.bf16.mxu1 %v5866_v1 }
 0x5ce   : > { %2783 = vmatmul.mubr.bf16.gmra.mrb[116].mxu1 %v5458_v8 }
 0x5cf   : > { %2792 = vmatprep.mubr.bf16.mxu1 %v5866_v1 }
 0x611   : > { %v2098_v16 = vpop.f32.mrb[56].mxu1 }
 0x612   : > { %v2099_v44 = vadd.f32 %v4596_v42, %v2098_v16  ;;  %v4986_v48 = vpop.f32.mrb[57].mxu1 }
 0x613   : > { %v2101_v49 = vpop.f32.mrb[58].mxu1  ;;  %v5460_v48 = vld [vmem:[%s6267_s5 + $0x80] sm:$0xff]  }
 0x614   : > { %2106 = vadd.xlane.f32.xlu0 %v2099_v44  ;;  %v4987_v50 = vpop.f32.mrb[59].mxu1 }
 0x615   : > { %v5461_v50 = vld [vmem:[%s6267_s5 + $0x88] sm:$0xff]  }
 0x631   : > { %v2644_v25 = vpop.f32.mrb[60].mxu1 }
 0x632   : > { %v2645_v51 = vadd.f32 %v2644_v25, %v6618_v22  ;;  %v2646_v27 = vpop.f32.mrb[61].mxu1 }
 0x633   : > { %v6624_v28 = vadd.f32 %v2646_v27, %v6306_v30  ;;  %v2648_v55 = vpop.f32.mrb[62].mxu1 }
 0x634   : > { %v2649_v29 = vadd.f32 %v2648_v55, %v6618_v22  ;;  %v2650_v34 = vpop.f32.mrb[63].mxu1 }
 0x635   : > { %v6628_v39 = vadd.f32 %v2650_v34, %v6306_v30 }
 0x636   : > { %v2963_v42 = vpack.c.bf16 %v2649_v29, %v2645_v51  ;;  %v5474_v29 = vld [vmem:[%s6267_s5 + $0xf0] sm:$0xff]  }
 0x6a1   : > { %v2107_v60 = vpop.xlane.xlu0 %2106 }
 0x6a2   : > { %v2109_v4 = vmul.f32 0.0078125, %v2107_v60  ;;  %v2654_v60 = vpop.f32.mrb[64].mxu1 }
 0x6a4   : > { %v6579_v6 = vsub.f32 %v2099_v44, %v2109_v4  ;;  %v5459_v44 = vld [vmem:[%s6267_s5 + $0x78] sm:$0xff]   ;;  %v2655_v4 = vadd.f32 %v2654_v60, %v6618_v22 }
 0x6a5   : > { %2793 = vmatmul.mubr.bf16.gmra.mrb[120].mxu1 %v5459_v44 }
 0x6a6   : > { %v2111_v14 = vmul.f32 %v6579_v6, %v6579_v6  ;;  %2802 = vmatprep.mubr.bf16.mxu1 %v5866_v1 }
 0x6a8   : > { %2112 = vadd.xlane.f32.xlu1 %v2111_v14  ;;  %v5472_v14 = vld [vmem:[%s6267_s5 + $0xe0] sm:$0xff]  }
 0x6ad   : > { %2803 = vmatmul.mubr.bf16.gmra.mrb[124].mxu1 %v5460_v48 }
 0x6ae   : > { %2812 = vmatprep.mubr.bf16.mxu1 %v5866_v1 }
 0x6b5   : > { %2813 = vmatmul.mubr.bf16.gmra.mrb[128].mxu1 %v5461_v50 }
 0x6b6   : > { %2822 = vmatprep.mubr.bf16.mxu1 %v5866_v1 }
 0x6bd   : > { %2823 = vmatmul.mubr.bf16.gmra.mrb[132].mxu1 %v5462_v57 }
 0x6be   : > { %2832 = vmatprep.mubr.bf16.mxu1 %v5866_v1 }
 0x6c5   : > { %2833 = vmatmul.mubr.bf16.gmra.mrb[136].mxu1 %v5463_v2 }
 0x6c6   : > { %2842 = vmatprep.mubr.bf16.mxu1 %v5866_v1 }
 0x6cd   : > { %2843 = vmatmul.mubr.bf16.gmra.mrb[140].mxu1 %v5464_v56 }
 0x6ce   : > { %2852 = vmatprep.mubr.bf16.mxu1 %v5866_v1 }
 0x6d5   : > { %2853 = vmatmul.mubr.bf16.gmra.mrb[144].mxu1 %v5465_v7 }
 0x6d6   : > { %2862 = vmatprep.mubr.bf16.mxu1 %v5866_v1 }
 0x6dd   : > { %2863 = vmatmul.mubr.bf16.gmra.mrb[148].mxu1 %v5466_v9 }
 0x6de   : > { %2872 = vmatprep.mubr.bf16.mxu1 %v5866_v1 }
 0x6e5   : > { %2873 = vmatmul.mubr.bf16.gmra.mrb[152].mxu1 %v5467_v10 }
 0x6e6   : > { %2882 = vmatprep.mubr.bf16.mxu1 %v5866_v1 }
 0x6ed   : > { %2883 = vmatmul.mubr.bf16.gmra.mrb[156].mxu1 %v5468_v53 }
 0x6ee   : > { %2892 = vmatprep.mubr.bf16.mxu1 %v5866_v1 }
 0x6f5   : > { %2893 = vmatmul.mubr.bf16.gmra.mrb[160].mxu1 %v5469_v12 }
 0x6f6   : > { %2902 = vmatprep.mubr.bf16.mxu1 %v5866_v1 }
 0x6fd   : > { %2903 = vmatmul.mubr.bf16.gmra.mrb[164].mxu1 %v5470_v13 }
 0x6fe   : > { %2912 = vmatprep.mubr.bf16.mxu1 %v5866_v1 }
 0x705   : > { %2913 = vmatmul.mubr.bf16.gmra.mrb[168].mxu1 %v5471_v52 }
 0x706   : > { %2922 = vmatprep.mubr.bf16.mxu1 %v5866_v1 }
 0x70d   : > { %2923 = vmatmul.mubr.bf16.gmra.mrb[172].mxu1 %v5472_v14 }
 0x70e   : > { %2932 = vmatprep.mubr.bf16.mxu1 %v5866_v1 }
 0x715   : > { %2933 = vmatmul.mubr.bf16.gmra.mrb[176].mxu1 %v5473_v62 }
 0x716   : > { %2942 = vmatprep.mubr.bf16.mxu1 %v5866_v1 }
 0x71d   : > { %2943 = vmatmul.mubr.bf16.gmra.mrb[180].mxu1 %v5474_v29 }
 0x71e   : > { %2952 = vmatprep.mubr.bf16.mxu1 %v5866_v1 }
 0x735   : > { %v2113_v49 = vpop.xlane.xlu1 %2112 }
 0x736   : > { %v2114_v24 = vmul.f32 0.0078125, %v2113_v49 }
 0x738   : > { %v2115_v54 = vadd.f32 1e-05, %v2114_v24 }
 0x73a   : > { %5532 = vrsqrt.f32 %v2115_v54  ;;  %v5475_v54 = vld [vmem:[%s6267_s5 + $0xf8] sm:$0xff]  }
 0x73b   : > { %2953 = vmatmul.mubr.bf16.gmra.mrb[184].mxu1 %v5475_v54 }
 0x73c   : > { %5124 = vmatprep.mubr.msk.bf16.mxu1 %vm5868_vm0, %v7637_v31 }
 0x744   : > { %v5533_v61 = vpop.eup %5532 }
 0x745   : > { %v2117_v0 = vmul.f32 %v5533_v61, %v6579_v6  ;;  %v2656_v6 = vpop.f32.mrb[65].mxu1 }
 0x746   : > { %v6672_v11 = vadd.f32 %v2656_v6, %v6306_v30  ;;  %v2658_v18 = vpop.f32.mrb[66].mxu1 }
 0x747   : > { %v2124_v43 = vmul.f32 %v4605_v32, %v2117_v0  ;;  %v2659_v21 = vadd.f32 %v2658_v18, %v6618_v22  ;;  %v2660_v15 = vpop.f32.mrb[67].mxu1 }
 0x748   : > { %v6676_v26 = vadd.f32 %v2660_v15, %v6306_v30  ;;  %v2664_v17 = vpop.f32.mrb[68].mxu1 }
 0x749   : > { %v2131_v3 = vadd.f32 %v4606_v45, %v2124_v43  ;;  %v2965_v37 = vpack.c.bf16 %v2659_v21, %v2655_v4  ;;  %v2665_v47 = vadd.f32 %v2664_v17, %v6618_v22  ;;  %v2666_v59 = vpop.f32.mrb[69].mxu1 }
 0x74a   : > { %v6685_v19 = vadd.f32 %v2666_v59, %v6306_v30  ;;  %v2668_v23 = vpop.f32.mrb[70].mxu1 }
 0x74b   : > { %v2196_v5 = vpack.c.bf16 %v2131_v3, %v2131_v3  ;;  %v2669_v33 = vadd.f32 %v2668_v23, %v6618_v22  ;;  %v2670_v36 = vpop.f32.mrb[71].mxu1 }
 0x74c   : > { %v6689_v20 = vadd.f32 %v2670_v36, %v6306_v30  ;;  %v2674_v58 = vpop.f32.mrb[72].mxu1 }
 0x74d   : > { %5005 = vmatmul.mubr.bf16.vlgmr.msra.gmra.mrb[40].mxu0 %v2196_v5  ;;  %v2967_v41 = vpack.c.bf16 %v2669_v33, %v2665_v47  ;;  %v2675_v63 = vadd.f32 %v2674_v58, %v6618_v22  ;;  %v2676_v8 = vpop.f32.mrb[73].mxu1 }
 0x74e   : > { %5009 = vmatpush3.bf16.xpose.msra.mxu0 %v2963_v42  ;;  %5016 = vmatprep.mubr.msk.bf16.mxu0 %vm5868_vm0, %v7637_v31  ;;  %v6697_v25 = vadd.f32 %v2676_v8, %v6306_v30  ;;  %v2678_v51 = vpop.f32.mrb[74].mxu1 }
 0x74f   : > { %5010 = vmatprep.subr.bf16.mxu0 %v7637_v31  ;;  %v2679_v27 = vadd.f32 %v2678_v51, %v6618_v22  ;;  %v2680_v55 = vpop.f32.mrb[75].mxu1 }
 0x750   : > { %v6702_v34 = vadd.f32 %v2680_v55, %v6306_v30  ;;  %v2684_v48 = vpop.f32.mrb[76].mxu1 }
 0x751   : > { %v2969_v42 = vpack.c.bf16 %v2679_v27, %v2675_v63  ;;  %v2686_v49 = vpop.f32.mrb[77].mxu1  ;;  %v6710_v57 = vadd.f32 %v2684_v48, %v6618_v22 }
 0x752   : > { %v2688_v50 = vpop.f32.mrb[78].mxu1  ;;  %v2687_v61 = vadd.f32 %v2686_v49, %v6306_v30 }
 0x753   : > { %v2690_v24 = vpop.f32.mrb[79].mxu1  ;;  %v6714_v32 = vadd.f32 %v2688_v50, %v6618_v22 }
 0x754   : > { %v2691_v0 = vadd.f32 %v2690_v24, %v6306_v30  ;;  %v2694_v45 = vpop.f32.mrb[80].mxu1 }
 0x755   : > { %v2696_v43 = vpop.f32.mrb[81].mxu1  ;;  %v6723_v3 = vadd.f32 %v2694_v45, %v6618_v22 }
 0x756   : > { %5011 = vmatpush3.bf16.xpose.msra.mxu0 %v2965_v37  ;;  %v2972_v2 = vpack.c.bf16 %v2691_v0, %v2687_v61  ;;  %v2697_v5 = vadd.f32 %v2696_v43, %v6306_v30  ;;  %v2698_v56 = vpop.f32.mrb[82].mxu1 }
 0x757   : > { %5012 = vmatprep.subr.bf16.mxu0 %v7637_v31  ;;  %v6727_v7 = vadd.f32 %v2698_v56, %v6618_v22  ;;  %v2700_v9 = vpop.f32.mrb[83].mxu1 }
 0x758   : > { %5117 = vmatpush3.bf16.msra.mxu1 %v2972_v2  ;;  %v2701_v10 = vadd.f32 %v2700_v9, %v6306_v30  ;;  %v2704_v13 = vpop.f32.mrb[84].mxu1 }
 0x759   : > { %5118 = vmatprep.subr.bf16.mxu1 %v7637_v31  ;;  %v2706_v52 = vpop.f32.mrb[85].mxu1  ;;  %v6733_v60 = vadd.f32 %v2704_v13, %v6618_v22 }
 0x75a   : > { %v2974_v12 = vpack.c.bf16 %v2701_v10, %v2697_v5  ;;  %v2707_v4 = vadd.f32 %v2706_v52, %v6306_v30  ;;  %v2708_v6 = vpop.f32.mrb[86].mxu1 }
 0x75b   : > { %v6738_v14 = vadd.f32 %v2708_v6, %v6618_v22  ;;  %v2710_v18 = vpop.f32.mrb[87].mxu1 }
 0x75c   : > { %5119 = vmatpush3.bf16.msra.mxu1 %v2974_v12  ;;  %v2711_v21 = vadd.f32 %v2710_v18, %v6306_v30  ;;  %v2714_v17 = vpop.f32.mrb[88].mxu1 }
 0x75d   : > { %5120 = vmatprep.subr.bf16.mxu1 %v7637_v31  ;;  %v2716_v47 = vpop.f32.mrb[89].mxu1  ;;  %v6744_v59 = vadd.f32 %v2714_v17, %v6618_v22 }
 0x75e   : > { %5013 = vmatpush3.bf16.xpose.msra.mxu0 %v2967_v41  ;;  %v2976_v37 = vpack.c.bf16 %v2711_v21, %v2707_v4  ;;  %v2717_v62 = vadd.f32 %v2716_v47, %v6306_v30  ;;  %v2718_v23 = vpop.f32.mrb[90].mxu1 }
 0x75f   : > { %5014 = vmatprep.subr.bf16.mxu0 %v7637_v31  ;;  %v6749_v33 = vadd.f32 %v2718_v23, %v6618_v22  ;;  %v2720_v36 = vpop.f32.mrb[91].mxu1 }
 0x760   : > { %5121 = vmatpush3.bf16.msra.mxu1 %v2976_v37  ;;  %v2721_v41 = vadd.f32 %v2720_v36, %v6306_v30  ;;  %v2724_v8 = vpop.f32.mrb[92].mxu1 }
 0x761   : > { %5122 = vmatprep.subr.bf16.mxu1 %v7637_v31  ;;  %v2726_v51 = vpop.f32.mrb[93].mxu1  ;;  %v6755_v27 = vadd.f32 %v2724_v8, %v6618_v22 }
 0x762   : > { %v2978_v63 = vpack.c.bf16 %v2721_v41, %v2717_v62  ;;  %v6759_v55 = vadd.f32 %v2726_v51, %v6306_v30  ;;  %v2728_v29 = vpop.f32.mrb[94].mxu1 }
 0x763   : > { %v2730_v48 = vpop.f32.mrb[95].mxu1 }
 0x764   : > { %5123 = vmatpush3.bf16.msra.mxu1 %v2978_v63  ;;  %7723 = vst [vmem:[#allocation24_spill] sm:$0xff] %v6759_v55  ;;  %v6765_v49 = vadd.f32 %v2730_v48, %v6306_v30  ;;  %v2734_v54 = vpop.f32.mrb[96].mxu1 }
 0x765   : > { %5140 = vmatprep.subr.bf16.mxu1 %v7637_v31  ;;  %v6772_v61 = vadd.f32 %v2734_v54, %v6618_v22  ;;  %v2736_v0 = vpop.f32.mrb[97].mxu1 }
 0x766   : > { %5015 = vmatpush3.bf16.xpose.msra.mxu0 %v2969_v42  ;;  %v6762_v42 = vadd.f32 %v2728_v29, %v6618_v22  ;;  %v6775_v2 = vadd.f32 %v2736_v0, %v6306_v30  ;;  %v2738_v45 = vpop.f32.mrb[98].mxu1 }
 0x767   : > { %5020 = vmatprep.subr.bf16.mxu0 %v7637_v31  ;;  %v6778_v43 = vadd.f32 %v2738_v45, %v6618_v22  ;;  %v2740_v5 = vpop.f32.mrb[99].mxu1 }
 0x768   : > { %7724 = vst [vmem:[#allocation25_spill] sm:$0xff] %v6775_v2  ;;  %v6781_v56 = vadd.f32 %v2740_v5, %v6306_v30  ;;  %v2744_v12 = vpop.f32.mrb[100].mxu1 }
 0x769   : > { %v2746_v13 = vpop.f32.mrb[101].mxu1  ;;  %v6788_v52 = vadd.f32 %v2744_v12, %v6618_v22 }
 0x76a   : > { %7725 = vst [vmem:[#allocation26_spill] sm:$0xff] %v6781_v56  ;;  %v6791_v4 = vadd.f32 %v2746_v13, %v6306_v30  ;;  %v2748_v6 = vpop.f32.mrb[102].mxu1  ;;  %v7749_v56 = vpack.c.bf16 %v6714_v32, %v6710_v57 }
 0x76b   : > { %v6794_v18 = vadd.f32 %v2748_v6, %v6618_v22  ;;  %v2750_v21 = vpop.f32.mrb[103].mxu1 }
 0x76c   : > { %7726 = vst [vmem:[#allocation27_spill] sm:$0xff] %v6791_v4  ;;  %v6797_v37 = vadd.f32 %v2750_v21, %v6306_v30  ;;  %v2754_v62 = vpop.f32.mrb[104].mxu1 }
 0x76d   : > { %v2756_v23 = vpop.f32.mrb[105].mxu1  ;;  %v6804_v36 = vadd.f32 %v2754_v62, %v6618_v22 }
 0x76e   : > { %7727 = vst [vmem:[#allocation28_spill] sm:$0xff] %v6797_v37  ;;  %v6807_v41 = vadd.f32 %v2756_v23, %v6306_v30  ;;  %v2758_v63 = vpop.f32.mrb[106].mxu1 }
 0x76f   : > { %v6810_v8 = vadd.f32 %v2758_v63, %v6618_v22  ;;  %v2760_v51 = vpop.f32.mrb[107].mxu1 }
 0x770   : > { %7728 = vst [vmem:[#allocation29_spill] sm:$0xff] %v6807_v41  ;;  %v6813_v29 = vadd.f32 %v2760_v51, %v6306_v30  ;;  %v2764_v0 = vpop.f32.mrb[108].mxu1  ;;  %v6971_v41 = vld [vmem:[%s7608_s3] sm:$0xf] }
 0x771   : > { %v2766_v45 = vpop.f32.mrb[109].mxu1  ;;  %v6820_v5 = vadd.f32 %v2764_v0, %v6618_v22 }
 0x772   : > { %7729 = vst [vmem:[#allocation30_spill] sm:$0xff] %v6813_v29  ;;  %v6823_v12 = vadd.f32 %v2766_v45, %v6306_v30  ;;  %v2768_v13 = vpop.f32.mrb[110].mxu1 }
 0x773   : > { %v6826_v6 = vadd.f32 %v2768_v13, %v6618_v22  ;;  %v2770_v21 = vpop.f32.mrb[111].mxu1 }
 0x774   : > { %7730 = vst [vmem:[#allocation31_spill] sm:$0xff] %v6823_v12  ;;  %v6829_v62 = vadd.f32 %v2770_v21, %v6306_v30  ;;  %v2774_v51 = vpop.f32.mrb[112].mxu1 }
 0x775   : > { %v6836_v0 = vadd.f32 %v2774_v51, %v6618_v22  ;;  %v2776_v45 = vpop.f32.mrb[113].mxu1 }
 0x776   : > { %7731 = vst [vmem:[#allocation32_spill] sm:$0xff] %v6829_v62  ;;  %v6839_v54 = vadd.f32 %v2776_v45, %v6306_v30  ;;  %v2778_v13 = vpop.f32.mrb[114].mxu1 }
 0x777   : > { %v6842_v47 = vadd.f32 %v2778_v13, %v6618_v22  ;;  %v2780_v21 = vpop.f32.mrb[115].mxu1 }
 0x778   : > { %7732 = vst [vmem:[#allocation33_spill] sm:$0xff] %v6839_v54  ;;  %v6845_v10 = vadd.f32 %v2780_v21, %v6306_v30  ;;  %v2784_v51 = vpop.f32.mrb[116].mxu1 }
 0x779   : > { %v2786_v44 = vpop.f32.mrb[117].mxu1  ;;  %v6852_v46 = vadd.f32 %v2784_v51, %v6618_v22 }
 0x77a   : > { %7733 = vst [vmem:[#allocation34_spill] sm:$0xff] %v6845_v10  ;;  %v6855_v45 = vadd.f32 %v2786_v44, %v6306_v30  ;;  %v2788_v13 = vpop.f32.mrb[118].mxu1 }
 0x77b   : > { %v6858_v40 = vadd.f32 %v2788_v13, %v6618_v22  ;;  %v2790_v21 = vpop.f32.mrb[119].mxu1 }
 0x77c   : > { %7734 = vst [vmem:[#allocation35_spill] sm:$0xff] %v6855_v45  ;;  %v6861_v16 = vadd.f32 %v2790_v21, %v6306_v30  ;;  %v2794_v23 = vpop.f32.mrb[120].mxu1 }
 0x77d   : > { %v2796_v51 = vpop.f32.mrb[121].mxu1  ;;  %v6868_v48 = vadd.f32 %v2794_v23, %v6618_v22 }
 0x77e   : > { %7735 = vst [vmem:[#allocation36_spill] sm:$0xff] %v6861_v16  ;;  %v6871_v44 = vadd.f32 %v2796_v51, %v6306_v30  ;;  %v2798_v13 = vpop.f32.mrb[122].mxu1 }
 0x77f   : > { %v6874_v17 = vadd.f32 %v2798_v13, %v6618_v22  ;;  %v2800_v21 = vpop.f32.mrb[123].mxu1 }
 0x780   : > { %7736 = vst [vmem:[#allocation37_spill] sm:$0xff] %v6871_v44  ;;  %v6877_v9 = vadd.f32 %v2800_v21, %v6306_v30  ;;  %v2804_v50 = vpop.f32.mrb[124].mxu1 }
 0x781   : > { %v2806_v23 = vpop.f32.mrb[125].mxu1  ;;  %v6884_v58 = vadd.f32 %v2804_v50, %v6618_v22 }
 0x782   : > { %7737 = vst [vmem:[#allocation38_spill] sm:$0xff] %v6877_v9  ;;  %v6887_v51 = vadd.f32 %v2806_v23, %v6306_v30  ;;  %v2808_v13 = vpop.f32.mrb[126].mxu1 }
 0x783   : > { %v6890_v15 = vadd.f32 %v2808_v13, %v6618_v22  ;;  %v2810_v21 = vpop.f32.mrb[127].mxu1 }
 0x784   : > { %7738 = vst [vmem:[#allocation39_spill] sm:$0xff] %v6887_v51  ;;  %v6893_v53 = vadd.f32 %v2810_v21, %v6306_v30 }
 0x786   : > { %7739 = vst [vmem:[#allocation40_spill] sm:$0xff] %v6893_v53 }
 0x788   : > { %v2814_v31 = vpop.f32.mrb[128].mxu1 }
 0x789   : > { %v6900_v50 = vadd.f32 %v2814_v31, %v6618_v22  ;;  %v2816_v23 = vpop.f32.mrb[129].mxu1 }
 0x78a   : > { %v6903_v1 = vadd.f32 %v2816_v23, %v6306_v30  ;;  %v2818_v13 = vpop.f32.mrb[130].mxu1 }
 0x78b   : > { %v6906_v44 = vadd.f32 %v2818_v13, %v6618_v22  ;;  %v2820_v21 = vpop.f32.mrb[131].mxu1 }
 0x78c   : > { %7740 = vst [vmem:[#allocation41_spill] sm:$0xff] %v6903_v1  ;;  %v6909_v9 = vadd.f32 %v2820_v21, %v6306_v30 }
 0x78e   : > { %7741 = vst [vmem:[#allocation42_spill] sm:$0xff] %v6909_v9 }
 0x790   : > { %v2824_v31 = vpop.f32.mrb[132].mxu1 }
 0x791   : > { %v2826_v45 = vpop.f32.mrb[133].mxu1  ;;  %v6916_v16 = vadd.f32 %v2824_v31, %v6618_v22 }
 0x792   : > { %v6919_v23 = vadd.f32 %v2826_v45, %v6306_v30  ;;  %v2828_v13 = vpop.f32.mrb[134].mxu1  ;;  %v4607_v45 = vld [vmem:[%s7744_s8] ss:$0 sm:$0xff] }
 0x793   : > { %v6922_v54 = vadd.f32 %v2828_v13, %v6618_v22  ;;  %v2830_v21 = vpop.f32.mrb[135].mxu1 }
 0x794   : > { %7742 = vst [vmem:[#allocation43_spill] sm:$0xff] %v6919_v23  ;;  %v6925_v10 = vadd.f32 %v2830_v21, %v6306_v30 }
 0x796   : > { %7743 = vst [vmem:[#allocation44_spill] sm:$0xff] %v6925_v10 }
 0x798   : > { %v2834_v12 = vpop.f32.mrb[136].mxu1 }
 0x799   : > { %v2836_v31 = vpop.f32.mrb[137].mxu1  ;;  %v6935_v62 = vadd.f32 %v2834_v12, %v6618_v22 }
 0x79a   : > { %v6938_v13 = vadd.f32 %v2836_v31, %v6306_v30  ;;  %v2838_v21 = vpop.f32.mrb[138].mxu1 }
 0x79b   : > { %v6941_v9 = vadd.f32 %v2838_v21, %v6618_v22  ;;  %v2840_v24 = vpop.f32.mrb[139].mxu1 }
 0x79c   : > { %7745 = vst [vmem:[#allocation45_spill] sm:$0xff] %v6938_v13  ;;  %v6946_v23 = vadd.f32 %v2840_v24, %v6306_v30 }
 0x79e   : > { %7746 = vst [vmem:[#allocation46_spill] sm:$0xff] %v6946_v23 }
 0x7a0   : > { %v2844_v21 = vpop.f32.mrb[140].mxu1 }
 0x820   : > { %v2302_v1 = vpop.f32.mrb[40].mxu0 }
 0x821   : > { %v6943_v51 = vadd.f32 %v4607_v45, %v2302_v1  ;;  %v5006_v63 = vpop.f32.mrb[41].mxu0  ;;  %v2846_v1 = vpop.f32.mrb[141].mxu1 }
 0x822   : > { %v2305_v10 = vpop.f32.mrb[42].mxu0  ;;  %v6958_v63 = vadd.f32 %v2844_v21, %v6618_v22  ;;  %v2848_v24 = vpop.f32.mrb[142].mxu1 }
 0x823   : > { %v3035_v31 = vrot.slane %v6943_v51, %v6314_v35  ;;  %v5007_v53 = vpop.f32.mrb[43].mxu0  ;;  %v6963_v45 = vadd.f32 %v2848_v24, %v6618_v22  ;;  %v2850_v12 = vpop.f32.mrb[143].mxu1 }
 0x824   : > { %v6966_v53 = vadd.f32 %v2846_v1, %v6306_v30  ;;  %v6977_v23 = vadd.f32 %v2850_v12, %v6306_v30  ;;  %v2854_v24 = vpop.f32.mrb[144].mxu1 }
 0x825   : > { %v6955_v29 = vrot.slane %v3035_v31, %v6314_v35  ;;  %v6982_v1 = vadd.f32 %v2854_v24, %v6618_v22  ;;  %v2856_v2 = vpop.f32.mrb[145].mxu1 }
 0x826   : > { %7747 = vst [vmem:[#allocation47_spill] sm:$0xff] %v6966_v53  ;;  %7748 = vst [vmem:[#allocation48_spill] sm:$0xff] %v6977_v23  ;;  %v6990_v12 = vadd.f32 %v2856_v2, %v6306_v30  ;;  %v7753_v53 = vpack.c.bf16 %v6727_v7, %v6723_v3  ;;  %v3043_v7 = vcombine.high %v3035_v31, %v3035_v31 }
 0x827   : > { %v3080_v10 = vrot.slane %v6955_v29, %v6323_v38 }
 0x828   : > { %7751 = vst [vmem:[#allocation49_spill] sm:$0xff] %v6990_v12  ;;  %v7033_v55 = vrot.slane %v3043_v7, %v6314_v35 }
 0x829   : > { %v3117_v13 = vmul.f32 %v6971_v41, %v3080_v10  ;;  %v7750_v10 = vmov 0.0  }
 0x82b   : > { %v3125_v4 = vpack.c.bf16 %v3117_v13, %v3117_v13  ;;  %v2858_v13 = vpop.f32.mrb[146].mxu1 }
 0x82c   : > { %v6994_v37 = vadd.f32 %v2858_v13, %v6618_v22 }
 0x82d   : > { %5017 = vmatmul.mubr.bf16.vlgmr.msra.gmra.mrb[44].mxu0 %v3125_v4  ;;  %v2860_v4 = vpop.f32.mrb[147].mxu1 }
 0x82e   : > { %5021 = vmatpush3.bf16.xpose.msra.mxu0 %v7749_v56  ;;  %5028 = vmatprep.mubr.msk.bf16.mxu0 %vm5868_vm0, %v7750_v10  ;;  %v6997_v24 = vadd.f32 %v2860_v4, %v6306_v30  ;;  %v2864_v56 = vpop.f32.mrb[148].mxu1 }
 0x82f   : > { %5022 = vmatprep.subr.bf16.mxu0 %v7750_v10  ;;  %v2866_v21 = vpop.f32.mrb[149].mxu1  ;;  %v7004_v2 = vadd.f32 %v2864_v56, %v6618_v22 }
 0x830   : > { %7752 = vst [vmem:[#allocation50_spill] sm:$0xff] %v6997_v24  ;;  %v7010_v13 = vadd.f32 %v2866_v21, %v6306_v30  ;;  %v2868_v4 = vpop.f32.mrb[150].mxu1 }
 0x831   : > { %v7014_v57 = vadd.f32 %v2868_v4, %v6618_v22  ;;  %v2870_v23 = vpop.f32.mrb[151].mxu1  ;;  %v7755_v4 = vpack.c.bf16 %v6738_v14, %v6733_v60 }
 0x832   : > { %7754 = vst [vmem:[#allocation51_spill] sm:$0xff] %v7010_v13  ;;  %v7017_v32 = vadd.f32 %v2870_v23, %v6306_v30 }
 0x836   : > { %5023 = vmatpush3.bf16.xpose.msra.mxu0 %v7753_v53  ;;  %v2874_v53 = vpop.f32.mrb[152].mxu1 }
 0x837   : > { %5024 = vmatprep.subr.bf16.mxu0 %v7750_v10  ;;  %v2876_v21 = vpop.f32.mrb[153].mxu1  ;;  %v7024_v12 = vadd.f32 %v2874_v53, %v6618_v22 }
 0x838   : > { %v7030_v24 = vadd.f32 %v2876_v21, %v6306_v30  ;;  %v2878_v23 = vpop.f32.mrb[154].mxu1  ;;  %v3084_v21 = vrot.slane %v7033_v55, %v6323_v38 }
 0x839   : > { %v7037_v31 = vadd.f32 %v2878_v23, %v6618_v22  ;;  %v2880_v3 = vpop.f32.mrb[155].mxu1  ;;  %v7758_v23 = vpack.c.bf16 %v6749_v33, %v6744_v59 }
 0x83a   : > { %7756 = vst [vmem:[#allocation52_spill] sm:$0xff] %v7030_v24  ;;  %v7040_v53 = vadd.f32 %v2880_v3, %v6306_v30  ;;  %v2884_v7 = vpop.f32.mrb[156].mxu1  ;;  %v3118_v60 = vmul.f32 %v6971_v41, %v3084_v21 }
 0x83b   : > { %v7049_v56 = vadd.f32 %v2884_v7, %v6618_v22 }
 0x83c   : > { %7757 = vst [vmem:[#allocation53_spill] sm:$0xff] %v7040_v53  ;;  %v3126_v33 = vpack.c.bf16 %v3118_v60, %v3118_v60 }
 0x83e   : > { %5025 = vmatpush3.bf16.xpose.msra.mxu0 %v7755_v4  ;;  %v2886_v4 = vpop.f32.mrb[157].mxu1 }
 0x83f   : > { %5026 = vmatprep.subr.bf16.mxu0 %v7750_v10  ;;  %v7055_v3 = vadd.f32 %v2886_v4, %v6306_v30  ;;  %v2888_v13 = vpop.f32.mrb[158].mxu1 }
 0x840   : > { %v7060_v14 = vadd.f32 %v2888_v13, %v6618_v22  ;;  %v2890_v24 = vpop.f32.mrb[159].mxu1  ;;  %v7761_v13 = vpack.c.bf16 %v6762_v42, %v6755_v27 }
 0x841   : > { %7759 = vst [vmem:[#allocation54_spill] sm:$0xff] %v7055_v3  ;;  %v7063_v53 = vadd.f32 %v2890_v24, %v6306_v30  ;;  %v2894_v4 = vpop.f32.mrb[160].mxu1  ;;  %v7764_v3 = vpack.c.bf16 %v6778_v43, %v6772_v61 }
 0x842   : > { %v7070_v21 = vadd.f32 %v2894_v4, %v6618_v22 }
 0x843   : > { %7760 = vst [vmem:[#allocation55_spill] sm:$0xff] %v7063_v53 }
 0x846   : > { %5027 = vmatpush3.bf16.xpose.msra.mxu0 %v7758_v23  ;;  %v2896_v23 = vpop.f32.mrb[161].mxu1 }
 0x847   : > { %5032 = vmatprep.subr.bf16.mxu0 %v7750_v10  ;;  %v7078_v24 = vadd.f32 %v2896_v23, %v6306_v30  ;;  %v2898_v7 = vpop.f32.mrb[162].mxu1 }
 0x848   : > { %v7082_v60 = vadd.f32 %v2898_v7, %v6618_v22 }
 0x849   : > { %7762 = vst [vmem:[#allocation56_spill] sm:$0xff] %v7078_v24  ;;  %v7767_v24 = vpack.c.bf16 %v6794_v18, %v6788_v52 }
 0x84d   : > { %5029 = vmatmul.mubr.bf16.vlgmr.msra.gmra.mrb[48].mxu0 %v3126_v33  ;;  %v2900_v33 = vpop.f32.mrb[163].mxu1 }
 0x84e   : > { %5033 = vmatpush3.bf16.xpose.msra.mxu0 %v7761_v13  ;;  %5040 = vmatprep.mubr.msk.bf16.mxu0 %vm5868_vm0, %v7750_v10  ;;  %v7085_v4 = vadd.f32 %v2900_v33, %v6306_v30  ;;  %v2904_v13 = vpop.f32.mrb[164].mxu1 }
 0x84f   : > { %5034 = vmatprep.subr.bf16.mxu0 %v7750_v10  ;;  %v2906_v59 = vpop.f32.mrb[165].mxu1  ;;  %v7092_v23 = vadd.f32 %v2904_v13, %v6618_v22 }
 0x850   : > { %7763 = vst [vmem:[#allocation57_spill] sm:$0xff] %v7085_v4  ;;  %v7098_v7 = vadd.f32 %v2906_v59, %v6306_v30  ;;  %v2908_v33 = vpop.f32.mrb[166].mxu1  ;;  %v3073_v4 = vcombine.high %v6955_v29, %v6955_v29 }
 0x851   : > { %v7102_v27 = vadd.f32 %v2908_v33, %v6618_v22  ;;  %v2910_v53 = vpop.f32.mrb[167].mxu1 }
 0x852   : > { %7765 = vst [vmem:[#allocation58_spill] sm:$0xff] %v7098_v7  ;;  %v7105_v42 = vadd.f32 %v2910_v53, %v6306_v30  ;;  %v2914_v43 = vpop.f32.mrb[168].mxu1 }
 0x853   : > { %v7112_v59 = vadd.f32 %v2914_v43, %v6618_v22 }
 0x854   : > { %7766 = vst [vmem:[#allocation59_spill] sm:$0xff] %v7105_v42 }
 0x856   : > { %5035 = vmatpush3.bf16.xpose.msra.mxu0 %v7764_v3  ;;  %v2916_v3 = vpop.f32.mrb[169].mxu1 }
 0x857   : > { %5036 = vmatprep.subr.bf16.mxu0 %v7750_v10  ;;  %v7118_v33 = vadd.f32 %v2916_v3, %v6306_v30  ;;  %v2918_v53 = vpop.f32.mrb[170].mxu1 }
 0x858   : > { %v7124_v61 = vadd.f32 %v2918_v53, %v6618_v22  ;;  %v2920_v13 = vpop.f32.mrb[171].mxu1  ;;  %v7769_v53 = vpack.c.bf16 %v6810_v8, %v6804_v36 }
 0x859   : > { %7768 = vst [vmem:[#allocation60_spill] sm:$0xff] %v7118_v33  ;;  %v7127_v43 = vadd.f32 %v2920_v13, %v6306_v30  ;;  %v2924_v3 = vpop.f32.mrb[172].mxu1 }
 0x85a   : > { %v2926_v7 = vpop.f32.mrb[173].mxu1  ;;  %v7135_v29 = vadd.f32 %v2924_v3, %v6618_v22 }
 0x85b   : > { %v7141_v13 = vadd.f32 %v2926_v7, %v6306_v30  ;;  %v2928_v42 = vpop.f32.mrb[174].mxu1 }
 0x85c   : > { %v7146_v18 = vadd.f32 %v2928_v42, %v6618_v22  ;;  %v7772_v42 = vpack.c.bf16 %v6826_v6, %v6820_v5 }
 0x85d   : > { %7770 = vst [vmem:[#allocation61_spill] sm:$0xff] %v7141_v13  ;;  %v7775_v13 = vpack.c.bf16 %v6842_v47, %v6836_v0 }
 0x85e   : > { %5037 = vmatpush3.bf16.xpose.msra.mxu0 %v7767_v24  ;;  %v3088_v24 = vrot.slane %v3073_v4, %v6323_v38  ;;  %v2930_v4 = vpop.f32.mrb[175].mxu1 }
 0x85f   : > { %5038 = vmatprep.subr.bf16.mxu0 %v7750_v10  ;;  %v7149_v33 = vadd.f32 %v2930_v4, %v6306_v30  ;;  %v2934_v7 = vpop.f32.mrb[176].mxu1 }
 0x860   : > { %v3119_v52 = vmul.f32 %v6971_v41, %v3088_v24  ;;  %v7156_v24 = vadd.f32 %v2934_v7, %v6618_v22 }
 0x861   : > { %7771 = vst [vmem:[#allocation62_spill] sm:$0xff] %v7149_v33 }
 0x862   : > { %v3127_v8 = vpack.c.bf16 %v3119_v52, %v3119_v52 }
 0x866   : > { %5039 = vmatpush3.bf16.xpose.msra.mxu0 %v7769_v53  ;;  %v2936_v53 = vpop.f32.mrb[177].mxu1 }
 0x867   : > { %5044 = vmatprep.subr.bf16.mxu0 %v7750_v10  ;;  %v7164_v4 = vadd.f32 %v2936_v53, %v6306_v30  ;;  %v2938_v3 = vpop.f32.mrb[178].mxu1 }
 0x868   : > { %v7168_v52 = vadd.f32 %v2938_v3, %v6618_v22 }
 0x869   : > { %7773 = vst [vmem:[#allocation63_spill] sm:$0xff] %v7164_v4  ;;  %v7776_v4 = vpack.c.bf16 %v6858_v40, %v6852_v46 }
 0x86d   : > { %5041 = vmatmul.mubr.bf16.vlgmr.msra.gmra.mrb[52].mxu0 %v3127_v8  ;;  %v2940_v8 = vpop.f32.mrb[179].mxu1 }
 0x86e   : > { %5045 = vmatpush3.bf16.xpose.msra.mxu0 %v7772_v42  ;;  %5052 = vmatprep.mubr.msk.bf16.mxu0 %vm5868_vm0, %v7750_v10  ;;  %v7171_v7 = vadd.f32 %v2940_v8, %v6306_v30  ;;  %v2944_v42 = vpop.f32.mrb[180].mxu1 }
 0x86f   : > { %5046 = vmatprep.subr.bf16.mxu0 %v7750_v10  ;;  %v2946_v36 = vpop.f32.mrb[181].mxu1  ;;  %v7178_v53 = vadd.f32 %v2944_v42, %v6618_v22 }
 0x870   : > { %7774 = vst [vmem:[#allocation64_spill] sm:$0xff] %v7171_v7  ;;  %v7184_v3 = vadd.f32 %v2946_v36, %v6306_v30  ;;  %v2948_v8 = vpop.f32.mrb[182].mxu1  ;;  %v3075_v7 = vcombine.high %v7033_v55, %v7033_v55  ;;  %v7777_v55 = vpack.c.bf16 %v6874_v17, %v6868_v48  ;;  %v3028_v17 = vcombine.high %v6943_v51, %v6943_v51 }
 0x871   : > { %v7188_v5 = vadd.f32 %v2948_v8, %v6618_v22  ;;  %v2950_v33 = vpop.f32.mrb[183].mxu1 }
 0x872   : > { %v7191_v6 = vadd.f32 %v2950_v33, %v6306_v30  ;;  %v2954_v0 = vpop.f32.mrb[184].mxu1  ;;  %v3042_v48 = vrot.slane %v3028_v17, %v6314_v35 }
 0x873   : > { %v7198_v36 = vadd.f32 %v2954_v0, %v6618_v22 }
 0x876   : > { %5047 = vmatpush3.bf16.xpose.msra.mxu0 %v7775_v13  ;;  %v2956_v13 = vpop.f32.mrb[185].mxu1 }
 0x877   : > { %5048 = vmatprep.subr.bf16.mxu0 %v7750_v10  ;;  %v7204_v8 = vadd.f32 %v2956_v13, %v6306_v30  ;;  %v2958_v33 = vpop.f32.mrb[186].mxu1 }
 0x878   : > { %v7210_v47 = vadd.f32 %v2958_v33, %v6618_v22  ;;  %v2960_v42 = vpop.f32.mrb[187].mxu1 }
 0x879   : > { %v7213_v0 = vadd.f32 %v2960_v42, %v6306_v30  ;;  %v7778_v30 = vpack.c.bf16 %v6890_v15, %v6884_v58  ;;  %v7780_v15 = vpack.c.bf16 %v6922_v54, %v6916_v16  ;;  %v3058_v58 = vrot.slane %v3042_v48, %v6314_v35 }
 0x87a   : > { %v3025_v40 = vpack.c.bf16 %v7210_v47, %v7198_v36  ;;  %v7782_v16 = vpack.c.bf16 %v6963_v45, %v6958_v63  ;;  %v7783_v54 = vpack.c.bf16 %v6994_v37, %v6982_v1  ;;  %v7785_v45 = vpack.c.bf16 %v7037_v31, %v7024_v12 }
 0x87b   : > { %v3026_v46 = vpack.c.bf16 %v7213_v0, %v7204_v8  ;;  %v3096_v42 = vrot.slane %v3058_v58, %v6323_v38  ;;  %v7788_v12 = vpack.c.bf16 %v7102_v27, %v7092_v23  ;;  %v7789_v31 = vpack.c.bf16 %v7124_v61, %v7112_v59 }
 0x87c   : > { %v7791_v27 = vpack.c.bf16 %v7168_v52, %v7156_v24  ;;  %v7792_v23 = vpack.c.bf16 %v7188_v5, %v7178_v53  ;;  %v7793_v53 = vpack.c.bf16 %v6628_v39, %v6624_v28  ;;  %v7795_v47 = vpack.c.bf16 %v6689_v20, %v6685_v19 }
 0x87d   : > { %v3121_v51 = vmul.f32 %v6971_v41, %v3096_v42  ;;  %v7796_v28 = vpack.c.bf16 %v6702_v34, %v6697_v25 }
 0x87e   : > { %5049 = vmatpush3.bf16.xpose.msra.mxu0 %v7776_v4  ;;  %v3092_v4 = vrot.slane %v3075_v7, %v6323_v38  ;;  %v7779_v7 = vpack.c.bf16 %v6906_v44, %v6900_v50  ;;  %v7781_v44 = vpack.c.bf16 %v6941_v9, %v6935_v62  ;;  %v3044_v9 = vcombine.high %v3042_v48, %v3042_v48 }
 0x87f   : > { %5050 = vmatprep.subr.bf16.mxu0 %v7750_v10  ;;  %v3129_v50 = vpack.c.bf16 %v3121_v51, %v3121_v51  ;;  %v7784_v62 = vpack.c.bf16 %v7014_v57, %v7004_v2  ;;  %v7786_v57 = vpack.c.bf16 %v7060_v14, %v7049_v56  ;;  %v3074_v2 = vcombine.high %v3058_v58, %v3058_v58 }
 0x880   : > { %v3120_v13 = vmul.f32 %v6971_v41, %v3092_v4  ;;  %v3072_v33 = vrot.slane %v3044_v9, %v6314_v35  ;;  %v7787_v35 = vpack.c.bf16 %v7082_v60, %v7070_v21  ;;  %v7790_v60 = vpack.c.bf16 %v7146_v18, %v7135_v29 }
 0x881   : > { %v3104_v56 = vrot.slane %v3074_v2, %v6323_v38 }
 0x882   : > { %v3128_v22 = vpack.c.bf16 %v3120_v13, %v3120_v13  ;;  %v3100_v63 = vrot.slane %v3072_v33, %v6323_v38  ;;  %v3076_v61 = vcombine.high %v3072_v33, %v3072_v33 }
 0x883   : > { %v3123_v14 = vmul.f32 %v6971_v41, %v3104_v56 }
 0x884   : > { %v3122_v37 = vmul.f32 %v6971_v41, %v3100_v63  ;;  %v3108_v24 = vrot.slane %v3076_v61, %v6323_v38  ;;  %v7794_v38 = vpack.c.bf16 %v6676_v26, %v6672_v11 }
 0x885   : > { %v3131_v21 = vpack.c.bf16 %v3123_v14, %v3123_v14 }
 0x886   : > { %5051 = vmatpush3.bf16.xpose.msra.mxu0 %v7777_v55  ;;  %v3130_v1 = vpack.c.bf16 %v3122_v37, %v3122_v37  ;;  %v3124_v52 = vmul.f32 %v6971_v41, %v3108_v24 }
 0x887   : > { %5056 = vmatprep.subr.bf16.mxu0 %v7750_v10 }
 0x888   : > { %v3132_v5 = vpack.c.bf16 %v3124_v52, %v3124_v52 }
 0x88d   : > { %5053 = vmatmul.mubr.bf16.vlgmr.msra.gmra.mrb[56].mxu0 %v3128_v22 }
 0x88e   : > { %5057 = vmatpush3.bf16.xpose.msra.mxu0 %v7778_v30  ;;  %5064 = vmatprep.mubr.msk.bf16.mxu0 %vm5868_vm0, %v7750_v10 }
 0x88f   : > { %5058 = vmatprep.subr.bf16.mxu0 %v7750_v10 }
 0x896   : > { %5059 = vmatpush3.bf16.xpose.msra.mxu0 %v7779_v7 }
 0x897   : > { %5060 = vmatprep.subr.bf16.mxu0 %v7750_v10 }
 0x89e   : > { %5061 = vmatpush3.bf16.xpose.msra.mxu0 %v7780_v15 }
 0x89f   : > { %5062 = vmatprep.subr.bf16.mxu0 %v7750_v10 }
 0x8a6   : > { %5063 = vmatpush3.bf16.xpose.msra.mxu0 %v7781_v44 }
 0x8a7   : > { %5068 = vmatprep.subr.bf16.mxu0 %v7750_v10 }
 0x8ad   : > { %5065 = vmatmul.mubr.bf16.vlgmr.msra.gmra.mrb[60].mxu0 %v3129_v50 }
 0x8ae   : > { %5069 = vmatpush3.bf16.xpose.msra.mxu0 %v7782_v16  ;;  %5076 = vmatprep.mubr.msk.bf16.mxu0 %vm5868_vm0, %v7750_v10 }
 0x8af   : > { %5070 = vmatprep.subr.bf16.mxu0 %v7750_v10 }
 0x8b6   : > { %5071 = vmatpush3.bf16.xpose.msra.mxu0 %v7783_v54 }
 0x8b7   : > { %5072 = vmatprep.subr.bf16.mxu0 %v7750_v10 }
 0x8be   : > { %5073 = vmatpush3.bf16.xpose.msra.mxu0 %v7784_v62 }
 0x8bf   : > { %5074 = vmatprep.subr.bf16.mxu0 %v7750_v10 }
 0x8c6   : > { %5075 = vmatpush3.bf16.xpose.msra.mxu0 %v7785_v45 }
 0x8c7   : > { %5080 = vmatprep.subr.bf16.mxu0 %v7750_v10 }
 0x8cd   : > { %5077 = vmatmul.mubr.bf16.vlgmr.msra.gmra.mrb[64].mxu0 %v3130_v1 }
 0x8ce   : > { %5081 = vmatpush3.bf16.xpose.msra.mxu0 %v7786_v57  ;;  %5088 = vmatprep.mubr.msk.bf16.mxu0 %vm5868_vm0, %v7750_v10 }
 0x8cf   : > { %5082 = vmatprep.subr.bf16.mxu0 %v7750_v10 }
 0x8d6   : > { %5083 = vmatpush3.bf16.xpose.msra.mxu0 %v7787_v35 }
 0x8d7   : > { %5084 = vmatprep.subr.bf16.mxu0 %v7750_v10 }
 0x8de   : > { %5085 = vmatpush3.bf16.xpose.msra.mxu0 %v7788_v12 }
 0x8df   : > { %5086 = vmatprep.subr.bf16.mxu0 %v7750_v10 }
 0x8e6   : > { %5087 = vmatpush3.bf16.xpose.msra.mxu0 %v7789_v31 }
 0x8e7   : > { %5092 = vmatprep.subr.bf16.mxu0 %v7750_v10 }
 0x8ed   : > { %5089 = vmatmul.mubr.bf16.vlgmr.msra.gmra.mrb[68].mxu0 %v3131_v21 }
 0x8ee   : > { %5093 = vmatpush3.bf16.xpose.msra.mxu0 %v7790_v60  ;;  %5100 = vmatprep.mubr.msk.bf16.mxu0 %vm5868_vm0, %v7750_v10 }
 0x8ef   : > { %5094 = vmatprep.subr.bf16.mxu0 %v7750_v10 }
 0x8f6   : > { %5095 = vmatpush3.bf16.xpose.msra.mxu0 %v7791_v27 }
 0x8f7   : > { %5096 = vmatprep.subr.bf16.mxu0 %v7750_v10 }
 0x8fe   : > { %5097 = vmatpush3.bf16.xpose.msra.mxu0 %v7792_v23 }
 0x8ff   : > { %5098 = vmatprep.subr.bf16.mxu0 %v7750_v10 }
 0x900   : > { %v3167_v59 = vpop.f32.mrb[44].mxu0 }
 0x901   : > { %v5018_v18 = vpop.f32.mrb[45].mxu0  ;;  %v3454_v29 = vsel %vm3453_vm11, %v3167_v59, -inf }
 0x902   : > { %3455 = vmax.xlane.f32.xlu0 %v3454_v29  ;;  %v3170_v4 = vpop.f32.mrb[46].mxu0 }
 0x903   : > { %v5019_v55 = vpop.f32.mrb[47].mxu0 }
 0x906   : > { %5099 = vmatpush3.bf16.xpose.msra.mxu0 %v3025_v40 }
 0x907   : > { %5104 = vmatprep.subr.bf16.mxu0 %v7750_v10 }
 0x90d   : > { %5101 = vmatmul.mubr.bf16.vlgmr.msra.gmra.mrb[72].mxu0 %v3132_v5 }
 0x90e   : > { %5105 = vmatpush3.bf16.msra.mxu0 %v7793_v53  ;;  %5112 = vmatprep.mubr.msk.bf16.mxu0 %vm5868_vm0, %v7750_v10 }
 0x90f   : > { %5106 = vmatprep.subr.bf16.mxu0 %v7750_v10 }
 0x912   : > { %5107 = vmatpush3.bf16.msra.mxu0 %v7794_v38 }
 0x913   : > { %5108 = vmatprep.subr.bf16.mxu0 %v7750_v10 }
 0x916   : > { %5109 = vmatpush3.bf16.msra.mxu0 %v7795_v47 }
 0x917   : > { %5110 = vmatprep.subr.bf16.mxu0 %v7750_v10 }
 0x91a   : > { %5111 = vmatpush3.bf16.msra.mxu0 %v7796_v28 }
 0x91b   : > { %5128 = vmatprep.subr.bf16.mxu0 %v7750_v10 }
 0x920   : > { %v3207_v39 = vpop.f32.mrb[48].mxu0 }
 0x921   : > { %v5030_v36 = vpop.f32.mrb[49].mxu0  ;;  %v3457_v40 = vsel %vm3453_vm11, %v3207_v39, -inf }
 0x922   : > { %3458 = vmax.xlane.f32.xlu1 %v3457_v40  ;;  %v3210_v11 = vpop.f32.mrb[50].mxu0 }
 0x923   : > { %v5031_v26 = vpop.f32.mrb[51].mxu0 }
 0x940   : > { %v3247_v13 = vpop.f32.mrb[52].mxu0 }
 0x941   : > { %v5042_v22 = vpop.f32.mrb[53].mxu0  ;;  %v3460_v19 = vsel %vm3453_vm11, %v3247_v13, -inf }
 0x942   : > { %3461 = vmax.xlane.f32.xlu0 %v3460_v19  ;;  %v3250_v20 = vpop.f32.mrb[54].mxu0 }
 0x943   : > { %v5043_v30 = vpop.f32.mrb[55].mxu0 }
 0x960   : > { %v3287_v7 = vpop.f32.mrb[56].mxu0 }
 0x961   : > { %v5054_v17 = vpop.f32.mrb[57].mxu0  ;;  %v3463_v25 = vsel %vm3453_vm11, %v3287_v7, -inf }
 0x962   : > { %3464 = vmax.xlane.f32.xlu1 %v3463_v25  ;;  %v3290_v34 = vpop.f32.mrb[58].mxu0 }
 0x963   : > { %v5055_v48 = vpop.f32.mrb[59].mxu0 }
 0x980   : > { %v3327_v15 = vpop.f32.mrb[60].mxu0 }
 0x981   : > { %v5066_v58 = vpop.f32.mrb[61].mxu0  ;;  %v3466_v42 = vsel %vm3453_vm11, %v3327_v15, -inf }
 0x982   : > { %3467 = vmax.xlane.f32.xlu0 %v3466_v42  ;;  %v3330_v44 = vpop.f32.mrb[62].mxu0 }
 0x983   : > { %v5067_v51 = vpop.f32.mrb[63].mxu0 }
 0x98f   : > { %v3456_v33 = vpop.xlane.xlu0 %3455 }
 0x990   : > { %v3478_v63 = vsub.f32 %v3167_v59, %v3456_v33  ;;  %v7802_v33 = vld [vmem:[#allocation28_spill] sm:$0xff] }
 0x992   : > { %v3486_v45 = vmul.f32 1.442695, %v3478_v63  ;;  %v7803_v63 = vld [vmem:[#allocation27_spill] sm:$0xff] }
 0x994   : > { %5534 = vpow2.f32 %v3486_v45  ;;  %v7804_v45 = vpack.c.bf16 %v7802_v33, %v7803_v63  ;;  %v7836_v33 = vld [vmem:[#allocation49_spill] sm:$0xff] }
 0x99e   : > { %v5535_v35 = vpop.eup %5534 }
 0x99f   : > { %v3502_v56 = vsel %vm3453_vm11, %v5535_v35, 0.0 }
 0x9a0   : > { %v3367_v50 = vpop.f32.mrb[64].mxu0 }
 0x9a1   : > { %v5078_v16 = vpop.f32.mrb[65].mxu0  ;;  %v3469_v54 = vsel %vm3453_vm11, %v3367_v50, -inf }
 0x9a2   : > { %3470 = vmax.xlane.f32.xlu1 %v3469_v54  ;;  %v3370_v9 = vpop.f32.mrb[66].mxu0  ;;  %v7799_v54 = vld [vmem:[#allocation26_spill] sm:$0xff] }
 0x9a3   : > { %v5079_v62 = vpop.f32.mrb[67].mxu0  ;;  %v7800_v9 = vld [vmem:[#allocation25_spill] sm:$0xff] }
 0x9a4   : > { %v7801_v62 = vpack.c.bf16 %v7799_v54, %v7800_v9  ;;  %v7833_v54 = vld [vmem:[#allocation47_spill] sm:$0xff] }
 0x9af   : > { %v3459_v31 = vpop.xlane.xlu1 %3458 }
 0x9b0   : > { %v3479_v21 = vsub.f32 %v3207_v39, %v3459_v31 }
 0x9b2   : > { %v3488_v23 = vmul.f32 1.442695, %v3479_v21 }
 0x9c0   : > { %v3407_v37 = vpop.f32.mrb[68].mxu0 }
 0x9c1   : > { %v5090_v1 = vpop.f32.mrb[69].mxu0  ;;  %v3472_v57 = vsel %vm3453_vm11, %v3407_v37, -inf }
 0x9c2   : > { %3473 = vmax.xlane.f32.xlu0 %v3472_v57  ;;  %v3410_v12 = vpop.f32.mrb[70].mxu0  ;;  %v7805_v57 = vld [vmem:[#allocation30_spill] sm:$0xff] }
 0x9c3   : > { %v5091_v2 = vpop.f32.mrb[71].mxu0 }
 0x9c6   : > { %3503 = vadd.xlane.f32.xlu0 %v3502_v56 }
 0x9cf   : > { %v3462_v14 = vpop.xlane.xlu0 %3461 }
 0x9d0   : > { %v3480_v60 = vsub.f32 %v3247_v13, %v3462_v14 }
 0x9d2   : > { %v3490_v27 = vmul.f32 1.442695, %v3480_v60 }
 0x9d4   : > { %5536 = vpow2.f32 %v3490_v27  ;;  %v7808_v27 = vld [vmem:[#allocation40_spill] sm:$0xff] }
 0x9d5   : > { %5538 = vpow2.f32 %v3488_v23  ;;  %v7809_v23 = vld [vmem:[#allocation39_spill] sm:$0xff] }
 0x9de   : > { %v7336_v61 = vpop.eup %5536 }
 0x9df   : > { %v3508_v59 = vsel %vm3453_vm11, %v7336_v61, 0.0  ;;  %v7341_v55 = vpop.eup %5538 }
 0x9e0   : > { %3509 = vadd.xlane.f32.xlu0 %v3508_v59  ;;  %v3447_v18 = vpop.f32.mrb[72].mxu0  ;;  %v3505_v5 = vsel %vm3453_vm11, %v7341_v55, 0.0  ;;  %v7810_v59 = vpack.c.bf16 %v7808_v27, %v7809_v23  ;;  %v7849_v23 = vld [vmem:[#allocation59_spill] sm:$0xff] }
 0x9e1   : > { %v5102_v29 = vpop.f32.mrb[73].mxu0  ;;  %v3475_v4 = vsel %vm3453_vm11, %v3447_v18, -inf }
 0x9e2   : > { %3476 = vmax.xlane.f32.xlu1 %v3475_v4  ;;  %v3450_v24 = vpop.f32.mrb[74].mxu0 }
 0x9e3   : > { %v5103_v52 = vpop.f32.mrb[75].mxu0  ;;  %v7811_v24 = vld [vmem:[#allocation42_spill] sm:$0xff] }
 0x9e4   : > { %v7812_v52 = vld [vmem:[#allocation41_spill] sm:$0xff] }
 0x9e6   : > { %3506 = vadd.xlane.f32.xlu1 %v3505_v5  ;;  %v7813_v5 = vpack.c.bf16 %v7811_v24, %v7812_v52 }
 0x9ef   : > { %v3465_v53 = vpop.xlane.xlu1 %3464 }
 0x9f0   : > { %v3481_v38 = vsub.f32 %v3287_v7, %v3465_v53  ;;  %v7814_v53 = vld [vmem:[#allocation32_spill] sm:$0xff] }
 0x9f2   : > { %v3492_v47 = vmul.f32 1.442695, %v3481_v38  ;;  %v7815_v38 = vld [vmem:[#allocation31_spill] sm:$0xff] }
 0x9f4   : > { %5540 = vpow2.f32 %v3492_v47  ;;  %v7816_v47 = vpack.c.bf16 %v7814_v53, %v7815_v38  ;;  %v7855_v53 = vld [vmem:[#allocation61_spill] sm:$0xff] }
 0x9fe   : > { %v7345_v28 = vpop.eup %5540 }
 0x9ff   : > { %v3511_v39 = vsel %vm3453_vm11, %v7345_v28, 0.0 }
 0xa00   : > { %3512 = vadd.xlane.f32.xlu1 %v3511_v39  ;;  %v7817_v39 = vld [vmem:[#allocation44_spill] sm:$0xff] }
 0xa0f   : > { %v3468_v36 = vpop.xlane.xlu0 %3467 }
 0xa10   : > { %v3482_v40 = vsub.f32 %v3327_v15, %v3468_v36  ;;  %v7818_v36 = vld [vmem:[#allocation43_spill] sm:$0xff] }
 0xa12   : > { %v3494_v11 = vmul.f32 1.442695, %v3482_v40  ;;  %v7820_v40 = vld [vmem:[#allocation34_spill] sm:$0xff] }
 0xa14   : > { %5542 = vpow2.f32 %v3494_v11  ;;  %v7821_v11 = vld [vmem:[#allocation33_spill] sm:$0xff] }
 0xa1e   : > { %v7349_v26 = vpop.eup %5542 }
 0xa1f   : > { %v3514_v13 = vsel %vm3453_vm11, %v7349_v26, 0.0 }
 0xa20   : > { %3515 = vadd.xlane.f32.xlu0 %v3514_v13  ;;  %v7822_v13 = vpack.c.bf16 %v7820_v40, %v7821_v11 }
 0xa2f   : > { %v3471_v22 = vpop.xlane.xlu1 %3470 }
 0xa30   : > { %v3483_v19 = vsub.f32 %v3367_v50, %v3471_v22  ;;  %v7797_v50 = vld [vmem:[#allocation24_spill] sm:$0xff]  ;;  %v7823_v22 = vld [vmem:[#allocation46_spill] sm:$0xff] }
 0xa31   : > { %v7798_v16 = vpack.c.bf16 %v6765_v49, %v7797_v50 }
 0xa32   : > { %v3496_v20 = vmul.f32 1.442695, %v3483_v19  ;;  %v7824_v19 = vld [vmem:[#allocation45_spill] sm:$0xff] }
 0xa34   : > { %5544 = vpow2.f32 %v3496_v20  ;;  %v7825_v20 = vpack.c.bf16 %v7823_v22, %v7824_v19 }
 0xa3e   : > { %v7353_v30 = vpop.eup %5544 }
 0xa3f   : > { %v3517_v7 = vsel %vm3453_vm11, %v7353_v30, 0.0 }
 0xa40   : > { %3518 = vadd.xlane.f32.xlu1 %v3517_v7  ;;  %v7826_v7 = vld [vmem:[#allocation36_spill] sm:$0xff] }
 0xa4f   : > { %v3474_v17 = vpop.xlane.xlu0 %3473 }
 0xa50   : > { %v3484_v25 = vsub.f32 %v3407_v37, %v3474_v17  ;;  %v7827_v17 = vld [vmem:[#allocation35_spill] sm:$0xff] }
 0xa52   : > { %v3498_v34 = vmul.f32 1.442695, %v3484_v25  ;;  %v7828_v25 = vpack.c.bf16 %v7826_v7, %v7827_v17 }
 0xa53   : > { %v3504_v48 = vpop.xlane.xlu0 %3503 }
 0xa54   : > { %5546 = vpow2.f32 %v3498_v34 }
 0xa55   : > { %5548 = vrcp.f32 %v3504_v48  ;;  %v7829_v48 = vld [vmem:[#allocation38_spill] sm:$0xff] }
 0xa5e   : > { %v7357_v15 = vpop.eup %5546 }
 0xa5f   : > { %v5549_v58 = vpop.eup %5548  ;;  %v3520_v42 = vsel %vm3453_vm11, %v7357_v15, 0.0 }
 0xa60   : > { %v3534_v44 = vmul.f32 %v5549_v58, %v5535_v35  ;;  %3521 = vadd.xlane.f32.xlu0 %v3520_v42  ;;  %v7806_v35 = vld [vmem:[#allocation29_spill] sm:$0xff] }
 0xa61   : > { %v7807_v12 = vpack.c.bf16 %v7805_v57, %v7806_v35  ;;  %v7830_v58 = vld [vmem:[#allocation37_spill] sm:$0xff] }
 0xa62   : > { %v3542_v51 = vpack.c.bf16 %v3534_v44, %v3534_v44  ;;  %v7831_v42 = vpack.c.bf16 %v7829_v48, %v7830_v58 }
 0xa64   : > { %5113 = vmatmul.mubr.msk.bf16.vlgmr.msra.gmra.mrb[76].mxu0 %vm3550_vm12, %v3542_v51 }
 0xa65   : > { %5129 = vmatpush3.bf16.msra.mxu0 %v7798_v16  ;;  %5136 = vmatprep.mubr.msk.bf16.mxu0 %vm5868_vm0, %v7750_v10  ;;  %v7832_v16 = vld [vmem:[#allocation48_spill] sm:$0xff] }
 0xa66   : > { %5130 = vmatprep.subr.bf16.mxu0 %v7750_v10  ;;  %v7834_v9 = vpack.c.bf16 %v7832_v16, %v7833_v54 }
 0xa69   : > { %5131 = vmatpush3.bf16.msra.mxu0 %v7801_v62  ;;  %v7835_v62 = vld [vmem:[#allocation50_spill] sm:$0xff] }
 0xa6a   : > { %5132 = vmatprep.subr.bf16.mxu0 %v7750_v10  ;;  %v7837_v63 = vpack.c.bf16 %v7835_v62, %v7836_v33 }
 0xa6d   : > { %5133 = vmatpush3.bf16.msra.mxu0 %v7804_v45  ;;  %v3510_v37 = vpop.xlane.xlu0 %3509 }
 0xa6e   : > { %5550 = vrcp.f32 %v3510_v37  ;;  %5134 = vmatprep.subr.bf16.mxu0 %v7750_v10  ;;  %v7840_v37 = vld [vmem:[#allocation53_spill] sm:$0xff] }
 0xa6f   : > { %v3477_v49 = vpop.xlane.xlu1 %3476 }
 0xa70   : > { %v3485_v1 = vsub.f32 %v3447_v18, %v3477_v49  ;;  %v7841_v49 = vld [vmem:[#allocation52_spill] sm:$0xff] }
 0xa71   : > { %5135 = vmatpush3.bf16.msra.mxu0 %v7807_v12 }
 0xa72   : > { %v3500_v2 = vmul.f32 1.442695, %v3485_v1  ;;  %5152 = vmatprep.subr.bf16.mxu0 %v7750_v10  ;;  %v7842_v1 = vpack.c.bf16 %v7840_v37, %v7841_v49 }
 0xa73   : > { %v3507_v56 = vpop.xlane.xlu1 %3506 }
 0xa74   : > { %5552 = vpow2.f32 %v3500_v2 }
 0xa75   : > { %5554 = vrcp.f32 %v3507_v56  ;;  %v7843_v56 = vld [vmem:[#allocation55_spill] sm:$0xff] }
 0xa78   : > { %v5551_v31 = vpop.eup %5550 }
 0xa79   : > { %v3536_v14 = vmul.f32 %v5551_v31, %v7336_v61  ;;  %v7844_v31 = vld [vmem:[#allocation54_spill] sm:$0xff] }
 0xa7b   : > { %v3544_v21 = vpack.c.bf16 %v3536_v14, %v3536_v14  ;;  %v7846_v14 = vld [vmem:[#allocation57_spill] sm:$0xff] }
 0xa7d   : > { %5137 = vmatmul.mubr.msk.bf16.vlgmr.msra.gmra.mrb[80].mxu0 %vm3550_vm12, %v3544_v21  ;;  %v7847_v21 = vld [vmem:[#allocation56_spill] sm:$0xff] }
 0xa7e   : > { %v7382_v60 = vpop.eup %5552  ;;  %5153 = vmatpush3.bf16.msra.mxu0 %v7810_v59  ;;  %5160 = vmatprep.mubr.msk.bf16.mxu0 %vm5868_vm0, %v7750_v10  ;;  %v7848_v27 = vpack.c.bf16 %v7846_v14, %v7847_v21  ;;  %v5477_v21 = vld [vmem:[#allocation11 + $0x48] sm:$0xff]  }
 0xa7f   : > { %v5555_v18 = vpop.eup %5554  ;;  %5154 = vmatprep.subr.bf16.mxu0 %v7750_v10  ;;  %v3523_v29 = vsel %vm3453_vm11, %v7382_v60, 0.0 }
 0xa80   : > { %v3535_v61 = vmul.f32 %v5555_v18, %v7341_v55  ;;  %3524 = vadd.xlane.f32.xlu1 %v3523_v29  ;;  %v7819_v55 = vpack.c.bf16 %v7817_v39, %v7818_v36  ;;  %v7852_v18 = vld [vmem:[#allocation60_spill] sm:$0xff] }
 0xa81   : > { %v7853_v29 = vpack.c.bf16 %v7127_v43, %v7852_v18  ;;  %v7857_v43 = vld [vmem:[#allocation64_spill] sm:$0xff] }
 0xa82   : > { %v3543_v4 = vpack.c.bf16 %v3535_v61, %v3535_v61  ;;  %5155 = vmatpush3.bf16.msra.mxu0 %v7813_v5  ;;  %v7854_v5 = vld [vmem:[#allocation62_spill] sm:$0xff] }
 0xa83   : > { %5156 = vmatprep.subr.bf16.mxu0 %v7750_v10  ;;  %v7856_v38 = vpack.c.bf16 %v7854_v5, %v7855_v53  ;;  %v5478_v5 = vld [vmem:[#allocation11 + $0x50] sm:$0xff]  }
 0xa84   : > { %5125 = vmatmul.mubr.msk.bf16.vlgmr.msra.gmra.mrb[188].mxu1 %vm3550_vm12, %v3543_v4 }
 0xa85   : > { %5141 = vmatpush3.bf16.msra.mxu1 %v7816_v47  ;;  %5148 = vmatprep.mubr.msk.bf16.mxu1 %vm5868_vm0, %v7750_v10  ;;  %v7858_v47 = vld [vmem:[#allocation63_spill] sm:$0xff] }
 0xa86   : > { %5157 = vmatpush3.bf16.msra.mxu0 %v7819_v55  ;;  %5142 = vmatprep.subr.bf16.mxu1 %v7750_v10  ;;  %v7859_v39 = vpack.c.bf16 %v7857_v43, %v7858_v47 }
 0xa87   : > { %5158 = vmatprep.subr.bf16.mxu0 %v7750_v10 }
 0xa89   : > { %5143 = vmatpush3.bf16.msra.mxu1 %v7822_v13 }
 0xa8a   : > { %5159 = vmatpush3.bf16.msra.mxu0 %v7825_v20  ;;  %5144 = vmatprep.subr.bf16.mxu1 %v7750_v10 }
 0xa8b   : > { %5176 = vmatprep.subr.bf16.mxu0 %v7750_v10 }
 0xa8d   : > { %5145 = vmatpush3.bf16.msra.mxu1 %v7828_v25  ;;  %v3513_v34 = vpop.xlane.xlu1 %3512 }
 0xa8e   : > { %5556 = vrcp.f32 %v3513_v34  ;;  %5146 = vmatprep.subr.bf16.mxu1 %v7750_v10 }
 0xa91   : > { %5147 = vmatpush3.bf16.msra.mxu1 %v7831_v42 }
 0xa92   : > { %5164 = vmatprep.subr.bf16.mxu1 %v7750_v10 }
 0xa98   : > { %v5557_v44 = vpop.eup %5556 }
 0xa99   : > { %v3537_v51 = vmul.f32 %v5557_v44, %v7345_v28  ;;  %v7838_v28 = vld [vmem:[#allocation51_spill] sm:$0xff] }
 0xa9a   : > { %v7839_v45 = vpack.c.bf16 %v7017_v32, %v7838_v28  ;;  %v7845_v32 = vpack.c.bf16 %v7843_v56, %v7844_v31 }
 0xa9b   : > { %v3545_v50 = vpack.c.bf16 %v3537_v51, %v3537_v51 }
 0xa9d   : > { %5149 = vmatmul.mubr.msk.bf16.vlgmr.msra.gmra.mrb[192].mxu1 %vm3550_vm12, %v3545_v50 }
 0xa9e   : > { %5165 = vmatpush3.bf16.msra.mxu1 %v7834_v9  ;;  %5172 = vmatprep.mubr.msk.bf16.mxu1 %vm5868_vm0, %v7750_v10 }
 0xa9f   : > { %5166 = vmatprep.subr.bf16.mxu1 %v7750_v10 }
 0xaa2   : > { %5167 = vmatpush3.bf16.msra.mxu1 %v7837_v63 }
 0xaa3   : > { %5168 = vmatprep.subr.bf16.mxu1 %v7750_v10 }
 0xaa6   : > { %5169 = vmatpush3.bf16.msra.mxu1 %v7839_v45 }
 0xaa7   : > { %5170 = vmatprep.subr.bf16.mxu1 %v7750_v10 }
 0xaaa   : > { %5171 = vmatpush3.bf16.msra.mxu1 %v7842_v1 }
 0xaab   : > { %5188 = vmatprep.subr.bf16.mxu1 %v7750_v10 }
 0xaad   : > { %v3516_v57 = vpop.xlane.xlu0 %3515 }
 0xaae   : > { %5558 = vrcp.f32 %v3516_v57 }
 0xab8   : > { %v5559_v35 = vpop.eup %5558 }
 0xab9   : > { %v3538_v12 = vmul.f32 %v5559_v35, %v7349_v26  ;;  %v7850_v26 = vld [vmem:[#allocation58_spill] sm:$0xff] }
 0xaba   : > { %v7851_v59 = vpack.c.bf16 %v7849_v23, %v7850_v26 }
 0xabb   : > { %v3546_v2 = vpack.c.bf16 %v3538_v12, %v3538_v12 }
 0xabd   : > { %5161 = vmatmul.mubr.msk.bf16.vlgmr.msra.gmra.mrb[84].mxu0 %vm3550_vm12, %v3546_v2 }
 0xabe   : > { %5177 = vmatpush3.bf16.msra.mxu0 %v7845_v32  ;;  %5184 = vmatprep.mubr.msk.bf16.mxu0 %vm5868_vm0, %v7750_v10  ;;  %v5476_v32 = vld [vmem:[#allocation11 + $0x40] sm:$0xff]  }
 0xabf   : > { %5178 = vmatprep.subr.bf16.mxu0 %v7750_v10 }
 0xac2   : > { %5179 = vmatpush3.bf16.msra.mxu0 %v7848_v27 }
 0xac3   : > { %5180 = vmatprep.subr.bf16.mxu0 %v7750_v10 }
 0xac6   : > { %5181 = vmatpush3.bf16.msra.mxu0 %v7851_v59 }
 0xac7   : > { %5182 = vmatprep.subr.bf16.mxu0 %v7750_v10 }
 0xaca   : > { %5183 = vmatpush3.bf16.msra.mxu0 %v7853_v29 }
 0xacb   : > { %5200 = vmatprep.subr.bf16.mxu0 %v7750_v10 }
 0xacd   : > { %v3519_v61 = vpop.xlane.xlu1 %3518 }
 0xace   : > { %5560 = vrcp.f32 %v3519_v61 }
 0xad8   : > { %v5561_v4 = vpop.eup %5560 }
 0xad9   : > { %v3539_v24 = vmul.f32 %v5561_v4, %v7353_v30  ;;  %v7860_v30 = vpack.c.bf16 %v7191_v6, %v7184_v3 }
 0xadb   : > { %v3547_v52 = vpack.c.bf16 %v3539_v24, %v3539_v24 }
 0xadd   : > { %5173 = vmatmul.mubr.msk.bf16.vlgmr.msra.gmra.mrb[196].mxu1 %vm3550_vm12, %v3547_v52 }
 0xade   : > { %5189 = vmatpush3.bf16.msra.mxu1 %v7856_v38  ;;  %5196 = vmatprep.mubr.msk.bf16.mxu1 %vm5868_vm0, %v7750_v10 }
 0xadf   : > { %5190 = vmatprep.subr.bf16.mxu1 %v7750_v10 }
 0xae2   : > { %5191 = vmatpush3.bf16.msra.mxu1 %v7859_v39 }
 0xae3   : > { %5192 = vmatprep.subr.bf16.mxu1 %v7750_v10 }
 0xae6   : > { %5193 = vmatpush3.bf16.msra.mxu1 %v7860_v30 }
 0xae7   : > { %5194 = vmatprep.subr.bf16.mxu1 %v7750_v10 }
 0xaea   : > { %5195 = vmatpush3.bf16.msra.mxu1 %v3026_v46 }
 0xaeb   : > { %5220 = vmatprep.subr.bf16.mxu1 %v7750_v10 }
 0xaed   : > { %v3522_v36 = vpop.xlane.xlu0 %3521 }
 0xaee   : > { %5562 = vrcp.f32 %v3522_v36  ;;  %v5479_v36 = vld [vmem:[#allocation11 + $0x58] sm:$0xff]  }
 0xaf8   : > { %v5563_v55 = vpop.eup %5562 }
 0xaf9   : > { %v3540_v40 = vmul.f32 %v5563_v55, %v7357_v15 }
 0xafb   : > { %v3548_v11 = vpack.c.bf16 %v3540_v40, %v3540_v40 }
 0xafd   : > { %5185 = vmatmul.mubr.msk.bf16.vlgmr.msra.gmra.mrb[88].mxu0 %vm3550_vm12, %v3548_v11  ;;  %v5480_v11 = vld [vmem:[#allocation11 + $0x60] sm:$0xff]  }
 0xafe   : > { %5216 = vmatprep.mubr.msk.bf16.mxu0 %vm5868_vm0, %v7750_v10  ;;  %5201 = vmatpush3.bf16.msra.mxu0 %v5476_v32 }
 0xaff   : > { %5202 = vmatprep.subr.bf16.mxu0 %v7750_v10 }
 0xb02   : > { %5203 = vmatpush3.bf16.msra.mxu0 %v5477_v21 }
 0xb03   : > { %5204 = vmatprep.subr.bf16.mxu0 %v7750_v10 }
 0xb06   : > { %5205 = vmatpush3.bf16.msra.mxu0 %v5478_v5 }
 0xb07   : > { %5206 = vmatprep.subr.bf16.mxu0 %v7750_v10 }
 0xb0a   : > { %5207 = vmatpush3.bf16.msra.mxu0 %v5479_v36 }
 0xb0b   : > { %5208 = vmatprep.subr.bf16.mxu0 %v7750_v10 }
 0xb0d   : > { %v3525_v6 = vpop.xlane.xlu1 %3524 }
 0xb0e   : > { %5564 = vrcp.f32 %v3525_v6  ;;  %5209 = vmatpush3.bf16.msra.mxu0 %v5480_v11 }
 0xb0f   : > { %5210 = vmatprep.subr.bf16.mxu0 %v7750_v10 }
 0xb18   : > { %v5565_v3 = vpop.eup %5564 }
 0xb19   : > { %v3541_v13 = vmul.f32 %v5565_v3, %v7382_v60  ;;  %v5481_v3 = vld [vmem:[#allocation11 + $0x68] sm:$0xff]  }
 0xb1a   : > { %5211 = vmatpush3.bf16.msra.mxu0 %v5481_v3 }
 0xb1b   : > { %v3549_v8 = vpack.c.bf16 %v3541_v13, %v3541_v13  ;;  %5212 = vmatprep.subr.bf16.mxu0 %v7750_v10 }
 0xb1d   : > { %5197 = vmatmul.mubr.msk.bf16.vlgmr.msra.gmra.mrb[200].mxu1 %vm3550_vm12, %v3549_v8 }
 0xb1e   : > { %5236 = vmatprep.mubr.msk.bf16.mxu1 %vm5868_vm0, %v7750_v10 }
 0xb37   : > { %v3588_v0 = vpop.f32.mrb[76].mxu0 }
 0xb38   : > { %v5114_v46 = vpop.f32.mrb[77].mxu0  ;;  %v3895_v19 = vmul.f32 %v6971_v41, %v3588_v0  ;;  %v5482_v0 = vld [vmem:[#allocation11 + $0x70] sm:$0xff]  }
 0xb39   : > { %v3591_v15 = vpop.f32.mrb[78].mxu0  ;;  %5213 = vmatpush3.bf16.msra.mxu0 %v5482_v0 }
 0xb3a   : > { %v5115_v22 = vpop.f32.mrb[79].mxu0  ;;  %v3903_v20 = vsel %vm1896_vm3, %v3895_v19, 0.0  ;;  %v5483_v15 = vld [vmem:[#allocation11 + $0x78] sm:$0xff]   ;;  %5214 = vmatprep.subr.bf16.mxu0 %v7750_v10 }
 0xb3b   : > { %v3904_v7 = vrot.slane %v3903_v20, 4 }
 0xb3d   : > { %v3905_v25 = vadd.f32 %v3904_v7, %v3903_v20  ;;  %5215 = vmatpush3.bf16.msra.mxu0 %v5483_v15  ;;  %v5570_v20 = vld [vmem:[%s7608_s3] sm:$0xf] }
 0xb3e   : > { %5240 = vmatprep.subr.bf16.mxu0 %v7750_v10 }
 0xb3f   : > { %v3906_v51 = vrot.slane %v3905_v25, 2 }
 0xb41   : > { %v3907_v33 = vadd.f32 %v3906_v51, %v3905_v25 }
 0xb43   : > { %v3908_v1 = vrot.slane %v3907_v33, 1 }
 0xb45   : > { %v3909_v2 = vadd.f32 %v3908_v1, %v3907_v33 }
 0xb47   : > { %v3959_v27 = vpack.c.bf16 %v3909_v2, %v3909_v2 }
 0xb49   : > { %v4000_v18 = vunpack.c.l.b16 %v3959_v27 }
 0xb50   : > { %v3674_v17 = vpop.f32.mrb[80].mxu0 }
 0xb51   : > { %v3897_v34 = vmul.f32 %v6971_v41, %v3674_v17  ;;  %v5138_v60 = vpop.f32.mrb[81].mxu0 }
 0xb52   : > { %v3677_v48 = vpop.f32.mrb[82].mxu0 }
 0xb53   : > { %v3917_v58 = vsel %vm1896_vm3, %v3897_v34, 0.0  ;;  %v5139_v42 = vpop.f32.mrb[83].mxu0 }
 0xb54   : > { %v3918_v44 = vrot.slane %v3917_v58, 4 }
 0xb56   : > { %v3919_v50 = vadd.f32 %v3918_v44, %v3917_v58 }
 0xb57   : > { %v3631_v16 = vpop.f32.mrb[188].mxu1 }
 0xb58   : > { %v3920_v54 = vrot.slane %v3919_v50, 2  ;;  %v3896_v9 = vmul.f32 %v6971_v41, %v3631_v16  ;;  %v5126_v62 = vpop.f32.mrb[189].mxu1 }
 0xb59   : > { %v3634_v63 = vpop.f32.mrb[190].mxu1 }
 0xb5a   : > { %v3921_v28 = vadd.f32 %v3920_v54, %v3919_v50  ;;  %v3910_v45 = vsel %vm1896_vm3, %v3896_v9, 0.0  ;;  %v5127_v37 = vpop.f32.mrb[191].mxu1 }
 0xb5b   : > { %v3911_v49 = vrot.slane %v3910_v45, 4 }
 0xb5c   : > { %v3922_v35 = vrot.slane %v3921_v28, 1 }
 0xb5d   : > { %v3912_v57 = vadd.f32 %v3911_v49, %v3910_v45 }
 0xb5e   : > { %v3923_v31 = vadd.f32 %v3922_v35, %v3921_v28 }
 0xb5f   : > { %v3913_v12 = vrot.slane %v3912_v57, 2 }
 0xb60   : > { %v3961_v26 = vpack.c.bf16 %v3923_v31, %v3923_v31 }
 0xb61   : > { %v3914_v56 = vadd.f32 %v3913_v12, %v3912_v57 }
 0xb62   : > { %v4002_v61 = vunpack.c.l.b16 %v3961_v26 }
 0xb63   : > { %v3915_v14 = vrot.slane %v3914_v56, 1 }
 0xb65   : > { %v3916_v23 = vadd.f32 %v3915_v14, %v3914_v56 }
 0xb67   : > { %v3960_v59 = vpack.c.bf16 %v3916_v23, %v3916_v23 }
 0xb69   : > { %v4001_v29 = vunpack.c.l.b16 %v3960_v59 }
 0xb6b   : > { %v4008_v4 = vsel %vm2000_vm4, %v4001_v29, %v4000_v18 }
 0xb6c   : > { %v4009_v24 = vsel %vm2002_vm5, %v4002_v61, %v4008_v4 }
 0xb70   : > { %v3717_v52 = vpop.f32.mrb[192].mxu1 }
 0xb71   : > { %v3898_v53 = vmul.f32 %v6971_v41, %v3717_v52  ;;  %v5150_v38 = vpop.f32.mrb[193].mxu1 }
 0xb72   : > { %v3720_v43 = vpop.f32.mrb[194].mxu1 }
 0xb73   : > { %v3924_v47 = vsel %vm1896_vm3, %v3898_v53, 0.0  ;;  %v5151_v39 = vpop.f32.mrb[195].mxu1 }
 0xb74   : > { %v3925_v30 = vrot.slane %v3924_v47, 4 }
 0xb76   : > { %v3926_v55 = vadd.f32 %v3925_v30, %v3924_v47 }
 0xb78   : > { %v3927_v40 = vrot.slane %v3926_v55, 2 }
 0xb7a   : > { %v3928_v6 = vadd.f32 %v3927_v40, %v3926_v55 }
 0xb7c   : > { %v3929_v41 = vrot.slane %v3928_v6, 1 }
 0xb7e   : > { %v3930_v13 = vadd.f32 %v3929_v41, %v3928_v6 }
 0xb80   : > { %v3962_v8 = vpack.c.bf16 %v3930_v13, %v3930_v13 }
 0xb82   : > { %v4003_v46 = vunpack.c.l.b16 %v3962_v8 }
 0xb84   : > { %v4010_v22 = vsel %vm2004_vm6, %v4003_v46, %v4009_v24 }
 0xb90   : > { %v3760_v19 = vpop.f32.mrb[84].mxu0 }
 0xb91   : > { %v3899_v7 = vmul.f32 %v5570_v20, %v3760_v19  ;;  %v5162_v17 = vpop.f32.mrb[85].mxu0 }
 0xb92   : > { %v3763_v25 = vpop.f32.mrb[86].mxu0 }
 0xb93   : > { %v3931_v34 = vsel %vm1896_vm3, %v3899_v7, 0.0  ;;  %v5163_v60 = vpop.f32.mrb[87].mxu0 }
 0xb94   : > { %v3932_v48 = vrot.slane %v3931_v34, 4  ;;  %v5485_v60 = vld [vmem:[#allocation12 + $0x8] sm:$0xff]  }
 0xb96   : > { %v3933_v58 = vadd.f32 %v3932_v48, %v3931_v34  ;;  %v5484_v34 = vld [vmem:[#allocation12] sm:$0xff]  }
 0xb97   : > { %5221 = vmatpush3.bf16.msra.mxu1 %v5484_v34 }
 0xb98   : > { %v3934_v42 = vrot.slane %v3933_v58, 2  ;;  %5222 = vmatprep.subr.bf16.mxu1 %v7750_v10 }
 0xb9a   : > { %v3935_v44 = vadd.f32 %v3934_v42, %v3933_v58 }
 0xb9b   : > { %5223 = vmatpush3.bf16.msra.mxu1 %v5485_v60 }
 0xb9c   : > { %v3936_v51 = vrot.slane %v3935_v44, 1  ;;  %5224 = vmatprep.subr.bf16.mxu1 %v7750_v10 }
 0xb9e   : > { %v3937_v50 = vadd.f32 %v3936_v51, %v3935_v44  ;;  %v5486_v51 = vld [vmem:[#allocation12 + $0x10] sm:$0xff]  }
 0xb9f   : > { %5225 = vmatpush3.bf16.msra.mxu1 %v5486_v51 }
 0xba0   : > { %v3963_v16 = vpack.c.bf16 %v3937_v50, %v3937_v50  ;;  %5226 = vmatprep.subr.bf16.mxu1 %v7750_v10  ;;  %v5487_v50 = vld [vmem:[#allocation12 + $0x18] sm:$0xff]  }
 0xba2   : > { %v4004_v54 = vunpack.c.l.b16 %v3963_v16  ;;  %v5488_v16 = vld [vmem:[#allocation12 + $0x20] sm:$0xff]  }
 0xba3   : > { %5227 = vmatpush3.bf16.msra.mxu1 %v5487_v50 }
 0xba4   : > { %v4011_v9 = vsel %vm2006_vm7, %v4004_v54, %v4010_v22  ;;  %v4674_v22 = vld [vmem:[%s7614_s9 + $0x1] ss:$0 sm:$0xff]  ;;  %5228 = vmatprep.subr.bf16.mxu1 %v7750_v10  ;;  %v5489_v54 = vld [vmem:[#allocation12 + $0x28] sm:$0xff]  }
 0xba7   : > { %5229 = vmatpush3.bf16.msra.mxu1 %v5488_v16 }
 0xba8   : > { %5230 = vmatprep.subr.bf16.mxu1 %v7750_v10 }
 0xbab   : > { %5231 = vmatpush3.bf16.msra.mxu1 %v5489_v54 }
 0xbac   : > { %5232 = vmatprep.subr.bf16.mxu1 %v7750_v10 }
 0xbb0   : > { %v3803_v62 = vpop.f32.mrb[196].mxu1 }
 0xbb1   : > { %v3900_v33 = vmul.f32 %v5570_v20, %v3803_v62  ;;  %v5174_v63 = vpop.f32.mrb[197].mxu1  ;;  %v5491_v62 = vld [vmem:[#allocation12 + $0x38] sm:$0xff]  }
 0xbb2   : > { %v3806_v28 = vpop.f32.mrb[198].mxu1  ;;  %v5493_v63 = vld [vmem:[#allocation14 + $0x8] sm:$0xff]  }
 0xbb3   : > { %v3938_v45 = vsel %vm1896_vm3, %v3900_v33, 0.0  ;;  %v5175_v37 = vpop.f32.mrb[199].mxu1  ;;  %v5492_v33 = vld [vmem:[#allocation14] sm:$0xff]   ;;  %v5494_v28 = vld [vmem:[#allocation14 + $0x10] sm:$0xff]  }
 0xbb4   : > { %v3939_v49 = vrot.slane %v3938_v45, 4  ;;  %v5496_v37 = vld [vmem:[#allocation14 + $0x20] sm:$0xff]  }
 0xbb6   : > { %v3940_v1 = vadd.f32 %v3939_v49, %v3938_v45  ;;  %v5495_v45 = vld [vmem:[#allocation14 + $0x18] sm:$0xff]   ;;  %v5497_v49 = vld [vmem:[#allocation14 + $0x28] sm:$0xff]  }
 0xbb8   : > { %v3941_v57 = vrot.slane %v3940_v1, 2 }
 0xbba   : > { %v3942_v35 = vadd.f32 %v3941_v57, %v3940_v1 }
 0xbbc   : > { %v3943_v12 = vrot.slane %v3942_v35, 1 }
 0xbbe   : > { %v3944_v2 = vadd.f32 %v3943_v12, %v3942_v35 }
 0xbc0   : > { %v3964_v56 = vpack.c.bf16 %v3944_v2, %v3944_v2  ;;  %v4685_v2 = vld [vmem:[%s7615_s10 + $0x1] ss:$0 sm:$0xff] }
 0xbc2   : > { %v4005_v31 = vunpack.c.l.b16 %v3964_v56 }
 0xbc4   : > { %v4012_v32 = vsel %vm2008_vm8, %v4005_v31, %v4011_v9  ;;  %v5490_v9 = vld [vmem:[#allocation12 + $0x30] sm:$0xff]   ;;  %v4686_v31 = vld [vmem:[%s7722_s28 + $0x1] ss:$0 sm:$0xff] }
 0xbc5   : > { %5233 = vmatpush3.bf16.msra.mxu1 %v5490_v9 }
 0xbc6   : > { %5234 = vmatprep.subr.bf16.mxu1 %v7750_v10 }
 0xbc9   : > { %5235 = vmatpush3.bf16.msra.mxu1 %v5491_v62 }
 0xbd0   : > { %v3846_v14 = vpop.f32.mrb[88].mxu0 }
 0xbd1   : > { %v3901_v21 = vmul.f32 %v5570_v20, %v3846_v14  ;;  %v5186_v27 = vpop.f32.mrb[89].mxu0 }
 0xbd2   : > { %v3849_v23 = vpop.f32.mrb[90].mxu0  ;;  %v5498_v27 = vld [vmem:[#allocation14 + $0x30] sm:$0xff]  }
 0xbd3   : > { %v3945_v26 = vsel %vm1896_vm3, %v3901_v21, 0.0  ;;  %v5187_v59 = vpop.f32.mrb[91].mxu0  ;;  %v5499_v23 = vld [vmem:[#allocation14 + $0x38] sm:$0xff]  }
 0xbd4   : > { %v3946_v18 = vrot.slane %v3945_v26, 4 }
 0xbd6   : > { %v3947_v29 = vadd.f32 %v3946_v18, %v3945_v26  ;;  %v4687_v26 = vld [vmem:[%s7861_s21] ss:$0 sm:$0xff]  ;;  %s5870_s21 = smov [#allocation15]  }
 0xbd7   : > { %s5775_s20 = sshll.u32 %s5870_s21, 4  ;;  %s5776_s20 = int_to_ptr.vmem [resolvable:$false] %s5775_s20 }
 0xbd8   : > { %v3948_v61 = vrot.slane %v3947_v29, 2  ;;  %s5777_s2 = scalar_lea.vmem %s5776_s20, 256  ;;  %p5778_p0 = scmp.lt.s32.totalorder %s7558_s12, %s5776_s20 }
 0xbd9   : > { %p5779_p5 = scmp.lt.s32.totalorder %s5777_s2, %s5771_s14 }
 0xbda   : > { %v3949_v4 = vadd.f32 %v3948_v61, %v3947_v29 }
 0xbdb   : > { %p5780_p7 = por %p5779_p5, %p5778_p0 }
 0xbdc   : > { %v3950_v24 = vrot.slane %v3949_v4, 1 }
 0xbdd   : > { %p5781_p8 = pnand %p5780_p7, %p5774_p9 }
 0xbde   : > { %v3951_v52 = vadd.f32 %v3950_v24, %v3949_v4 }
 0xbe0   : > { %v3965_v5 = vpack.c.bf16 %v3951_v52, %v3951_v52 }
 0xbe2   : > { %v4006_v53 = vunpack.c.l.b16 %v3965_v5  ;;  %v4696_v5 = vld [vmem:[%s7862_s13] ss:$0 sm:$0xff] }
 0xbe4   : > { %v4013_v38 = vsel %vm2010_vm9, %v4006_v53, %v4012_v32 }
 0xbf0   : > { %v3889_v43 = vpop.f32.mrb[200].mxu1 }
 0xbf1   : > { %v3902_v47 = vmul.f32 %v5570_v20, %v3889_v43  ;;  %v5198_v39 = vpop.f32.mrb[201].mxu1 }
 0xbf2   : > { %v3892_v30 = vpop.f32.mrb[202].mxu1 }
 0xbf3   : > { %v3952_v36 = vsel %vm1896_vm3, %v3902_v47, 0.0  ;;  %v5199_v55 = vpop.f32.mrb[203].mxu1  ;;  %v4705_v47 = vld [vmem:[%s7863_s25] ss:$0 sm:$0xff] }
 0xbf4   : > { %v3953_v40 = vrot.slane %v3952_v36, 4  ;;  %v4706_v55 = vld [vmem:[#allocation2] ss:$0 sm:$0xff] }
 0xbf6   : > { %v3954_v11 = vadd.f32 %v3953_v40, %v3952_v36 }
 0xbf8   : > { %v3955_v6 = vrot.slane %v3954_v11, 2 }
 0xbfa   : > { %v3956_v41 = vadd.f32 %v3955_v6, %v3954_v11 }
 0xbfc   : > { %v3957_v3 = vrot.slane %v3956_v41, 1 }
 0xbfe   : > { %v3958_v13 = vadd.f32 %v3957_v3, %v3956_v41 }
 0xc00   : > { %v3966_v8 = vpack.c.bf16 %v3958_v13, %v3958_v13 }
 0xc02   : > { %v4007_v0 = vunpack.c.l.b16 %v3966_v8 }
 0xc04   : > { %v4014_v46 = vsel %vm2012_vm10, %v4007_v0, %v4013_v38 }
 0xc05   : > { %v4015_v15 = vpack.c.b16 %v4014_v46, %v4014_v46 }
 0xc07   : > { %5217 = vmatmul.mubr.bf16.vlgmr.msra.gmra.mrb[92].mxu0 %v4015_v15 }
 0xc08   : > { %5256 = vmatprep.mubr.msk.bf16.mxu0 %vm5868_vm0, %v7750_v10  ;;  %5241 = vmatpush3.bf16.msra.mxu0 %v5492_v33 }
 0xc09   : > { %5242 = vmatprep.subr.bf16.mxu0 %v7750_v10 }
 0xc0c   : > { %5243 = vmatpush3.bf16.msra.mxu0 %v5493_v63 }
 0xc0d   : > { %5244 = vmatprep.subr.bf16.mxu0 %v7750_v10 }
 0xc10   : > { %5245 = vmatpush3.bf16.msra.mxu0 %v5494_v28 }
 0xc11   : > { %5246 = vmatprep.subr.bf16.mxu0 %v7750_v10 }
 0xc14   : > { %5247 = vmatpush3.bf16.msra.mxu0 %v5495_v45 }
 0xc15   : > { %5248 = vmatprep.subr.bf16.mxu0 %v7750_v10 }
 0xc18   : > { %5249 = vmatpush3.bf16.msra.mxu0 %v5496_v37 }
 0xc19   : > { %5250 = vmatprep.subr.bf16.mxu0 %v7750_v10 }
 0xc1c   : > { %5251 = vmatpush3.bf16.msra.mxu0 %v5497_v49 }
 0xc1d   : > { %5252 = vmatprep.subr.bf16.mxu0 %v7750_v10 }
 0xc20   : > { %5253 = vmatpush3.bf16.msra.mxu0 %v5498_v27 }
 0xc21   : > { %5254 = vmatprep.subr.bf16.mxu0 %v7750_v10 }
 0xc24   : > { %5255 = vmatpush3.bf16.msra.mxu0 %v5499_v23 }
 0xcda   : > { %v4099_v19 = vpop.f32.mrb[92].mxu0 }
 0xcdb   : > { %v4100_v20 = vadd.f32 %v4674_v22, %v4099_v19  ;;  %v5218_v7 = vpop.f32.mrb[93].mxu0 }
 0xcdc   : > { %v4102_v17 = vpop.f32.mrb[94].mxu0 }
 0xcdd   : > { %4109 = vadd.xlane.f32.xlu0 %v4100_v20  ;;  %v5219_v25 = vpop.f32.mrb[95].mxu0 }
 0xd6a   : > { %v4110_v48 = vpop.xlane.xlu0 %4109 }
 0xd6b   : > { %v4111_v58 = vmul.f32 0.0078125, %v4110_v48 }
 0xd6d   : > { %v4112_v42 = vsub.f32 %v4100_v20, %v4111_v58 }
 0xd6f   : > { %v4113_v44 = vmul.f32 %v4112_v42, %v4112_v42 }
 0xd71   : > { %4114 = vadd.xlane.f32.xlu1 %v4113_v44 }
 0xdfe   : > { %v4115_v1 = vpop.xlane.xlu1 %4114 }
 0xdff   : > { %v4116_v57 = vmul.f32 0.0078125, %v4115_v1 }
 0xe01   : > { %v4117_v35 = vadd.f32 1e-05, %v4116_v57 }
 0xe03   : > { %5566 = vrsqrt.f32 %v4117_v35 }
 0xe0d   : > { %v5567_v12 = vpop.eup %5566 }
 0xe0e   : > { %v4119_v56 = vmul.f32 %v5567_v12, %v4112_v42 }
 0xe10   : > { %v4126_v32 = vmul.f32 %v4685_v2, %v4119_v56 }
 0xe12   : > { %v4133_v14 = vadd.f32 %v4686_v31, %v4126_v32 }
 0xe14   : > { %v4134_v21 = vpack.c.bf16 %v4133_v14, %v4133_v14 }
 0xe16   : > { %5237 = vmatmul.mubr.bf16.vlgmr.msra.gmra.mrb[204].mxu1 %v4134_v21 }
 0xee9   : > { %v4240_v59 = vpop.f32.mrb[204].mxu1 }
 0xeea   : > { %v4241_v18 = vadd.f32 %v4687_v26, %v4240_v59  ;;  %v5238_v29 = vpop.f32.mrb[205].mxu1 }
 0xeeb   : > { %v4243_v61 = vpop.f32.mrb[206].mxu1 }
 0xeec   : > { %v4246_v4 = vmax.f32 %v4241_v18, 0.0  ;;  %v5239_v24 = vpop.f32.mrb[207].mxu1 }
 0xeee   : > { %v4247_v52 = vpack.c.bf16 %v4246_v4, %v4246_v4 }
 0xef0   : > { %5257 = vmatmul.mubr.bf16.vlgmr.msra.gmra.mrb[96].mxu0 %v4247_v52 }
 0xfc3   : > { %v4353_v10 = vpop.f32.mrb[96].mxu0 }
 0xfc4   : > { %v4354_v53 = vadd.f32 %v4696_v5, %v4353_v10  ;;  %v5258_v38 = vpop.f32.mrb[97].mxu0 }
 0xfc5   : > { %v4356_v43 = vpop.f32.mrb[98].mxu0 }
 0xfc6   : > { %v4359_v39 = vmax.f32 %v4354_v53, 0.0  ;;  %v5259_v30 = vpop.f32.mrb[99].mxu0 }
 0xfc8   : > { %v4367_v36 = vmul.f32 %v4705_v47, %v4359_v39 }
 0xfca   : > { %4368 = vadd.xlane.f32.xlu0 %v4367_v36 }
0x1057   : > { %v4369_v40 = vpop.xlane.xlu0 %4368 }
0x1058   : > { %v4377_v11 = vadd.f32 %v4706_v55, %v4369_v40 }
0x105a   : > { %4380 = vperm.xlu1 %5370, %v4377_v11  }
0x10d9   : > { %v4381_v6 = vpop.permute.xlu1 %4380 }
0x10da   : > { %4383 = vst [vmem:[%s709_s23] sm:$0xff] %v4381_v6 }
0x10db   : > { %5784 = shalt.err (!%p5781_p8)
}
0x10dc   : > { %s5785_s0 = scalar_lea.hbm %s7563_s6, 128  ;;  %s5789_s8 = scalar_lea.hbm %s7864_s18, 256 }
0x10dd   : > { %p5786_p4 = scmp.ne.s32.totalorder %s7563_s6, %s5785_s0  ;;  %p5790_p1 = scmp.lt.u32.totalorder %s7563_s6, %s7864_s18 }
0x10de   : > { %p5791_p11 = scmp.lt.u32.totalorder %s5789_s8, %s5785_s0  ;;  %p5793_p2 = scmp.lt.u32.totalorder %s5785_s0, %s7563_s6 }
0x10df   : > { %p5787_p3 = pnand %p5786_p4, %p7865_p13 }
0x10e0   : > { %p5792_p12 = por %p5791_p11, %p5790_p1 }
0x10e1   : > { %p5788_p10 = pneg %p5787_p3 }
0x10e2   : > { %p5794_p6 = por %p5793_p2, %p5792_p12 }
0x10e4   : > { %p5795_p9 = pnand %p5794_p6, %p5788_p10 }
0x10e6   : > { %5798 = shalt.err (!%p5795_p9)
}
0x10e7   : > { %5284 = dma.vmem_to_hbm [thread:$0]  (%p7865_p13), %s7558_s12, 128, %s7563_s6, %s4385_s17  }
0x10e8 PF: > { %s4410_s4 = sand.u32 1, %s5841_s29   ;;  %p7866_p0 = scmp.ne.s32.totalorder %s7708_s24, 0 }
0x10e9   : > { %p7867_p5 = scmp.ge.s32.totalorder %s5853_s19, 2  ;;  %s4411_s23 = scalar_lea.sflag [#allocation5], %s4410_s4 }
0x10eb   : > { %p5310_p7 = pnand %p7867_p5, %p7866_p0 }
0x10ed   : > { %5836 = dma.done.wait (!%p5310_p7), %s4411_s23, 128  }
0x10ee   : > { %5838 = vsyncadd (!%p5310_p7), %s4411_s23, 4294967168  ;;  %s7868_s15 = sld [smem:[#allocation22_spill]]  ;;  %s7869_s0 = sld [smem:[#allocation23_spill]] }
0x10ef   : > { %p38_p8 = scmp.ge.s32.totalorder %s6135_s22, 4   ;;  %s7870_s29 = smov %s5845_s30 }
0x10f0   : > { %s7872_s19 = smov %s6135_s22 }
0x10f1   :  { %40 = sbr.rel (!%p38_p8) target bundleno = 24 (0x18), region = 176 }
0x10f4   : > { %s7871_s30 = smov %s7868_s15 }
0x10f8   :  { %4416 = vsyncpa [#allocation4], 1 }
0x10f9   :  { %4418 = vsyncpa [#allocation4 + $0x1], 1 }
0x10fa   :  { %4419 = vsyncpa [#allocation7], 1 }
0x10fb   :  { %4421 = vsyncpa [#allocation7 + $0x1], 1 }
0x10fc   :  { %4422 = vsyncpa [#allocation10], 1 }
0x10fd   :  { %4423 = vsyncpa [#allocation13], 1 }
0x10fe   :  { %4424 = vsyncpa [#allocation5], 1 }
0x10ff   :  { %4426 = vsyncpa [#allocation5 + $0x1], 1 }

</bundles_post_ra>
